<compile_context>
chip_gen: v6e
topology: v6e:2x2x1
jax: 0.10.0
libtpu: 0.0.40
codegen_flags: <defaults>
</compile_context>

<pallas_src>
import functools

import numpy as np
import jax
import jax.numpy as jnp
from jax import lax
from jax.experimental import pallas as pl
from jax.experimental.pallas import tpu as pltpu

# ---- opt.* configuration (MNIST-like, small) --------------------------------
CHANNELS = 1
IMG_SIZE = 32                      # ds_size = 32 // 2**4 = 2
N_CLASSES = 10
CODE_DIM = 2
LATENT_DIM = 62
BN_EPS = 0.8                       # nn.BatchNorm2d(out_filters, 0.8): eps
LEAKY_SLOPE = 0.2

DS = IMG_SIZE // 2 ** 4            # 2
DS2 = DS * DS                      # 4 spatial positions after the conv stack
FEAT_DIM = 128 * DS2               # 512
HEAD_DIM = N_CLASSES + CODE_DIM + LATENT_DIM   # 74
HEAD_PAD = 128                     # lane-dense padded head width

# Epilogue pack: row assignments inside one (16, 128) f32 array.
EP_B1 = 0                          # block-1 bias (16 lanes)
EP_CONV = {2: 1, 3: 4, 4: 7}       # rows (bias, gamma, beta) for bn conv blocks
EP_BH = 10                         # fused head bias (128 lanes)
EP_ROWS = 16


def _vmem_spec():
    return pl.BlockSpec(memory_space=pltpu.MemorySpace.VMEM)


# ------------------------------ Pallas kernel --------------------------------
def encoder_kernel(p1_ref, w1_ref, g2_ref, w2_ref, g3_ref, w3_ref,
                   g4_ref, w4_ref, wh_ref, ep_ref, out_ref, *, batch):
    f32 = jnp.float32
    bf16 = jnp.bfloat16

    def ep(row, width):
        # one packed (16, 128) f32 input instead of ~11 tiny DMAs
        return ep_ref[row:row + 1, 0:width]

    # ---- block 1: Cin=1 conv as one (m1, 16) @ (16, 16) bf16 MXU matmul -----
    y = jnp.dot(p1_ref[...], w1_ref[...], preferred_element_type=f32)
    y = y + ep(EP_B1, 16)
    y = jnp.where(y > 0.0, y, LEAKY_SLOPE * y)           # bn=False for block 1

    # ---- blocks 2..4: precomputed gather + 9 accumulating tap matmuls -------
    for blk, g_ref, w_ref in ((2, g2_ref, w2_ref),
                              (3, g3_ref, w3_ref),
                              (4, g4_ref, w4_ref)):
        cout = w_ref.shape[2]
        yb = y.astype(bf16)                              # (m_prev, cin)
        # One tall gather matmul: exact 0/1 row selection on the MXU; all-zero
        # gather rows supply the conv's zero padding for free.
        patches = jnp.dot(g_ref[...], yb, preferred_element_type=f32)  # (9m, cin)
        m = patches.shape[0] // 9
        acc = jnp.dot(patches[0:m, :].astype(bf16), w_ref[0],
                      preferred_element_type=f32)
        for t in range(1, 9):
            acc = acc + jnp.dot(patches[t * m:(t + 1) * m, :].astype(bf16),
                                w_ref[t], preferred_element_type=f32)
        row = EP_CONV[blk]
        acc = acc + ep(row, cout)
        acc = jnp.where(acc > 0.0, acc, LEAKY_SLOPE * acc)
        # BatchNorm2d(eps=0.8), training-mode batch statistics over all rows
        # (n, h, w), single f32 pass, gamma*rsqrt folded into one FMA.
        # TODO(synk): E[x^2]-E[x]^2 is cancellation-prone with trained weights;
        # use a two-pass / Welford finalize if this kernel is reused beyond here.
        s1 = jnp.sum(acc, axis=0, keepdims=True)
        s2 = jnp.sum(acc * acc, axis=0, keepdims=True)
        mean = s1 * (1.0 / m)
        var = s2 * (1.0 / m) - mean * mean               # biased variance
        scale = ep(row + 1, cout) * lax.rsqrt(var + BN_EPS)
        shift = ep(row + 2, cout) - mean * scale
        y = acc * scale + shift

    # ---- fused heads ---------------------------------------------------------
    # y: (batch*DS2, 128) with rows ordered (hw, n) by construction of g4, so
    # the NCHW flatten + 3 linears become DS2 accumulating matmuls against
    # wh[hw] -- zero activation relayout.
    yb = y.astype(bf16)
    h = jnp.dot(yb[0:batch, :], wh_ref[0], preferred_element_type=f32)
    for hw in range(1, DS2):
        h = h + jnp.dot(yb[hw * batch:(hw + 1) * batch, :], wh_ref[hw],
                        preferred_element_type=f32)
    h = h + ep(EP_BH, HEAD_PAD)                          # (batch, 128) f32

    # Softmax over the first N_CLASSES lanes only (aux head); remaining lanes
    # carry the raw latent / noise linear outputs (and zero padding).
    lane = lax.broadcasted_iota(jnp.int32, h.shape, 1)
    is_cls = lane < N_CLASSES
    z = jnp.where(is_cls, h, -1e30)
    zmax = jnp.max(z, axis=-1, keepdims=True)
    e = jnp.exp(z - zmax)
    inv = pl.reciprocal(jnp.sum(e, axis=-1, keepdims=True), approx=True)
    out_ref[...] = jnp.where(is_cls, e * inv, h)


# ------------------------------ wrapper ---------------------------------------
@jax.jit
def encoder_forward_pallas(kp, img):
    """img: (N, 1, 32, 32) NCHW float32 -> (label, latent_code, noise)."""
    n = img.shape[0]
    ho = wo = IMG_SIZE // 2
    x = img[:, 0]                                        # CHANNELS == 1
    xp = jnp.pad(x, ((0, 0), (1, 1), (1, 1)))
    # Block-1 im2col (tap order (kh, kw)); lane-padded K 9 -> 16, bf16 so the
    # HBM->VMEM transfer is small and dense.
    cols = [xp[:, kh:kh + 2 * ho:2, kw:kw + 2 * wo:2]
            for kh in range(3) for kw in range(3)]
    p1 = jnp.stack(cols, axis=-1).reshape(n * ho * wo, 9)
    p1 = jnp.pad(p1, ((0, 0), (0, 7))).astype(jnp.bfloat16)
    # TODO(synk): fold this tiny im2col into the kernel too (needs an in-kernel
    # lane->sublane transpose or strided scratch reads); at batch=2 it is noise.

    kernel = functools.partial(encoder_kernel, batch=n)
    out = pl.pallas_call(
        kernel,
        out_shape=jax.ShapeDtypeStruct((n, HEAD_PAD), jnp.float32),
        in_specs=[_vmem_spec()] * 10,
        out_specs=_vmem_spec(),
    )(p1, kp["w1"], kp["g2"], kp["w2"], kp["g3"], kp["w3"],
      kp["g4"], kp["w4"], kp["wh"], kp["ep"])

    label = out[:, :N_CLASSES]
    latent_code = out[:, N_CLASSES:N_CLASSES + CODE_DIM]
    noise = out[:, N_CLASSES + CODE_DIM:HEAD_DIM]
    return label, latent_code, noise


# --------------------------- parameter setup ---------------------------------
def spectral_normalize(w2d, key, n_iter=5):
    """W / sigma_max(W) via power iteration.
    # TODO(synk): PyTorch's spectral_norm keeps a persistent random `u` and does
    # one power iteration per forward; approximated with 5 iterations at init."""
    u = jax.random.normal(key, (w2d.shape[0],), dtype=jnp.float32)
    u = u / (jnp.linalg.norm(u) + 1e-12)
    v = None
    for _ in range(n_iter):
        v = w2d.T @ u
        v = v / (jnp.linalg.norm(v) + 1e-12)
        u = w2d @ v
        u = u / (jnp.linalg.norm(u) + 1e-12)
    sigma = u @ (w2d @ v)
    return w2d / sigma


def init_params(key):
    """PyTorch-layout parameters (conv (Cout,Cin,3,3), linear (Out,F))."""
    params = {"conv": []}
    conv_cfg = [(CHANNELS, 16, False), (16, 32, True), (32, 64, True), (64, 128, True)]
    keys = jax.random.split(key, 2 * len(conv_cfg) + 6)
    ki = 0
    for cin, cout, _bn in conv_cfg:
        w = 0.1 * jax.random.normal(keys[ki], (cout, cin, 3, 3), dtype=jnp.float32); ki += 1
        w2d = spectral_normalize(w.reshape(cout, -1), keys[ki]); ki += 1
        w = w2d.reshape(cout, cin, 3, 3)
        # Round to bf16 so the in-kernel bf16 MXU path sees exactly these weights.
        w = w.astype(jnp.bfloat16).astype(jnp.float32)
        params["conv"].append({
            "w": w,
            "b": jnp.zeros((cout,), jnp.float32),
            "gamma": jnp.ones((cout,), jnp.float32),
            "beta": jnp.zeros((cout,), jnp.float32),
        })
    for name, out_dim in (("aux", N_CLASSES), ("lat", CODE_DIM), ("noise", LATENT_DIM)):
        w = 0.05 * jax.random.normal(keys[ki], (out_dim, FEAT_DIM), dtype=jnp.float32); ki += 1
        w = spectral_normalize(w, keys[ki]); ki += 1
        w = w.astype(jnp.bfloat16).astype(jnp.float32)
        params[f"{name}_w"] = w
        params[f"{name}_b"] = jnp.zeros((out_dim,), jnp.float32)
    return params


def _build_gather(batch, hi, out_order):
    """One-hot gather matrix for a 3x3 / stride-2 / pad-1 conv's im2col.

    Selects flattened input rows (n, h, w) [lanes = channels] into patch rows
    ordered (tap, output_row); all-zero rows supply the conv's zero padding.
    out_order: "bhw" -> output rows (n, io, jo); "hwb" -> (io, jo, n).
    """
    ho = hi // 2
    m_prev = batch * hi * hi
    m = batch * ho * ho
    g = np.zeros((9 * m, m_prev), np.float32)
    for b in range(batch):
        for io in range(ho):
            for jo in range(ho):
                if out_order == "bhw":
                    r = (b * ho + io) * ho + jo
                else:
                    r = (io * ho + jo) * batch + b
                for kh in range(3):
                    for kw in range(3):
                        hs, ws = 2 * io + kh - 1, 2 * jo + kw - 1
                        if 0 <= hs < hi and 0 <= ws < hi:
                            t = kh * 3 + kw
                            g[t * m + r, (b * hi + hs) * hi + ws] = 1.0
    return jnp.asarray(g, jnp.bfloat16)


def prepare_kernel_params(params, batch):
    """Reshape / permute / pad / cast parameters once, at init, to kernel layout."""
    kp = {}
    conv = params["conv"]

    # Block 1: (16, 1, 3, 3) -> (9, 16) with row index kh*3+kw, K padded to 16 (bf16 MXU).
    w1 = jnp.transpose(conv[0]["w"][:, 0], (1, 2, 0)).reshape(9, 16)
    kp["w1"] = jnp.pad(w1, ((0, 7), (0, 0))).astype(jnp.bfloat16)

    # Blocks 2-4: (Cout, Cin, 3, 3) -> (9, Cin, Cout) per-tap weights; bf16.
    for l in (1, 2, 3):
        w = conv[l]["w"]
        cout, cin = w.shape[0], w.shape[1]
        kp[f"w{l + 1}"] = (jnp.transpose(w, (2, 3, 1, 0))
                           .reshape(9, cin, cout).astype(jnp.bfloat16))

    # Precomputed im2col gathers (static: depend only on batch / spatial size).
    kp["g2"] = _build_gather(batch, IMG_SIZE // 2, "bhw")   # 16x16 -> 8x8
    kp["g3"] = _build_gather(batch, IMG_SIZE // 4, "bhw")   #  8x8  -> 4x4
    kp["g4"] = _build_gather(batch, IMG_SIZE // 8, "hwb")   #  4x4  -> 2x2, rows (hw, n)

    # Heads: concat aux/lat/noise, pad 74 -> 128 outputs, and reshape so the
    # PyTorch NCHW .view() flatten (feature = c*DS2 + hw) becomes DS2
    # accumulating matmuls against block-4 rows ordered (hw, n).
    ws, bs = [], []
    for name in ("aux", "lat", "noise"):
        ws.append(params[f"{name}_w"])
        bs.append(params[f"{name}_b"])
    wcat = jnp.concatenate(ws, axis=0)                      # (74, 512)
    bcat = jnp.concatenate(bs, axis=0)                      # (74,)
    wcat = jnp.pad(wcat, ((0, HEAD_PAD - wcat.shape[0]), (0, 0)))
    bcat = jnp.pad(bcat, ((0, HEAD_PAD - bcat.shape[0]),))
    kp["wh"] = (wcat.reshape(HEAD_PAD, 128, DS2)
                .transpose(2, 1, 0).astype(jnp.bfloat16))   # (DS2, 128, 128)

    # Epilogue pack: every tiny bias/gamma/beta vector in one (16, 128) f32 array.
    ep = np.zeros((EP_ROWS, HEAD_PAD), np.float32)
    ep[EP_B1, :16] = np.asarray(conv[0]["b"])
    for l in (1, 2, 3):
        row = EP_CONV[l + 1]
        cw = conv[l]["b"].shape[0]
        ep[row, :cw] = np.asarray(conv[l]["b"])
        ep[row + 1, :cw] = np.asarray(conv[l]["gamma"])
        ep[row + 2, :cw] = np.asarray(conv[l]["beta"])
    ep[EP_BH, :] = np.asarray(bcat)
    kp["ep"] = jnp.asarray(ep)
    return kp


# ------------------------- pure-JAX reference ---------------------------------
@jax.jit
def reference_forward(params, img):
    x = img
    for blk, bn in zip(params["conv"], (False, True, True, True)):
        x = lax.conv_general_dilated(
            x, blk["w"], window_strides=(2, 2), padding=((1, 1), (1, 1)),
            dimension_numbers=("NCHW", "OIHW", "NCHW"))
        x = x + blk["b"][None, :, None, None]
        x = jnp.where(x > 0, x, LEAKY_SLOPE * x)
        if bn:
            mean = jnp.mean(x, axis=(0, 2, 3), keepdims=True)
            var = jnp.mean((x - mean) ** 2, axis=(0, 2, 3), keepdims=True)
            x = (x - mean) * lax.rsqrt(var + BN_EPS)
            x = x * blk["gamma"][None, :, None, None] + blk["beta"][None, :, None, None]
    feat = x.reshape(x.shape[0], -1)
    label = jax.nn.softmax(feat @ params["aux_w"].T + params["aux_b"], axis=-1)
    latent_code = feat @ params["lat_w"].T + params["lat_b"]
    noise = feat @ params["noise_w"].T + params["noise_b"]
    return label, latent_code, noise


# --------------------------------- main ---------------------------------------
if __name__ == "__main__":
    key = jax.random.PRNGKey(0)
    pkey, xkey = jax.random.split(key)
    params = init_params(pkey)
    img = jax.random.normal(xkey, (2, CHANNELS, IMG_SIZE, IMG_SIZE), dtype=jnp.float32)
    kparams = prepare_kernel_params(params, batch=img.shape[0])

    label, latent_code, noise = encoder_forward_pallas(kparams, img)
    jax.block_until_ready((label, latent_code, noise))

    ref_label, ref_code, ref_noise = reference_forward(params, img)
    jax.block_until_ready((ref_label, ref_code, ref_noise))

    assert label.shape == (2, N_CLASSES)
    assert latent_code.shape == (2, CODE_DIM)
    assert noise.shape == (2, LATENT_DIM)
    assert bool(jnp.all(jnp.isfinite(label) & (label >= 0)))
    # approx=True reciprocal in the softmax -> allow a small deviation from 1.
    assert bool(jnp.allclose(jnp.sum(label, axis=-1), 1.0, atol=5e-3))
    # Loose tolerance: kernel uses bf16 MXU operands, reference is f32 throughout.
    assert bool(jnp.allclose(label, ref_label, atol=5e-2))
    assert bool(jnp.allclose(latent_code, ref_code, atol=1e-1))
    assert bool(jnp.allclose(noise, ref_noise, atol=1e-1))
    print("KERNEL_OK")
</pallas_src>

<mosaic_0001>
module attributes {stable_mosaic.version = 11 : i64} {
  func.func @encoder_kernel(%arg0: memref<512x16xbf16, #tpu.memory_space<vmem>>, %arg1: memref<16x16xbf16, #tpu.memory_space<vmem>>, %arg2: memref<1152x512xbf16, #tpu.memory_space<vmem>>, %arg3: memref<9x16x32xbf16, #tpu.memory_space<vmem>>, %arg4: memref<288x128xbf16, #tpu.memory_space<vmem>>, %arg5: memref<9x32x64xbf16, #tpu.memory_space<vmem>>, %arg6: memref<72x32xbf16, #tpu.memory_space<vmem>>, %arg7: memref<9x64x128xbf16, #tpu.memory_space<vmem>>, %arg8: memref<4x128x128xbf16, #tpu.memory_space<vmem>>, %arg9: memref<16x128xf32, #tpu.memory_space<vmem>>, %arg10: memref<2x128xf32, #tpu.memory_space<vmem>>) attributes {dimension_semantics = [], scalar_prefetch = 0 : i64, scratch_operands = 0 : i64, tpu.core_type = #tpu.core_type<tc>} {
    %c0 = arith.constant 0 : index
    %c0_0 = arith.constant 0 : index
    %0 = vector.load %arg0[%c0, %c0_0] : memref<512x16xbf16, #tpu.memory_space<vmem>>, vector<512x16xbf16>
    %c0_1 = arith.constant 0 : index
    %c0_2 = arith.constant 0 : index
    %1 = vector.load %arg1[%c0_1, %c0_2] : memref<16x16xbf16, #tpu.memory_space<vmem>>, vector<16x16xbf16>
    %cst = arith.constant dense<0.000000e+00> : vector<512x16xf32>
    %2 = tpu.matmul %0, %1, %cst {dimension_numbers = #tpu.dot_dimension_numbers<[1], [0], [0], [1], [0, 0, 1, 1], [], []>} : vector<512x16xbf16>, vector<16x16xbf16>, vector<512x16xf32> -> vector<512x16xf32>
    %c0_3 = arith.constant 0 : index
    %c0_4 = arith.constant 0 : index
    %3 = vector.load %arg9[%c0_3, %c0_4] : memref<16x128xf32, #tpu.memory_space<vmem>>, vector<1x16xf32>
    %4 = vector.broadcast %3 : vector<1x16xf32> to vector<512x16xf32>
    %5 = arith.addf %2, %4 : vector<512x16xf32>
    %cst_5 = arith.constant 0.000000e+00 : f32
    %6 = vector.broadcast %cst_5 : f32 to vector<512x16xf32>
    %7 = arith.cmpf ogt, %5, %6 : vector<512x16xf32>
    %cst_6 = arith.constant 2.000000e-01 : f32
    %8 = vector.broadcast %cst_6 : f32 to vector<512x16xf32>
    %9 = arith.mulf %8, %5 : vector<512x16xf32>
    %10 = arith.select %7, %5, %9 : vector<512x16xi1>, vector<512x16xf32>
    %11 = arith.truncf %10 : vector<512x16xf32> to vector<512x16xbf16>
    %c0_7 = arith.constant 0 : index
    %c0_8 = arith.constant 0 : index
    %12 = vector.load %arg2[%c0_7, %c0_8] : memref<1152x512xbf16, #tpu.memory_space<vmem>>, vector<1152x512xbf16>
    %cst_9 = arith.constant dense<0.000000e+00> : vector<1152x16xf32>
    %13 = tpu.matmul %12, %11, %cst_9 {dimension_numbers = #tpu.dot_dimension_numbers<[1], [0], [0], [1], [0, 0, 1, 1], [], []>} : vector<1152x512xbf16>, vector<512x16xbf16>, vector<1152x16xf32> -> vector<1152x16xf32>
    %14 = vector.extract_strided_slice %13 {offsets = [0, 0], sizes = [128, 16], strides = [1, 1]} : vector<1152x16xf32> to vector<128x16xf32>
    %15 = arith.truncf %14 : vector<128x16xf32> to vector<128x16xbf16>
    %c0_10 = arith.constant 0 : index
    %c0_11 = arith.constant 0 : index
    %c0_12 = arith.constant 0 : index
    %16 = vector.load %arg3[%c0_10, %c0_11, %c0_12] : memref<9x16x32xbf16, #tpu.memory_space<vmem>>, vector<1x16x32xbf16>
    %17 = vector.shape_cast %16 : vector<1x16x32xbf16> to vector<16x32xbf16>
    %cst_13 = arith.constant dense<0.000000e+00> : vector<128x32xf32>
    %18 = tpu.matmul %15, %17, %cst_13 {dimension_numbers = #tpu.dot_dimension_numbers<[1], [0], [0], [1], [0, 0, 1, 1], [], []>} : vector<128x16xbf16>, vector<16x32xbf16>, vector<128x32xf32> -> vector<128x32xf32>
    %19 = vector.extract_strided_slice %13 {offsets = [128, 0], sizes = [128, 16], strides = [1, 1]} : vector<1152x16xf32> to vector<128x16xf32>
    %20 = arith.truncf %19 : vector<128x16xf32> to vector<128x16xbf16>
    %c1 = arith.constant 1 : index
    %c0_14 = arith.constant 0 : index
    %c0_15 = arith.constant 0 : index
    %21 = vector.load %arg3[%c1, %c0_14, %c0_15] : memref<9x16x32xbf16, #tpu.memory_space<vmem>>, vector<1x16x32xbf16>
    %22 = vector.shape_cast %21 : vector<1x16x32xbf16> to vector<16x32xbf16>
    %cst_16 = arith.constant dense<0.000000e+00> : vector<128x32xf32>
    %23 = tpu.matmul %20, %22, %cst_16 {dimension_numbers = #tpu.dot_dimension_numbers<[1], [0], [0], [1], [0, 0, 1, 1], [], []>} : vector<128x16xbf16>, vector<16x32xbf16>, vector<128x32xf32> -> vector<128x32xf32>
    %24 = arith.addf %18, %23 : vector<128x32xf32>
    %25 = vector.extract_strided_slice %13 {offsets = [256, 0], sizes = [128, 16], strides = [1, 1]} : vector<1152x16xf32> to vector<128x16xf32>
    %26 = arith.truncf %25 : vector<128x16xf32> to vector<128x16xbf16>
    %c2 = arith.constant 2 : index
    %c0_17 = arith.constant 0 : index
    %c0_18 = arith.constant 0 : index
    %27 = vector.load %arg3[%c2, %c0_17, %c0_18] : memref<9x16x32xbf16, #tpu.memory_space<vmem>>, vector<1x16x32xbf16>
    %28 = vector.shape_cast %27 : vector<1x16x32xbf16> to vector<16x32xbf16>
    %cst_19 = arith.constant dense<0.000000e+00> : vector<128x32xf32>
    %29 = tpu.matmul %26, %28, %cst_19 {dimension_numbers = #tpu.dot_dimension_numbers<[1], [0], [0], [1], [0, 0, 1, 1], [], []>} : vector<128x16xbf16>, vector<16x32xbf16>, vector<128x32xf32> -> vector<128x32xf32>
    %30 = arith.addf %24, %29 : vector<128x32xf32>
    %31 = vector.extract_strided_slice %13 {offsets = [384, 0], sizes = [128, 16], strides = [1, 1]} : vector<1152x16xf32> to vector<128x16xf32>
    %32 = arith.truncf %31 : vector<128x16xf32> to vector<128x16xbf16>
    %c3 = arith.constant 3 : index
    %c0_20 = arith.constant 0 : index
    %c0_21 = arith.constant 0 : index
    %33 = vector.load %arg3[%c3, %c0_20, %c0_21] : memref<9x16x32xbf16, #tpu.memory_space<vmem>>, vector<1x16x32xbf16>
    %34 = vector.shape_cast %33 : vector<1x16x32xbf16> to vector<16x32xbf16>
    %cst_22 = arith.constant dense<0.000000e+00> : vector<128x32xf32>
    %35 = tpu.matmul %32, %34, %cst_22 {dimension_numbers = #tpu.dot_dimension_numbers<[1], [0], [0], [1], [0, 0, 1, 1], [], []>} : vector<128x16xbf16>, vector<16x32xbf16>, vector<128x32xf32> -> vector<128x32xf32>
    %36 = arith.addf %30, %35 : vector<128x32xf32>
    %37 = vector.extract_strided_slice %13 {offsets = [512, 0], sizes = [128, 16], strides = [1, 1]} : vector<1152x16xf32> to vector<128x16xf32>
    %38 = arith.truncf %37 : vector<128x16xf32> to vector<128x16xbf16>
    %c4 = arith.constant 4 : index
    %c0_23 = arith.constant 0 : index
    %c0_24 = arith.constant 0 : index
    %39 = vector.load %arg3[%c4, %c0_23, %c0_24] : memref<9x16x32xbf16, #tpu.memory_space<vmem>>, vector<1x16x32xbf16>
    %40 = vector.shape_cast %39 : vector<1x16x32xbf16> to vector<16x32xbf16>
    %cst_25 = arith.constant dense<0.000000e+00> : vector<128x32xf32>
    %41 = tpu.matmul %38, %40, %cst_25 {dimension_numbers = #tpu.dot_dimension_numbers<[1], [0], [0], [1], [0, 0, 1, 1], [], []>} : vector<128x16xbf16>, vector<16x32xbf16>, vector<128x32xf32> -> vector<128x32xf32>
    %42 = arith.addf %36, %41 : vector<128x32xf32>
    %43 = vector.extract_strided_slice %13 {offsets = [640, 0], sizes = [128, 16], strides = [1, 1]} : vector<1152x16xf32> to vector<128x16xf32>
    %44 = arith.truncf %43 : vector<128x16xf32> to vector<128x16xbf16>
    %c5 = arith.constant 5 : index
    %c0_26 = arith.constant 0 : index
    %c0_27 = arith.constant 0 : index
    %45 = vector.load %arg3[%c5, %c0_26, %c0_27] : memref<9x16x32xbf16, #tpu.memory_space<vmem>>, vector<1x16x32xbf16>
    %46 = vector.shape_cast %45 : vector<1x16x32xbf16> to vector<16x32xbf16>
    %cst_28 = arith.constant dense<0.000000e+00> : vector<128x32xf32>
    %47 = tpu.matmul %44, %46, %cst_28 {dimension_numbers = #tpu.dot_dimension_numbers<[1], [0], [0], [1], [0, 0, 1, 1], [], []>} : vector<128x16xbf16>, vector<16x32xbf16>, vector<128x32xf32> -> vector<128x32xf32>
    %48 = arith.addf %42, %47 : vector<128x32xf32>
    %49 = vector.extract_strided_slice %13 {offsets = [768, 0], sizes = [128, 16], strides = [1, 1]} : vector<1152x16xf32> to vector<128x16xf32>
    %50 = arith.truncf %49 : vector<128x16xf32> to vector<128x16xbf16>
    %c6 = arith.constant 6 : index
    %c0_29 = arith.constant 0 : index
    %c0_30 = arith.constant 0 : index
    %51 = vector.load %arg3[%c6, %c0_29, %c0_30] : memref<9x16x32xbf16, #tpu.memory_space<vmem>>, vector<1x16x32xbf16>
    %52 = vector.shape_cast %51 : vector<1x16x32xbf16> to vector<16x32xbf16>
    %cst_31 = arith.constant dense<0.000000e+00> : vector<128x32xf32>
    %53 = tpu.matmul %50, %52, %cst_31 {dimension_numbers = #tpu.dot_dimension_numbers<[1], [0], [0], [1], [0, 0, 1, 1], [], []>} : vector<128x16xbf16>, vector<16x32xbf16>, vector<128x32xf32> -> vector<128x32xf32>
    %54 = arith.addf %48, %53 : vector<128x32xf32>
    %55 = vector.extract_strided_slice %13 {offsets = [896, 0], sizes = [128, 16], strides = [1, 1]} : vector<1152x16xf32> to vector<128x16xf32>
    %56 = arith.truncf %55 : vector<128x16xf32> to vector<128x16xbf16>
    %c7 = arith.constant 7 : index
    %c0_32 = arith.constant 0 : index
    %c0_33 = arith.constant 0 : index
    %57 = vector.load %arg3[%c7, %c0_32, %c0_33] : memref<9x16x32xbf16, #tpu.memory_space<vmem>>, vector<1x16x32xbf16>
    %58 = vector.shape_cast %57 : vector<1x16x32xbf16> to vector<16x32xbf16>
    %cst_34 = arith.constant dense<0.000000e+00> : vector<128x32xf32>
    %59 = tpu.matmul %56, %58, %cst_34 {dimension_numbers = #tpu.dot_dimension_numbers<[1], [0], [0], [1], [0, 0, 1, 1], [], []>} : vector<128x16xbf16>, vector<16x32xbf16>, vector<128x32xf32> -> vector<128x32xf32>
    %60 = arith.addf %54, %59 : vector<128x32xf32>
    %61 = vector.extract_strided_slice %13 {offsets = [1024, 0], sizes = [128, 16], strides = [1, 1]} : vector<1152x16xf32> to vector<128x16xf32>
    %62 = arith.truncf %61 : vector<128x16xf32> to vector<128x16xbf16>
    %c8 = arith.constant 8 : index
    %c0_35 = arith.constant 0 : index
    %c0_36 = arith.constant 0 : index
    %63 = vector.load %arg3[%c8, %c0_35, %c0_36] : memref<9x16x32xbf16, #tpu.memory_space<vmem>>, vector<1x16x32xbf16>
    %64 = vector.shape_cast %63 : vector<1x16x32xbf16> to vector<16x32xbf16>
    %cst_37 = arith.constant dense<0.000000e+00> : vector<128x32xf32>
    %65 = tpu.matmul %62, %64, %cst_37 {dimension_numbers = #tpu.dot_dimension_numbers<[1], [0], [0], [1], [0, 0, 1, 1], [], []>} : vector<128x16xbf16>, vector<16x32xbf16>, vector<128x32xf32> -> vector<128x32xf32>
    %66 = arith.addf %60, %65 : vector<128x32xf32>
    %c1_38 = arith.constant 1 : index
    %c0_39 = arith.constant 0 : index
    %67 = vector.load %arg9[%c1_38, %c0_39] : memref<16x128xf32, #tpu.memory_space<vmem>>, vector<1x32xf32>
    %68 = vector.broadcast %67 : vector<1x32xf32> to vector<128x32xf32>
    %69 = arith.addf %66, %68 : vector<128x32xf32>
    %cst_40 = arith.constant 0.000000e+00 : f32
    %70 = vector.broadcast %cst_40 : f32 to vector<128x32xf32>
    %71 = arith.cmpf ogt, %69, %70 : vector<128x32xf32>
    %cst_41 = arith.constant 2.000000e-01 : f32
    %72 = vector.broadcast %cst_41 : f32 to vector<128x32xf32>
    %73 = arith.mulf %72, %69 : vector<128x32xf32>
    %74 = arith.select %71, %69, %73 : vector<128x32xi1>, vector<128x32xf32>
    %cst_42 = arith.constant dense<0.000000e+00> : vector<32xf32>
    %75 = vector.multi_reduction <add>, %74, %cst_42 [0] : vector<128x32xf32> to vector<32xf32>
    %76 = vector.shape_cast %75 : vector<32xf32> to vector<1x32xf32>
    %77 = arith.mulf %74, %74 : vector<128x32xf32>
    %cst_43 = arith.constant dense<0.000000e+00> : vector<32xf32>
    %78 = vector.multi_reduction <add>, %77, %cst_43 [0] : vector<128x32xf32> to vector<32xf32>
    %79 = vector.shape_cast %78 : vector<32xf32> to vector<1x32xf32>
    %cst_44 = arith.constant 7.812500e-03 : f32
    %80 = vector.broadcast %cst_44 : f32 to vector<1x32xf32>
    %81 = arith.mulf %76, %80 : vector<1x32xf32>
    %cst_45 = arith.constant 7.812500e-03 : f32
    %82 = vector.broadcast %cst_45 : f32 to vector<1x32xf32>
    %83 = arith.mulf %79, %82 : vector<1x32xf32>
    %84 = arith.mulf %81, %81 : vector<1x32xf32>
    %85 = arith.subf %83, %84 : vector<1x32xf32>
    %c2_46 = arith.constant 2 : index
    %c0_47 = arith.constant 0 : index
    %86 = vector.load %arg9[%c2_46, %c0_47] : memref<16x128xf32, #tpu.memory_space<vmem>>, vector<1x32xf32>
    %cst_48 = arith.constant 8.000000e-01 : f32
    %87 = vector.broadcast %cst_48 : f32 to vector<1x32xf32>
    %88 = arith.addf %85, %87 : vector<1x32xf32>
    %89 = math.rsqrt %88 : vector<1x32xf32>
    %90 = arith.mulf %86, %89 : vector<1x32xf32>
    %c3_49 = arith.constant 3 : index
    %c0_50 = arith.constant 0 : index
    %91 = vector.load %arg9[%c3_49, %c0_50] : memref<16x128xf32, #tpu.memory_space<vmem>>, vector<1x32xf32>
    %92 = arith.mulf %81, %90 : vector<1x32xf32>
    %93 = arith.subf %91, %92 : vector<1x32xf32>
    %94 = vector.broadcast %90 : vector<1x32xf32> to vector<128x32xf32>
    %95 = arith.mulf %74, %94 : vector<128x32xf32>
    %96 = vector.broadcast %93 : vector<1x32xf32> to vector<128x32xf32>
    %97 = arith.addf %95, %96 : vector<128x32xf32>
    %98 = arith.truncf %97 : vector<128x32xf32> to vector<128x32xbf16>
    %c0_51 = arith.constant 0 : index
    %c0_52 = arith.constant 0 : index
    %99 = vector.load %arg4[%c0_51, %c0_52] : memref<288x128xbf16, #tpu.memory_space<vmem>>, vector<288x128xbf16>
    %cst_53 = arith.constant dense<0.000000e+00> : vector<288x32xf32>
    %100 = tpu.matmul %99, %98, %cst_53 {dimension_numbers = #tpu.dot_dimension_numbers<[1], [0], [0], [1], [0, 0, 1, 1], [], []>} : vector<288x128xbf16>, vector<128x32xbf16>, vector<288x32xf32> -> vector<288x32xf32>
    %101 = vector.extract_strided_slice %100 {offsets = [0, 0], sizes = [32, 32], strides = [1, 1]} : vector<288x32xf32> to vector<32x32xf32>
    %102 = arith.truncf %101 : vector<32x32xf32> to vector<32x32xbf16>
    %c0_54 = arith.constant 0 : index
    %c0_55 = arith.constant 0 : index
    %c0_56 = arith.constant 0 : index
    %103 = vector.load %arg5[%c0_54, %c0_55, %c0_56] : memref<9x32x64xbf16, #tpu.memory_space<vmem>>, vector<1x32x64xbf16>
    %104 = vector.shape_cast %103 : vector<1x32x64xbf16> to vector<32x64xbf16>
    %cst_57 = arith.constant dense<0.000000e+00> : vector<32x64xf32>
    %105 = tpu.matmul %102, %104, %cst_57 {dimension_numbers = #tpu.dot_dimension_numbers<[1], [0], [0], [1], [0, 0, 1, 1], [], []>} : vector<32x32xbf16>, vector<32x64xbf16>, vector<32x64xf32> -> vector<32x64xf32>
    %106 = vector.extract_strided_slice %100 {offsets = [32, 0], sizes = [32, 32], strides = [1, 1]} : vector<288x32xf32> to vector<32x32xf32>
    %107 = arith.truncf %106 : vector<32x32xf32> to vector<32x32xbf16>
    %c1_58 = arith.constant 1 : index
    %c0_59 = arith.constant 0 : index
    %c0_60 = arith.constant 0 : index
    %108 = vector.load %arg5[%c1_58, %c0_59, %c0_60] : memref<9x32x64xbf16, #tpu.memory_space<vmem>>, vector<1x32x64xbf16>
    %109 = vector.shape_cast %108 : vector<1x32x64xbf16> to vector<32x64xbf16>
    %cst_61 = arith.constant dense<0.000000e+00> : vector<32x64xf32>
    %110 = tpu.matmul %107, %109, %cst_61 {dimension_numbers = #tpu.dot_dimension_numbers<[1], [0], [0], [1], [0, 0, 1, 1], [], []>} : vector<32x32xbf16>, vector<32x64xbf16>, vector<32x64xf32> -> vector<32x64xf32>
    %111 = arith.addf %105, %110 : vector<32x64xf32>
    %112 = vector.extract_strided_slice %100 {offsets = [64, 0], sizes = [32, 32], strides = [1, 1]} : vector<288x32xf32> to vector<32x32xf32>
    %113 = arith.truncf %112 : vector<32x32xf32> to vector<32x32xbf16>
    %c2_62 = arith.constant 2 : index
    %c0_63 = arith.constant 0 : index
    %c0_64 = arith.constant 0 : index
    %114 = vector.load %arg5[%c2_62, %c0_63, %c0_64] : memref<9x32x64xbf16, #tpu.memory_space<vmem>>, vector<1x32x64xbf16>
    %115 = vector.shape_cast %114 : vector<1x32x64xbf16> to vector<32x64xbf16>
    %cst_65 = arith.constant dense<0.000000e+00> : vector<32x64xf32>
    %116 = tpu.matmul %113, %115, %cst_65 {dimension_numbers = #tpu.dot_dimension_numbers<[1], [0], [0], [1], [0, 0, 1, 1], [], []>} : vector<32x32xbf16>, vector<32x64xbf16>, vector<32x64xf32> -> vector<32x64xf32>
    %117 = arith.addf %111, %116 : vector<32x64xf32>
    %118 = vector.extract_strided_slice %100 {offsets = [96, 0], sizes = [32, 32], strides = [1, 1]} : vector<288x32xf32> to vector<32x32xf32>
    %119 = arith.truncf %118 : vector<32x32xf32> to vector<32x32xbf16>
    %c3_66 = arith.constant 3 : index
    %c0_67 = arith.constant 0 : index
    %c0_68 = arith.constant 0 : index
    %120 = vector.load %arg5[%c3_66, %c0_67, %c0_68] : memref<9x32x64xbf16, #tpu.memory_space<vmem>>, vector<1x32x64xbf16>
    %121 = vector.shape_cast %120 : vector<1x32x64xbf16> to vector<32x64xbf16>
    %cst_69 = arith.constant dense<0.000000e+00> : vector<32x64xf32>
    %122 = tpu.matmul %119, %121, %cst_69 {dimension_numbers = #tpu.dot_dimension_numbers<[1], [0], [0], [1], [0, 0, 1, 1], [], []>} : vector<32x32xbf16>, vector<32x64xbf16>, vector<32x64xf32> -> vector<32x64xf32>
    %123 = arith.addf %117, %122 : vector<32x64xf32>
    %124 = vector.extract_strided_slice %100 {offsets = [128, 0], sizes = [32, 32], strides = [1, 1]} : vector<288x32xf32> to vector<32x32xf32>
    %125 = arith.truncf %124 : vector<32x32xf32> to vector<32x32xbf16>
    %c4_70 = arith.constant 4 : index
    %c0_71 = arith.constant 0 : index
    %c0_72 = arith.constant 0 : index
    %126 = vector.load %arg5[%c4_70, %c0_71, %c0_72] : memref<9x32x64xbf16, #tpu.memory_space<vmem>>, vector<1x32x64xbf16>
    %127 = vector.shape_cast %126 : vector<1x32x64xbf16> to vector<32x64xbf16>
    %cst_73 = arith.constant dense<0.000000e+00> : vector<32x64xf32>
    %128 = tpu.matmul %125, %127, %cst_73 {dimension_numbers = #tpu.dot_dimension_numbers<[1], [0], [0], [1], [0, 0, 1, 1], [], []>} : vector<32x32xbf16>, vector<32x64xbf16>, vector<32x64xf32> -> vector<32x64xf32>
    %129 = arith.addf %123, %128 : vector<32x64xf32>
    %130 = vector.extract_strided_slice %100 {offsets = [160, 0], sizes = [32, 32], strides = [1, 1]} : vector<288x32xf32> to vector<32x32xf32>
    %131 = arith.truncf %130 : vector<32x32xf32> to vector<32x32xbf16>
    %c5_74 = arith.constant 5 : index
    %c0_75 = arith.constant 0 : index
    %c0_76 = arith.constant 0 : index
    %132 = vector.load %arg5[%c5_74, %c0_75, %c0_76] : memref<9x32x64xbf16, #tpu.memory_space<vmem>>, vector<1x32x64xbf16>
    %133 = vector.shape_cast %132 : vector<1x32x64xbf16> to vector<32x64xbf16>
    %cst_77 = arith.constant dense<0.000000e+00> : vector<32x64xf32>
    %134 = tpu.matmul %131, %133, %cst_77 {dimension_numbers = #tpu.dot_dimension_numbers<[1], [0], [0], [1], [0, 0, 1, 1], [], []>} : vector<32x32xbf16>, vector<32x64xbf16>, vector<32x64xf32> -> vector<32x64xf32>
    %135 = arith.addf %129, %134 : vector<32x64xf32>
    %136 = vector.extract_strided_slice %100 {offsets = [192, 0], sizes = [32, 32], strides = [1, 1]} : vector<288x32xf32> to vector<32x32xf32>
    %137 = arith.truncf %136 : vector<32x32xf32> to vector<32x32xbf16>
    %c6_78 = arith.constant 6 : index
    %c0_79 = arith.constant 0 : index
    %c0_80 = arith.constant 0 : index
    %138 = vector.load %arg5[%c6_78, %c0_79, %c0_80] : memref<9x32x64xbf16, #tpu.memory_space<vmem>>, vector<1x32x64xbf16>
    %139 = vector.shape_cast %138 : vector<1x32x64xbf16> to vector<32x64xbf16>
    %cst_81 = arith.constant dense<0.000000e+00> : vector<32x64xf32>
    %140 = tpu.matmul %137, %139, %cst_81 {dimension_numbers = #tpu.dot_dimension_numbers<[1], [0], [0], [1], [0, 0, 1, 1], [], []>} : vector<32x32xbf16>, vector<32x64xbf16>, vector<32x64xf32> -> vector<32x64xf32>
    %141 = arith.addf %135, %140 : vector<32x64xf32>
    %142 = vector.extract_strided_slice %100 {offsets = [224, 0], sizes = [32, 32], strides = [1, 1]} : vector<288x32xf32> to vector<32x32xf32>
    %143 = arith.truncf %142 : vector<32x32xf32> to vector<32x32xbf16>
    %c7_82 = arith.constant 7 : index
    %c0_83 = arith.constant 0 : index
    %c0_84 = arith.constant 0 : index
    %144 = vector.load %arg5[%c7_82, %c0_83, %c0_84] : memref<9x32x64xbf16, #tpu.memory_space<vmem>>, vector<1x32x64xbf16>
    %145 = vector.shape_cast %144 : vector<1x32x64xbf16> to vector<32x64xbf16>
    %cst_85 = arith.constant dense<0.000000e+00> : vector<32x64xf32>
    %146 = tpu.matmul %143, %145, %cst_85 {dimension_numbers = #tpu.dot_dimension_numbers<[1], [0], [0], [1], [0, 0, 1, 1], [], []>} : vector<32x32xbf16>, vector<32x64xbf16>, vector<32x64xf32> -> vector<32x64xf32>
    %147 = arith.addf %141, %146 : vector<32x64xf32>
    %148 = vector.extract_strided_slice %100 {offsets = [256, 0], sizes = [32, 32], strides = [1, 1]} : vector<288x32xf32> to vector<32x32xf32>
    %149 = arith.truncf %148 : vector<32x32xf32> to vector<32x32xbf16>
    %c8_86 = arith.constant 8 : index
    %c0_87 = arith.constant 0 : index
    %c0_88 = arith.constant 0 : index
    %150 = vector.load %arg5[%c8_86, %c0_87, %c0_88] : memref<9x32x64xbf16, #tpu.memory_space<vmem>>, vector<1x32x64xbf16>
    %151 = vector.shape_cast %150 : vector<1x32x64xbf16> to vector<32x64xbf16>
    %cst_89 = arith.constant dense<0.000000e+00> : vector<32x64xf32>
    %152 = tpu.matmul %149, %151, %cst_89 {dimension_numbers = #tpu.dot_dimension_numbers<[1], [0], [0], [1], [0, 0, 1, 1], [], []>} : vector<32x32xbf16>, vector<32x64xbf16>, vector<32x64xf32> -> vector<32x64xf32>
    %153 = arith.addf %147, %152 : vector<32x64xf32>
    %c4_90 = arith.constant 4 : index
    %c0_91 = arith.constant 0 : index
    %154 = vector.load %arg9[%c4_90, %c0_91] : memref<16x128xf32, #tpu.memory_space<vmem>>, vector<1x64xf32>
    %155 = vector.broadcast %154 : vector<1x64xf32> to vector<32x64xf32>
    %156 = arith.addf %153, %155 : vector<32x64xf32>
    %cst_92 = arith.constant 0.000000e+00 : f32
    %157 = vector.broadcast %cst_92 : f32 to vector<32x64xf32>
    %158 = arith.cmpf ogt, %156, %157 : vector<32x64xf32>
    %cst_93 = arith.constant 2.000000e-01 : f32
    %159 = vector.broadcast %cst_93 : f32 to vector<32x64xf32>
    %160 = arith.mulf %159, %156 : vector<32x64xf32>
    %161 = arith.select %158, %156, %160 : vector<32x64xi1>, vector<32x64xf32>
    %cst_94 = arith.constant dense<0.000000e+00> : vector<64xf32>
    %162 = vector.multi_reduction <add>, %161, %cst_94 [0] : vector<32x64xf32> to vector<64xf32>
    %163 = vector.shape_cast %162 : vector<64xf32> to vector<1x64xf32>
    %164 = arith.mulf %161, %161 : vector<32x64xf32>
    %cst_95 = arith.constant dense<0.000000e+00> : vector<64xf32>
    %165 = vector.multi_reduction <add>, %164, %cst_95 [0] : vector<32x64xf32> to vector<64xf32>
    %166 = vector.shape_cast %165 : vector<64xf32> to vector<1x64xf32>
    %cst_96 = arith.constant 3.125000e-02 : f32
    %167 = vector.broadcast %cst_96 : f32 to vector<1x64xf32>
    %168 = arith.mulf %163, %167 : vector<1x64xf32>
    %cst_97 = arith.constant 3.125000e-02 : f32
    %169 = vector.broadcast %cst_97 : f32 to vector<1x64xf32>
    %170 = arith.mulf %166, %169 : vector<1x64xf32>
    %171 = arith.mulf %168, %168 : vector<1x64xf32>
    %172 = arith.subf %170, %171 : vector<1x64xf32>
    %c5_98 = arith.constant 5 : index
    %c0_99 = arith.constant 0 : index
    %173 = vector.load %arg9[%c5_98, %c0_99] : memref<16x128xf32, #tpu.memory_space<vmem>>, vector<1x64xf32>
    %cst_100 = arith.constant 8.000000e-01 : f32
    %174 = vector.broadcast %cst_100 : f32 to vector<1x64xf32>
    %175 = arith.addf %172, %174 : vector<1x64xf32>
    %176 = math.rsqrt %175 : vector<1x64xf32>
    %177 = arith.mulf %173, %176 : vector<1x64xf32>
    %c6_101 = arith.constant 6 : index
    %c0_102 = arith.constant 0 : index
    %178 = vector.load %arg9[%c6_101, %c0_102] : memref<16x128xf32, #tpu.memory_space<vmem>>, vector<1x64xf32>
    %179 = arith.mulf %168, %177 : vector<1x64xf32>
    %180 = arith.subf %178, %179 : vector<1x64xf32>
    %181 = vector.broadcast %177 : vector<1x64xf32> to vector<32x64xf32>
    %182 = arith.mulf %161, %181 : vector<32x64xf32>
    %183 = vector.broadcast %180 : vector<1x64xf32> to vector<32x64xf32>
    %184 = arith.addf %182, %183 : vector<32x64xf32>
    %185 = arith.truncf %184 : vector<32x64xf32> to vector<32x64xbf16>
    %c0_103 = arith.constant 0 : index
    %c0_104 = arith.constant 0 : index
    %186 = vector.load %arg6[%c0_103, %c0_104] : memref<72x32xbf16, #tpu.memory_space<vmem>>, vector<72x32xbf16>
    %cst_105 = arith.constant dense<0.000000e+00> : vector<72x64xf32>
    %187 = tpu.matmul %186, %185, %cst_105 {dimension_numbers = #tpu.dot_dimension_numbers<[1], [0], [0], [1], [0, 0, 1, 1], [], []>} : vector<72x32xbf16>, vector<32x64xbf16>, vector<72x64xf32> -> vector<72x64xf32>
    %188 = vector.extract_strided_slice %187 {offsets = [0, 0], sizes = [8, 64], strides = [1, 1]} : vector<72x64xf32> to vector<8x64xf32>
    %189 = arith.truncf %188 : vector<8x64xf32> to vector<8x64xbf16>
    %c0_106 = arith.constant 0 : index
    %c0_107 = arith.constant 0 : index
    %c0_108 = arith.constant 0 : index
    %190 = vector.load %arg7[%c0_106, %c0_107, %c0_108] : memref<9x64x128xbf16, #tpu.memory_space<vmem>>, vector<1x64x128xbf16>
    %191 = vector.shape_cast %190 : vector<1x64x128xbf16> to vector<64x128xbf16>
    %cst_109 = arith.constant dense<0.000000e+00> : vector<8x128xf32>
    %192 = tpu.matmul %189, %191, %cst_109 {dimension_numbers = #tpu.dot_dimension_numbers<[1], [0], [0], [1], [0, 0, 1, 1], [], []>} : vector<8x64xbf16>, vector<64x128xbf16>, vector<8x128xf32> -> vector<8x128xf32>
    %193 = vector.extract_strided_slice %187 {offsets = [8, 0], sizes = [8, 64], strides = [1, 1]} : vector<72x64xf32> to vector<8x64xf32>
    %194 = arith.truncf %193 : vector<8x64xf32> to vector<8x64xbf16>
    %c1_110 = arith.constant 1 : index
    %c0_111 = arith.constant 0 : index
    %c0_112 = arith.constant 0 : index
    %195 = vector.load %arg7[%c1_110, %c0_111, %c0_112] : memref<9x64x128xbf16, #tpu.memory_space<vmem>>, vector<1x64x128xbf16>
    %196 = vector.shape_cast %195 : vector<1x64x128xbf16> to vector<64x128xbf16>
    %cst_113 = arith.constant dense<0.000000e+00> : vector<8x128xf32>
    %197 = tpu.matmul %194, %196, %cst_113 {dimension_numbers = #tpu.dot_dimension_numbers<[1], [0], [0], [1], [0, 0, 1, 1], [], []>} : vector<8x64xbf16>, vector<64x128xbf16>, vector<8x128xf32> -> vector<8x128xf32>
    %198 = arith.addf %192, %197 : vector<8x128xf32>
    %199 = vector.extract_strided_slice %187 {offsets = [16, 0], sizes = [8, 64], strides = [1, 1]} : vector<72x64xf32> to vector<8x64xf32>
    %200 = arith.truncf %199 : vector<8x64xf32> to vector<8x64xbf16>
    %c2_114 = arith.constant 2 : index
    %c0_115 = arith.constant 0 : index
    %c0_116 = arith.constant 0 : index
    %201 = vector.load %arg7[%c2_114, %c0_115, %c0_116] : memref<9x64x128xbf16, #tpu.memory_space<vmem>>, vector<1x64x128xbf16>
    %202 = vector.shape_cast %201 : vector<1x64x128xbf16> to vector<64x128xbf16>
    %cst_117 = arith.constant dense<0.000000e+00> : vector<8x128xf32>
    %203 = tpu.matmul %200, %202, %cst_117 {dimension_numbers = #tpu.dot_dimension_numbers<[1], [0], [0], [1], [0, 0, 1, 1], [], []>} : vector<8x64xbf16>, vector<64x128xbf16>, vector<8x128xf32> -> vector<8x128xf32>
    %204 = arith.addf %198, %203 : vector<8x128xf32>
    %205 = vector.extract_strided_slice %187 {offsets = [24, 0], sizes = [8, 64], strides = [1, 1]} : vector<72x64xf32> to vector<8x64xf32>
    %206 = arith.truncf %205 : vector<8x64xf32> to vector<8x64xbf16>
    %c3_118 = arith.constant 3 : index
    %c0_119 = arith.constant 0 : index
    %c0_120 = arith.constant 0 : index
    %207 = vector.load %arg7[%c3_118, %c0_119, %c0_120] : memref<9x64x128xbf16, #tpu.memory_space<vmem>>, vector<1x64x128xbf16>
    %208 = vector.shape_cast %207 : vector<1x64x128xbf16> to vector<64x128xbf16>
    %cst_121 = arith.constant dense<0.000000e+00> : vector<8x128xf32>
    %209 = tpu.matmul %206, %208, %cst_121 {dimension_numbers = #tpu.dot_dimension_numbers<[1], [0], [0], [1], [0, 0, 1, 1], [], []>} : vector<8x64xbf16>, vector<64x128xbf16>, vector<8x128xf32> -> vector<8x128xf32>
    %210 = arith.addf %204, %209 : vector<8x128xf32>
    %211 = vector.extract_strided_slice %187 {offsets = [32, 0], sizes = [8, 64], strides = [1, 1]} : vector<72x64xf32> to vector<8x64xf32>
    %212 = arith.truncf %211 : vector<8x64xf32> to vector<8x64xbf16>
    %c4_122 = arith.constant 4 : index
    %c0_123 = arith.constant 0 : index
    %c0_124 = arith.constant 0 : index
    %213 = vector.load %arg7[%c4_122, %c0_123, %c0_124] : memref<9x64x128xbf16, #tpu.memory_space<vmem>>, vector<1x64x128xbf16>
    %214 = vector.shape_cast %213 : vector<1x64x128xbf16> to vector<64x128xbf16>
    %cst_125 = arith.constant dense<0.000000e+00> : vector<8x128xf32>
    %215 = tpu.matmul %212, %214, %cst_125 {dimension_numbers = #tpu.dot_dimension_numbers<[1], [0], [0], [1], [0, 0, 1, 1], [], []>} : vector<8x64xbf16>, vector<64x128xbf16>, vector<8x128xf32> -> vector<8x128xf32>
    %216 = arith.addf %210, %215 : vector<8x128xf32>
    %217 = vector.extract_strided_slice %187 {offsets = [40, 0], sizes = [8, 64], strides = [1, 1]} : vector<72x64xf32> to vector<8x64xf32>
    %218 = arith.truncf %217 : vector<8x64xf32> to vector<8x64xbf16>
    %c5_126 = arith.constant 5 : index
    %c0_127 = arith.constant 0 : index
    %c0_128 = arith.constant 0 : index
    %219 = vector.load %arg7[%c5_126, %c0_127, %c0_128] : memref<9x64x128xbf16, #tpu.memory_space<vmem>>, vector<1x64x128xbf16>
    %220 = vector.shape_cast %219 : vector<1x64x128xbf16> to vector<64x128xbf16>
    %cst_129 = arith.constant dense<0.000000e+00> : vector<8x128xf32>
    %221 = tpu.matmul %218, %220, %cst_129 {dimension_numbers = #tpu.dot_dimension_numbers<[1], [0], [0], [1], [0, 0, 1, 1], [], []>} : vector<8x64xbf16>, vector<64x128xbf16>, vector<8x128xf32> -> vector<8x128xf32>
    %222 = arith.addf %216, %221 : vector<8x128xf32>
    %223 = vector.extract_strided_slice %187 {offsets = [48, 0], sizes = [8, 64], strides = [1, 1]} : vector<72x64xf32> to vector<8x64xf32>
    %224 = arith.truncf %223 : vector<8x64xf32> to vector<8x64xbf16>
    %c6_130 = arith.constant 6 : index
    %c0_131 = arith.constant 0 : index
    %c0_132 = arith.constant 0 : index
    %225 = vector.load %arg7[%c6_130, %c0_131, %c0_132] : memref<9x64x128xbf16, #tpu.memory_space<vmem>>, vector<1x64x128xbf16>
    %226 = vector.shape_cast %225 : vector<1x64x128xbf16> to vector<64x128xbf16>
    %cst_133 = arith.constant dense<0.000000e+00> : vector<8x128xf32>
    %227 = tpu.matmul %224, %226, %cst_133 {dimension_numbers = #tpu.dot_dimension_numbers<[1], [0], [0], [1], [0, 0, 1, 1], [], []>} : vector<8x64xbf16>, vector<64x128xbf16>, vector<8x128xf32> -> vector<8x128xf32>
    %228 = arith.addf %222, %227 : vector<8x128xf32>
    %229 = vector.extract_strided_slice %187 {offsets = [56, 0], sizes = [8, 64], strides = [1, 1]} : vector<72x64xf32> to vector<8x64xf32>
    %230 = arith.truncf %229 : vector<8x64xf32> to vector<8x64xbf16>
    %c7_134 = arith.constant 7 : index
    %c0_135 = arith.constant 0 : index
    %c0_136 = arith.constant 0 : index
    %231 = vector.load %arg7[%c7_134, %c0_135, %c0_136] : memref<9x64x128xbf16, #tpu.memory_space<vmem>>, vector<1x64x128xbf16>
    %232 = vector.shape_cast %231 : vector<1x64x128xbf16> to vector<64x128xbf16>
    %cst_137 = arith.constant dense<0.000000e+00> : vector<8x128xf32>
    %233 = tpu.matmul %230, %232, %cst_137 {dimension_numbers = #tpu.dot_dimension_numbers<[1], [0], [0], [1], [0, 0, 1, 1], [], []>} : vector<8x64xbf16>, vector<64x128xbf16>, vector<8x128xf32> -> vector<8x128xf32>
    %234 = arith.addf %228, %233 : vector<8x128xf32>
    %235 = vector.extract_strided_slice %187 {offsets = [64, 0], sizes = [8, 64], strides = [1, 1]} : vector<72x64xf32> to vector<8x64xf32>
    %236 = arith.truncf %235 : vector<8x64xf32> to vector<8x64xbf16>
    %c8_138 = arith.constant 8 : index
    %c0_139 = arith.constant 0 : index
    %c0_140 = arith.constant 0 : index
    %237 = vector.load %arg7[%c8_138, %c0_139, %c0_140] : memref<9x64x128xbf16, #tpu.memory_space<vmem>>, vector<1x64x128xbf16>
    %238 = vector.shape_cast %237 : vector<1x64x128xbf16> to vector<64x128xbf16>
    %cst_141 = arith.constant dense<0.000000e+00> : vector<8x128xf32>
    %239 = tpu.matmul %236, %238, %cst_141 {dimension_numbers = #tpu.dot_dimension_numbers<[1], [0], [0], [1], [0, 0, 1, 1], [], []>} : vector<8x64xbf16>, vector<64x128xbf16>, vector<8x128xf32> -> vector<8x128xf32>
    %240 = arith.addf %234, %239 : vector<8x128xf32>
    %c7_142 = arith.constant 7 : index
    %c0_143 = arith.constant 0 : index
    %241 = vector.load %arg9[%c7_142, %c0_143] : memref<16x128xf32, #tpu.memory_space<vmem>>, vector<1x128xf32>
    %242 = vector.broadcast %241 : vector<1x128xf32> to vector<8x128xf32>
    %243 = arith.addf %240, %242 : vector<8x128xf32>
    %cst_144 = arith.constant 0.000000e+00 : f32
    %244 = vector.broadcast %cst_144 : f32 to vector<8x128xf32>
    %245 = arith.cmpf ogt, %243, %244 : vector<8x128xf32>
    %cst_145 = arith.constant 2.000000e-01 : f32
    %246 = vector.broadcast %cst_145 : f32 to vector<8x128xf32>
    %247 = arith.mulf %246, %243 : vector<8x128xf32>
    %248 = arith.select %245, %243, %247 : vector<8x128xi1>, vector<8x128xf32>
    %cst_146 = arith.constant dense<0.000000e+00> : vector<128xf32>
    %249 = vector.multi_reduction <add>, %248, %cst_146 [0] : vector<8x128xf32> to vector<128xf32>
    %250 = vector.shape_cast %249 : vector<128xf32> to vector<1x128xf32>
    %251 = arith.mulf %248, %248 : vector<8x128xf32>
    %cst_147 = arith.constant dense<0.000000e+00> : vector<128xf32>
    %252 = vector.multi_reduction <add>, %251, %cst_147 [0] : vector<8x128xf32> to vector<128xf32>
    %253 = vector.shape_cast %252 : vector<128xf32> to vector<1x128xf32>
    %cst_148 = arith.constant 1.250000e-01 : f32
    %254 = vector.broadcast %cst_148 : f32 to vector<1x128xf32>
    %255 = arith.mulf %250, %254 : vector<1x128xf32>
    %cst_149 = arith.constant 1.250000e-01 : f32
    %256 = vector.broadcast %cst_149 : f32 to vector<1x128xf32>
    %257 = arith.mulf %253, %256 : vector<1x128xf32>
    %258 = arith.mulf %255, %255 : vector<1x128xf32>
    %259 = arith.subf %257, %258 : vector<1x128xf32>
    %c8_150 = arith.constant 8 : index
    %c0_151 = arith.constant 0 : index
    %260 = vector.load %arg9[%c8_150, %c0_151] : memref<16x128xf32, #tpu.memory_space<vmem>>, vector<1x128xf32>
    %cst_152 = arith.constant 8.000000e-01 : f32
    %261 = vector.broadcast %cst_152 : f32 to vector<1x128xf32>
    %262 = arith.addf %259, %261 : vector<1x128xf32>
    %263 = math.rsqrt %262 : vector<1x128xf32>
    %264 = arith.mulf %260, %263 : vector<1x128xf32>
    %c9 = arith.constant 9 : index
    %c0_153 = arith.constant 0 : index
    %265 = vector.load %arg9[%c9, %c0_153] : memref<16x128xf32, #tpu.memory_space<vmem>>, vector<1x128xf32>
    %266 = arith.mulf %255, %264 : vector<1x128xf32>
    %267 = arith.subf %265, %266 : vector<1x128xf32>
    %268 = vector.broadcast %264 : vector<1x128xf32> to vector<8x128xf32>
    %269 = arith.mulf %248, %268 : vector<8x128xf32>
    %270 = vector.broadcast %267 : vector<1x128xf32> to vector<8x128xf32>
    %271 = arith.addf %269, %270 : vector<8x128xf32>
    %272 = arith.truncf %271 : vector<8x128xf32> to vector<8x128xbf16>
    %273 = vector.extract_strided_slice %272 {offsets = [0, 0], sizes = [2, 128], strides = [1, 1]} : vector<8x128xbf16> to vector<2x128xbf16>
    %c0_154 = arith.constant 0 : index
    %c0_155 = arith.constant 0 : index
    %c0_156 = arith.constant 0 : index
    %274 = vector.load %arg8[%c0_154, %c0_155, %c0_156] : memref<4x128x128xbf16, #tpu.memory_space<vmem>>, vector<1x128x128xbf16>
    %275 = vector.shape_cast %274 : vector<1x128x128xbf16> to vector<128x128xbf16>
    %cst_157 = arith.constant dense<0.000000e+00> : vector<2x128xf32>
    %276 = tpu.matmul %273, %275, %cst_157 {dimension_numbers = #tpu.dot_dimension_numbers<[1], [0], [0], [1], [0, 0, 1, 1], [], []>} : vector<2x128xbf16>, vector<128x128xbf16>, vector<2x128xf32> -> vector<2x128xf32>
    %277 = vector.extract_strided_slice %272 {offsets = [2, 0], sizes = [2, 128], strides = [1, 1]} : vector<8x128xbf16> to vector<2x128xbf16>
    %c1_158 = arith.constant 1 : index
    %c0_159 = arith.constant 0 : index
    %c0_160 = arith.constant 0 : index
    %278 = vector.load %arg8[%c1_158, %c0_159, %c0_160] : memref<4x128x128xbf16, #tpu.memory_space<vmem>>, vector<1x128x128xbf16>
    %279 = vector.shape_cast %278 : vector<1x128x128xbf16> to vector<128x128xbf16>
    %cst_161 = arith.constant dense<0.000000e+00> : vector<2x128xf32>
    %280 = tpu.matmul %277, %279, %cst_161 {dimension_numbers = #tpu.dot_dimension_numbers<[1], [0], [0], [1], [0, 0, 1, 1], [], []>} : vector<2x128xbf16>, vector<128x128xbf16>, vector<2x128xf32> -> vector<2x128xf32>
    %281 = arith.addf %276, %280 : vector<2x128xf32>
    %282 = vector.extract_strided_slice %272 {offsets = [4, 0], sizes = [2, 128], strides = [1, 1]} : vector<8x128xbf16> to vector<2x128xbf16>
    %c2_162 = arith.constant 2 : index
    %c0_163 = arith.constant 0 : index
    %c0_164 = arith.constant 0 : index
    %283 = vector.load %arg8[%c2_162, %c0_163, %c0_164] : memref<4x128x128xbf16, #tpu.memory_space<vmem>>, vector<1x128x128xbf16>
    %284 = vector.shape_cast %283 : vector<1x128x128xbf16> to vector<128x128xbf16>
    %cst_165 = arith.constant dense<0.000000e+00> : vector<2x128xf32>
    %285 = tpu.matmul %282, %284, %cst_165 {dimension_numbers = #tpu.dot_dimension_numbers<[1], [0], [0], [1], [0, 0, 1, 1], [], []>} : vector<2x128xbf16>, vector<128x128xbf16>, vector<2x128xf32> -> vector<2x128xf32>
    %286 = arith.addf %281, %285 : vector<2x128xf32>
    %287 = vector.extract_strided_slice %272 {offsets = [6, 0], sizes = [2, 128], strides = [1, 1]} : vector<8x128xbf16> to vector<2x128xbf16>
    %c3_166 = arith.constant 3 : index
    %c0_167 = arith.constant 0 : index
    %c0_168 = arith.constant 0 : index
    %288 = vector.load %arg8[%c3_166, %c0_167, %c0_168] : memref<4x128x128xbf16, #tpu.memory_space<vmem>>, vector<1x128x128xbf16>
    %289 = vector.shape_cast %288 : vector<1x128x128xbf16> to vector<128x128xbf16>
    %cst_169 = arith.constant dense<0.000000e+00> : vector<2x128xf32>
    %290 = tpu.matmul %287, %289, %cst_169 {dimension_numbers = #tpu.dot_dimension_numbers<[1], [0], [0], [1], [0, 0, 1, 1], [], []>} : vector<2x128xbf16>, vector<128x128xbf16>, vector<2x128xf32> -> vector<2x128xf32>
    %291 = arith.addf %286, %290 : vector<2x128xf32>
    %c10 = arith.constant 10 : index
    %c0_170 = arith.constant 0 : index
    %292 = vector.load %arg9[%c10, %c0_170] : memref<16x128xf32, #tpu.memory_space<vmem>>, vector<1x128xf32>
    %293 = vector.broadcast %292 : vector<1x128xf32> to vector<2x128xf32>
    %294 = arith.addf %291, %293 : vector<2x128xf32>
    %295 = tpu.iota {dimensions = array<i32: 1>} : vector<2x128xi32>
    %c10_i32 = arith.constant 10 : i32
    %296 = vector.broadcast %c10_i32 : i32 to vector<2x128xi32>
    %297 = arith.cmpi slt, %295, %296 : vector<2x128xi32>
    %cst_171 = arith.constant -1.000000e+30 : f32
    %298 = vector.broadcast %cst_171 : f32 to vector<2x128xf32>
    %299 = arith.select %297, %294, %298 : vector<2x128xi1>, vector<2x128xf32>
    %cst_172 = arith.constant dense<0xFF800000> : vector<2xf32>
    %300 = vector.multi_reduction <maximumf>, %299, %cst_172 [1] : vector<2x128xf32> to vector<2xf32>
    %301 = vector.shape_cast %300 : vector<2xf32> to vector<2x1xf32>
    %302 = vector.broadcast %301 : vector<2x1xf32> to vector<2x128xf32>
    %303 = arith.subf %299, %302 : vector<2x128xf32>
    %304 = math.exp %303 : vector<2x128xf32>
    %cst_173 = arith.constant dense<0.000000e+00> : vector<2xf32>
    %305 = vector.multi_reduction <add>, %304, %cst_173 [1] : vector<2x128xf32> to vector<2xf32>
    %306 = vector.shape_cast %305 : vector<2xf32> to vector<2x1xf32>
    %307 = tpu.reciprocal %306 {approx = true} : vector<2x1xf32> -> vector<2x1xf32>
    %308 = vector.broadcast %307 : vector<2x1xf32> to vector<2x128xf32>
    %309 = arith.mulf %304, %308 : vector<2x128xf32>
    %310 = arith.select %297, %309, %294 : vector<2x128xi1>, vector<2x128xf32>
    %c0_174 = arith.constant 0 : index
    %c0_175 = arith.constant 0 : index
    %311 = vector.load %arg10[%c0_174, %c0_175] : memref<2x128xf32, #tpu.memory_space<vmem>>, vector<2x128xf32>
    tpu.vector_store %arg10[%c0_174, %c0_175], %310 {strides = array<i32>} : memref<2x128xf32, #tpu.memory_space<vmem>>, vector<2x128xf32>,
    return
  }
}

</mosaic_0001>

<bundles_post_ra>
// kernel: encoder_forward_pallas.1
= control target key start
LH: loop header
LB: loop body
LE: loop exit
PB: predicated region body
PF: predicated region fallthrough
CT: control target
= control target key end

     0   :  { %15 = vsyncpa [#allocation3], 0  ;;  %s12087_s0 = inlined_call_operand.vmem [shape: bf16[512,16], index: 0, kind: input, shape index: {}]   ;;  %s12088_s1 = inlined_call_operand.hbm [shape: bf16[16,16], index: 1, kind: input, shape index: {}]   ;;  %s12089_s2 = inlined_call_operand.hbm [shape: bf16[1152,512], index: 2, kind: input, shape index: {}]   ;;  %s12090_s3 = inlined_call_operand.hbm [shape: bf16[9,16,32], index: 3, kind: input, shape index: {}]   ;;  %s12091_s4 = inlined_call_operand.hbm [shape: bf16[288,128], index: 4, kind: input, shape index: {}]   ;;  %s12092_s5 = inlined_call_operand.hbm [shape: bf16[9,32,64], index: 5, kind: input, shape index: {}]   ;;  %s12093_s6 = inlined_call_operand.vmem [shape: bf16[72,32], index: 6, kind: input, shape index: {}]   ;;  %s12094_s7 = inlined_call_operand.hbm [shape: bf16[9,64,128], index: 7, kind: input, shape index: {}]   ;;  %s12095_s8 = inlined_call_operand.hbm [shape: bf16[4,128,128], index: 8, kind: input, shape index: {}]   ;;  %s12096_s9 = inlined_call_operand.hbm [shape: f32[16,128], index: 9, kind: input, shape index: {}]   ;;  %s12097_s10 = inlined_call_operand.vmem [shape: f32[2,128], index: 10, kind: output, shape index: {}]  }
   0x1   :  { %16 = vsyncpa [#allocation5], 0 }
   0x2   :  { %17 = vsyncpa [#allocation8], 0 }
   0x3   :  { %18 = vsyncpa [#allocation11], 0 }
   0x4   :  { %19 = vsyncpa [#allocation14], 0  ;;  %s10116_s13 = smov [#allocation4]  }
   0x5   :  { %s39_s14 = sshll.u32 %s10116_s13, 4  ;;  %s40_s14 = int_to_ptr.vmem [resolvable:$true] %s39_s14 }
   0x6   :  { %s9954_s15 = scalar_lea.vmem %s40_s14, 36864  ;;  %p9959_p1 = scmp.lt.s32.totalorder %s40_s14, %s40_s14 }
   0x7   :  { %p9955_p0 = scmp.ne.s32.totalorder %s40_s14, %s9954_s15  ;;  %p9960_p2 = scmp.lt.s32.totalorder %s9954_s15, %s9954_s15 }
   0x9   :  { %p9961_p3 = por %p9960_p2, %p9959_p1 }
   0xb   :  { %p9962_p4 = pnand %p9961_p3, %p9955_p0 }
   0xd   :  { %9965 = shalt.err (!%p9962_p4)
}
   0xe   :  { %s10117_s16 = smov 256   ;;  %s10118_s17 = smov 16  }
   0xf   :  { %45 = dma.hbm_to_vmem [thread:$0]  %s12089_s2, 36864, %s40_s14, [#allocation5], %s10117_s16, %s10117_s16, %s10118_s17  }
  0x10   :  { %s10119_s20 = smov [#allocation7]   ;;  %s10120_s22 = smov [#allocation10]  }
  0x11   :  { %s63_s21 = sshll.u32 %s10119_s20, 4  ;;  %s89_s23 = sshll.u32 %s10120_s22, 4  ;;  %s64_s21 = int_to_ptr.vmem [resolvable:$true] %s63_s21  ;;  %s90_s23 = int_to_ptr.vmem [resolvable:$true] %s89_s23 }
  0x12   :  { %s9974_s24 = scalar_lea.vmem %s64_s21, 2304  ;;  %p9979_p6 = scmp.lt.s32.totalorder %s64_s21, %s64_s21 }
  0x13   :  { %p9975_p5 = scmp.ne.s32.totalorder %s64_s21, %s9974_s24  ;;  %p9980_p7 = scmp.lt.s32.totalorder %s9974_s24, %s9974_s24 }
  0x15   :  { %p9981_p8 = por %p9980_p7, %p9979_p6 }
  0x17   :  { %p9982_p9 = pnand %p9981_p8, %p9975_p5 }
  0x19   :  { %9985 = shalt.err (!%p9982_p9)
}
  0x1a   :  { %s10121_s25 = smov 64   ;;  %s10122_s26 = smov 4  }
  0x1b   :  { %69 = dma.hbm_to_vmem [thread:$0]  %s12091_s4, 2304, %s64_s21, [#allocation8], %s10121_s25, %s10121_s25, %s10122_s26  }
  0x1c   :  { %s9994_s2 = scalar_lea.vmem %s90_s23, 4608  ;;  %p9999_p11 = scmp.lt.s32.totalorder %s90_s23, %s90_s23 }
  0x1d   :  { %p9995_p10 = scmp.ne.s32.totalorder %s90_s23, %s9994_s2  ;;  %p10000_p12 = scmp.lt.s32.totalorder %s9994_s2, %s9994_s2 }
  0x1f   :  { %p10001_p13 = por %p10000_p12, %p9999_p11 }
  0x21   :  { %p10002_p0 = pnand %p10001_p13, %p9995_p10 }
  0x23   :  { %10005 = shalt.err (!%p10002_p0)
}
  0x24   :  { %95 = dma.hbm_to_vmem [thread:$0]  %s12094_s7, 4608, %s90_s23, [#allocation11], %s10121_s25, %s10121_s25, %s10122_s26  }
  0x25   :  { %s10123_s11 = smov [#allocation2]   ;;  %s10124_s13 = smov [#allocation6]  }
  0x26   :  { %s27_s12 = sshll.u32 %s10123_s11, 4  ;;  %s51_s4 = sshll.u32 %s10124_s13, 4  ;;  %s28_s12 = int_to_ptr.vmem [resolvable:$true] %s27_s12  ;;  %s52_s4 = int_to_ptr.vmem [resolvable:$true] %s51_s4 }
  0x27   :  { %s10014_s14 = scalar_lea.vmem %s28_s12, 128  ;;  %p10019_p2 = scmp.lt.s32.totalorder %s28_s12, %s28_s12 }
  0x28   :  { %p10015_p1 = scmp.ne.s32.totalorder %s28_s12, %s10014_s14  ;;  %p10020_p3 = scmp.lt.s32.totalorder %s10014_s14, %s10014_s14 }
  0x2a   :  { %p10021_p4 = por %p10020_p3, %p10019_p2 }
  0x2c   :  { %p10022_p5 = pnand %p10021_p4, %p10015_p1 }
  0x2e   :  { %10025 = shalt.err (!%p10022_p5)
}
  0x2f   :  { %33 = dma.hbm_to_vmem [thread:$0]  %s12088_s1, 128, %s28_s12, [#allocation3], %s10121_s25, %s10121_s25, %s10122_s26  }
  0x30   :  { %s10034_s7 = scalar_lea.vmem %s52_s4, 1152  ;;  %p10039_p7 = scmp.lt.s32.totalorder %s52_s4, %s52_s4 }
  0x31   :  { %p10035_p6 = scmp.ne.s32.totalorder %s52_s4, %s10034_s7  ;;  %p10040_p8 = scmp.lt.s32.totalorder %s10034_s7, %s10034_s7 }
  0x33   :  { %p10041_p9 = por %p10040_p8, %p10039_p7 }
  0x35   :  { %p10042_p10 = pnand %p10041_p9, %p10035_p6 }
  0x37   :  { %10045 = shalt.err (!%p10042_p10)
}
  0x38   :  { %57 = dma.hbm_to_vmem [thread:$0]  %s12090_s3, 1152, %s52_s4, [#allocation5], %s10121_s25, %s10121_s25, %s10122_s26  }
  0x39   :  { %s10125_s19 = smov [#allocation9]   ;;  %s10126_s21 = smov [#allocation12]  }
  0x3a   :  { %s75_s20 = sshll.u32 %s10125_s19, 4  ;;  %s101_s1 = sshll.u32 %s10126_s21, 4  ;;  %s76_s20 = int_to_ptr.vmem [resolvable:$true] %s75_s20  ;;  %s102_s1 = int_to_ptr.vmem [resolvable:$true] %s101_s1 }
  0x3b   :  { %s10054_s22 = scalar_lea.vmem %s76_s20, 2304  ;;  %p10059_p12 = scmp.lt.s32.totalorder %s76_s20, %s76_s20 }
  0x3c   :  { %p10055_p11 = scmp.ne.s32.totalorder %s76_s20, %s10054_s22  ;;  %p10060_p13 = scmp.lt.s32.totalorder %s10054_s22, %s10054_s22 }
  0x3e   :  { %p10061_p0 = por %p10060_p13, %p10059_p12 }
  0x40   :  { %p10062_p1 = pnand %p10061_p0, %p10055_p11 }
  0x42   :  { %10065 = shalt.err (!%p10062_p1)
}
  0x43   :  { %81 = dma.hbm_to_vmem [thread:$0]  %s12092_s5, 2304, %s76_s20, [#allocation8], %s10121_s25, %s10121_s25, %s10122_s26  }
  0x44   :  { %s10074_s3 = scalar_lea.vmem %s102_s1, 4096  ;;  %p10079_p3 = scmp.lt.s32.totalorder %s102_s1, %s102_s1 }
  0x45   :  { %p10075_p2 = scmp.ne.s32.totalorder %s102_s1, %s10074_s3  ;;  %p10080_p4 = scmp.lt.s32.totalorder %s10074_s3, %s10074_s3 }
  0x47   :  { %p10081_p5 = por %p10080_p4, %p10079_p3 }
  0x49   :  { %p10082_p6 = pnand %p10081_p5, %p10075_p2 }
  0x4b   :  { %10085 = shalt.err (!%p10082_p6)
}
  0x4c   :  { %107 = dma.hbm_to_vmem [thread:$0]  %s12095_s8, 4096, %s102_s1, [#allocation11], %s10121_s25, %s10121_s25, %s10122_s26  }
  0x4d   :  { %s10127_s2 = smov [#allocation13]  }
  0x4e   :  { %s113_s29 = sshll.u32 %s10127_s2, 4  ;;  %s114_s29 = int_to_ptr.vmem [resolvable:$true] %s113_s29 }
  0x4f   :  { %s10094_s30 = scalar_lea.vmem %s114_s29, 256  ;;  %p10099_p8 = scmp.lt.s32.totalorder %s114_s29, %s114_s29 }
  0x50   :  { %p10095_p7 = scmp.ne.s32.totalorder %s114_s29, %s10094_s30  ;;  %p10100_p9 = scmp.lt.s32.totalorder %s10094_s30, %s10094_s30 }
  0x52   :  { %p10101_p10 = por %p10100_p9, %p10099_p8 }
  0x54   :  { %p10102_p11 = pnand %p10101_p10, %p10095_p7 }
  0x56   :  { %10105 = shalt.err (!%p10102_p11)
}
  0x57   :  { %s10128_s5 = smov 128   ;;  %s10129_s11 = smov 8  }
  0x58   :  { %119 = dma.hbm_to_vmem [thread:$0]  %s12096_s9, 256, %s114_s29, [#allocation14], %s10128_s5, %s10128_s5, %s10129_s11  }
  0x59   :  { %10106 = dma.done.wait [#allocation3], 128  }
  0x5a   :  { %10107 = vsyncadd [#allocation3], 4294967168 }
  0x5b   :  { %10108 = dma.done.wait [#allocation5], 38016  }
  0x5c   :  { %10109 = vsyncadd [#allocation5], 4294929280 }
  0x5d   :  { %10110 = dma.done.wait [#allocation8], 4608  }
  0x5e   :  { %10111 = vsyncadd [#allocation8], 4294962688 }
  0x5f   :  { %10112 = dma.done.wait [#allocation11], 8704  }
  0x60   :  { %10113 = vsyncadd [#allocation11], 4294958592 }
  0x61   :  { %10114 = dma.done.wait [#allocation14], 256  }
  0x62   :  { %10115 = vsyncadd [#allocation14], 4294967040  ;;  %v9353_v0 = vld [vmem:[#allocation2] sm:$0xff]   ;;  %vm382_vm0 = vcmask 130048   ;;  %v9355_v2 = vld [vmem:[%s12087_s0 + $0x8] sm:$0xff]   ;;  %v10130_v30 = vmov 0  }
  0x63   :  { %v9354_v1 = vld [vmem:[%s12087_s0] sm:$0xff]   ;;  %8772 = vmatprep.subr.bf16.mxu0 %v9353_v0  ;;  %v9356_v3 = vld [vmem:[%s12087_s0 + $0x10] sm:$0xff]   ;;  %v9357_v4 = vld [vmem:[%s12087_s0 + $0x18] sm:$0xff]   ;;  %2720 = vmatprep.subr.bf16.mxu1 %v10130_v30 }
  0x64   :  { %8773 = vmatpush3.bf16.msra.mxu0 %v9353_v0  ;;  %8774 = vmatprep.mubr.msk.bf16.mxu0 %vm382_vm0, %v9354_v1  ;;  %v9358_v5 = vld [vmem:[%s12087_s0 + $0x20] sm:$0xff]   ;;  %v9359_v6 = vld [vmem:[%s12087_s0 + $0x28] sm:$0xff]   ;;  %v9360_v7 = vld [vmem:[%s12087_s0 + $0x30] sm:$0xff]  }
  0x65   :  { %v9361_v8 = vld [vmem:[%s12087_s0 + $0x38] sm:$0xff]   ;;  %v9362_v9 = vld [vmem:[%s12087_s0 + $0x40] sm:$0xff]   ;;  %v9363_v10 = vld [vmem:[%s12087_s0 + $0x48] sm:$0xff]   ;;  %3329 = vmatprep.subr.bf16.mxu0 %v10130_v30 }
  0x66   :  { %v9364_v11 = vld [vmem:[%s12087_s0 + $0x50] sm:$0xff]   ;;  %v9365_v12 = vld [vmem:[%s12087_s0 + $0x58] sm:$0xff]   ;;  %v9366_v13 = vld [vmem:[%s12087_s0 + $0x60] sm:$0xff]  }
  0x67   :  { %8775 = vmatmul.mubr.msk.bf16.vlgmr.msra.gmra.mxu0 %vm382_vm0, %v9355_v2  ;;  %v9367_v14 = vld [vmem:[%s12087_s0 + $0x68] sm:$0xff]   ;;  %v9368_v15 = vld [vmem:[%s12087_s0 + $0x70] sm:$0xff]   ;;  %v9369_v16 = vld [vmem:[%s12087_s0 + $0x78] sm:$0xff]  }
  0x68   :  { %8778 = vmatprep.mubr.msk.bf16.mxu0 %vm382_vm0, %v9356_v3  ;;  %v9370_v17 = vld [vmem:[%s12087_s0 + $0x80] sm:$0xff]   ;;  %v9371_v18 = vld [vmem:[%s12087_s0 + $0x88] sm:$0xff]   ;;  %v9372_v19 = vld [vmem:[%s12087_s0 + $0x90] sm:$0xff]  }
  0x69   :  { %v9373_v20 = vld [vmem:[%s12087_s0 + $0x98] sm:$0xff]   ;;  %v9374_v21 = vld [vmem:[%s12087_s0 + $0xa0] sm:$0xff]   ;;  %v9375_v22 = vld [vmem:[%s12087_s0 + $0xa8] sm:$0xff]  }
  0x6a   :  { %v9376_v23 = vld [vmem:[%s12087_s0 + $0xb0] sm:$0xff]   ;;  %v9377_v24 = vld [vmem:[%s12087_s0 + $0xb8] sm:$0xff]   ;;  %v9378_v25 = vld [vmem:[%s12087_s0 + $0xc0] sm:$0xff]  }
  0x6b   :  { %v9379_v26 = vld [vmem:[%s12087_s0 + $0xc8] sm:$0xff]   ;;  %v9380_v27 = vld [vmem:[%s12087_s0 + $0xd0] sm:$0xff]   ;;  %v9381_v28 = vld [vmem:[%s12087_s0 + $0xd8] sm:$0xff]  }
  0x6c   :  { %v9382_v29 = vld [vmem:[%s12087_s0 + $0xe0] sm:$0xff]   ;;  %v9383_v31 = vld [vmem:[%s12087_s0 + $0xe8] sm:$0xff]   ;;  %v9384_v32 = vld [vmem:[%s12087_s0 + $0xf0] sm:$0xff]  }
  0x6d   :  { %v9385_v33 = vld [vmem:[%s12087_s0 + $0xf8] sm:$0xff]   ;;  %v10370_v47 = vld [vmem:[#allocation13] ss:$0 sm:$0xff]  ;;  %v9414_v62 = vld [vmem:[#allocation4 + $0xc] ss:$16 sps:$4 sm:$0xff]  }
  0x6e   :  { %v9388_v34 = vld [vmem:[#allocation4 + $0x4] ss:$16 sps:$4 sm:$0xff]  }
  0x6f   :  { %8779 = vmatmul.mubr.msk.bf16.gmra.mxu0 %vm382_vm0, %v9357_v4  ;;  %2752 = vmatprep.mubr.bf16.mxu1 %v9388_v34 }
  0x70   :  { %8782 = vmatprep.mubr.msk.bf16.mxu0 %vm382_vm0, %v9358_v5 }
  0x77   :  { %8783 = vmatmul.mubr.msk.bf16.gmra.mxu0 %vm382_vm0, %v9359_v6 }
  0x78   :  { %8786 = vmatprep.mubr.msk.bf16.mxu0 %vm382_vm0, %v9360_v7 }
  0x7f   :  { %8787 = vmatmul.mubr.msk.bf16.gmra.mxu0 %vm382_vm0, %v9361_v8 }
  0x80   :  { %8790 = vmatprep.mubr.msk.bf16.mxu0 %vm382_vm0, %v9362_v9 }
  0x87   :  { %8791 = vmatmul.mubr.msk.bf16.gmra.mxu0 %vm382_vm0, %v9363_v10 }
  0x88   :  { %8794 = vmatprep.mubr.msk.bf16.mxu0 %vm382_vm0, %v9364_v11 }
  0x8f   :  { %8795 = vmatmul.mubr.msk.bf16.gmra.mxu0 %vm382_vm0, %v9365_v12 }
  0x90   :  { %8798 = vmatprep.mubr.msk.bf16.mxu0 %vm382_vm0, %v9366_v13 }
  0x97   :  { %8799 = vmatmul.mubr.msk.bf16.gmra.mxu0 %vm382_vm0, %v9367_v14 }
  0x98   :  { %8802 = vmatprep.mubr.msk.bf16.mxu0 %vm382_vm0, %v9368_v15 }
  0x9f   :  { %8803 = vmatmul.mubr.msk.bf16.gmra.mxu0 %vm382_vm0, %v9369_v16 }
  0xa0   :  { %8806 = vmatprep.mubr.msk.bf16.mxu0 %vm382_vm0, %v9370_v17 }
  0xa7   :  { %8807 = vmatmul.mubr.msk.bf16.gmra.mxu0 %vm382_vm0, %v9371_v18 }
  0xa8   :  { %8810 = vmatprep.mubr.msk.bf16.mxu0 %vm382_vm0, %v9372_v19 }
  0xaf   :  { %8811 = vmatmul.mubr.msk.bf16.gmra.mxu0 %vm382_vm0, %v9373_v20 }
  0xb0   :  { %8814 = vmatprep.mubr.msk.bf16.mxu0 %vm382_vm0, %v9374_v21 }
  0xb7   :  { %8815 = vmatmul.mubr.msk.bf16.gmra.mxu0 %vm382_vm0, %v9375_v22 }
  0xb8   :  { %8818 = vmatprep.mubr.msk.bf16.mxu0 %vm382_vm0, %v9376_v23 }
  0xbf   :  { %8819 = vmatmul.mubr.msk.bf16.gmra.mxu0 %vm382_vm0, %v9377_v24 }
  0xc0   :  { %8822 = vmatprep.mubr.msk.bf16.mxu0 %vm382_vm0, %v9378_v25 }
  0xc7   :  { %8823 = vmatmul.mubr.msk.bf16.gmra.mxu0 %vm382_vm0, %v9379_v26 }
  0xc8   :  { %8826 = vmatprep.mubr.msk.bf16.mxu0 %vm382_vm0, %v9380_v27 }
  0xcf   :  { %8827 = vmatmul.mubr.msk.bf16.gmra.mxu0 %vm382_vm0, %v9381_v28 }
  0xd0   :  { %8830 = vmatprep.mubr.msk.bf16.mxu0 %vm382_vm0, %v9382_v29 }
  0xd7   :  { %8831 = vmatmul.mubr.msk.bf16.gmra.mxu0 %vm382_vm0, %v9383_v31 }
  0xd8   :  { %8834 = vmatprep.mubr.msk.bf16.mxu0 %vm382_vm0, %v9384_v32 }
  0xdf   :  { %8835 = vmatmul.mubr.msk.bf16.gmra.mxu0 %vm382_vm0, %v9385_v33 }
  0xe0   :  { %3361 = vmatprep.mubr.bf16.mxu0 %v9414_v62 }
 0x127   :  { %v10360_v35 = vpop.f32.mrf.mxu0 }
 0x129   :  { %v10362_v36 = vpop.f32.mrf.mxu0 }
 0x12b   :  { %v10364_v37 = vpop.f32.mrf.mxu0 }
 0x12c   :  { %v525_v32 = vadd.f32 %v10364_v37, %v10370_v47 }
 0x12d   :  { %v10366_v38 = vpop.f32.mrf.mxu0 }
 0x12e   :  { %vm771_vm13 = vcmp.gt.f32.partialorder %v525_v32, 0.0 }
 0x12f   :  { %v8780_v39 = vpop.f32.mrf.mxu0 }
 0x130   :  { %v538_v17 = vadd.f32 %v8780_v39, %v10370_v47 }
 0x131   :  { %v10368_v40 = vpop.f32.mrf.mxu0 }
 0x132   :  { %v838_v26 = vmul.f32 0.2, %v538_v17  ;;  %v530_v27 = vadd.f32 %v10370_v47, %v10368_v40  ;;  %vm774_vm10 = vcmp.gt.f32.partialorder %v538_v17, 0.0 }
 0x133   :  { %v8781_v41 = vpop.f32.mrf.mxu0 }
 0x134   :  { %v541_v13 = vadd.f32 %v8781_v41, %v10370_v47  ;;  %v522_v41 = vadd.f32 %v10360_v35, %v10370_v47  ;;  %v902_v40 = vsel %vm774_vm10, %v538_v17, %v838_v26  ;;  %vm772_vm12 = vcmp.gt.f32.partialorder %v530_v27, 0.0 }
 0x135   :  { %v532_v42 = vpop.f32.mrf.mxu0 }
 0x136   :  { %v839_v22 = vmul.f32 0.2, %v541_v13  ;;  %v533_v23 = vadd.f32 %v10370_v47, %v532_v42  ;;  %vm775_vm9 = vcmp.gt.f32.partialorder %v541_v13, 0.0  ;;  %v836_v42 = vmul.f32 0.2, %v530_v27 }
 0x137   :  { %v8784_v43 = vpop.f32.mrf.mxu0  ;;  %vm770_vm14 = vcmp.gt.f32.partialorder %v522_v41, 0.0 }
 0x138   :  { %v554_v59 = vadd.f32 %v8784_v43, %v10370_v47  ;;  %v837_v33 = vmul.f32 0.2, %v533_v23  ;;  %v903_v34 = vsel %vm775_vm9, %v541_v13, %v839_v22  ;;  %vm773_vm11 = vcmp.gt.f32.partialorder %v533_v23, 0.0 }
 0x139   :  { %v545_v44 = vpop.f32.mrf.mxu0  ;;  %v900_v35 = vsel %vm772_vm12, %v530_v27, %v836_v42 }
 0x13a   :  { %v842_v8 = vmul.f32 0.2, %v554_v59  ;;  %v546_v9 = vadd.f32 %v10370_v47, %v545_v44  ;;  %vm778_vm6 = vcmp.gt.f32.partialorder %v554_v59, 0.0  ;;  %v963_v44 = vpack.c.bf16 %v903_v34, %v902_v40 }
 0x13b   :  { %v8785_v45 = vpop.f32.mrf.mxu0  ;;  %v901_v37 = vsel %vm773_vm11, %v533_v23, %v837_v33 }
 0x13c   :  { %v557_v56 = vadd.f32 %v8785_v45, %v10370_v47  ;;  %v840_v18 = vmul.f32 0.2, %v546_v9  ;;  %v906_v19 = vsel %vm778_vm6, %v554_v59, %v842_v8  ;;  %vm776_vm8 = vcmp.gt.f32.partialorder %v546_v9, 0.0 }
 0x13d   :  { %v548_v46 = vpop.f32.mrf.mxu0  ;;  %v835_v45 = vmul.f32 0.2, %v525_v32 }
 0x13e   :  { %v843_v4 = vmul.f32 0.2, %v557_v56  ;;  %v549_v5 = vadd.f32 %v10370_v47, %v548_v46  ;;  %vm779_vm5 = vcmp.gt.f32.partialorder %v557_v56, 0.0  ;;  %v904_v28 = vsel %vm776_vm8, %v546_v9, %v840_v18 }
 0x13f   :  { %v8788_v48 = vpop.f32.mrf.mxu0  ;;  %v517_v46 = vadd.f32 %v10370_v47, %v10366_v38 }
 0x140   :  { %v570_v49 = vadd.f32 %v8788_v48, %v10370_v47  ;;  %v841_v14 = vmul.f32 0.2, %v549_v5  ;;  %v907_v15 = vsel %vm779_vm5, %v557_v56, %v843_v4  ;;  %vm777_vm7 = vcmp.gt.f32.partialorder %v549_v5, 0.0 }
 0x141   :  { %v561_v50 = vpop.f32.mrf.mxu0  ;;  %v965_v21 = vpack.c.bf16 %v907_v15, %v906_v19  ;;  %vm769_vm15 = vcmp.gt.f32.partialorder %v517_v46, 0.0 }
 0x142   :  { %v562_v51 = vadd.f32 %v10370_v47, %v561_v50  ;;  %v846_v53 = vmul.f32 0.2, %v570_v49  ;;  %vm782_vm1 = vcmp.gt.f32.partialorder %v570_v49, 0.0  ;;  %v905_v24 = vsel %vm777_vm7, %v549_v5, %v841_v14 }
 0x143   :  { %v8789_v52 = vpop.f32.mrf.mxu0  ;;  %v964_v31 = vpack.c.bf16 %v905_v24, %v904_v28  ;;  %v514_v50 = vadd.f32 %v10370_v47, %v10362_v36 }
 0x144   :  { %v573_v54 = vadd.f32 %v8789_v52, %v10370_v47  ;;  %v844_v60 = vmul.f32 0.2, %v562_v51  ;;  %v910_v0 = vsel %vm782_vm1, %v570_v49, %v846_v53  ;;  %vm780_vm4 = vcmp.gt.f32.partialorder %v562_v51, 0.0 }
 0x145   :  { %v564_v55 = vpop.f32.mrf.mxu0  ;;  %v834_v49 = vmul.f32 0.2, %v522_v41  ;;  %v962_v52 = vpack.c.bf16 %v901_v37, %v900_v35  ;;  %v833_v53 = vmul.f32 0.2, %v517_v46  ;;  %v832_v38 = vmul.f32 0.2, %v514_v50 }
 0x146   :  { %v847_v57 = vmul.f32 0.2, %v573_v54  ;;  %v565_v58 = vadd.f32 %v10370_v47, %v564_v55  ;;  %vm783_vm2 = vcmp.gt.f32.partialorder %v573_v54, 0.0  ;;  %v908_v10 = vsel %vm780_vm4, %v562_v51, %v844_v60 }
 0x147   :  { %v10378_v61 = vpop.f32.mrf.mxu0  ;;  %vm768_vm1 = vcmp.gt.f32.partialorder %v514_v50, 0.0  ;;  %v897_v59 = vsel %vm769_vm15, %v517_v46, %v833_v53 }
 0x148   :  { %vm781_vm3 = vcmp.gt.f32.partialorder %v565_v58, 0.0  ;;  %v845_v63 = vmul.f32 0.2, %v565_v58  ;;  %v911_v1 = vsel %vm783_vm2, %v573_v54, %v847_v57  ;;  %v899_v54 = vsel %vm771_vm13, %v525_v32, %v835_v45 }
 0x149   :  { %v10380_v2 = vpop.f32.mrf.mxu0  ;;  %v967_v3 = vpack.c.bf16 %v911_v1, %v910_v0  ;;  %v898_v57 = vsel %vm770_vm14, %v522_v41, %v834_v49  ;;  %v896_v1 = vsel %vm768_vm1, %v514_v50, %v832_v38 }
 0x14a   :  { %v909_v6 = vsel %vm781_vm3, %v565_v58, %v845_v63  ;;  %v961_v36 = vpack.c.bf16 %v899_v54, %v898_v57  ;;  %v960_v4 = vpack.c.bf16 %v897_v59, %v896_v1  ;;  %v586_v54 = vadd.f32 %v10378_v61, %v10370_v47 }
 0x14b   :  { %v10383_v7 = vpop.f32.mrf.mxu0  ;;  %2721 = vmatpush1.bf16.msra.mxu1 %v967_v3  ;;  %v966_v12 = vpack.c.bf16 %v909_v6, %v908_v10  ;;  %v578_v61 = vadd.f32 %v10370_v47, %v10380_v2 }
 0x14c   :  { %2722 = vmatprep.subr.bf16.mxu1 %v10130_v30  ;;  %v850_v59 = vmul.f32 0.2, %v586_v54  ;;  %vm786_vm15 = vcmp.gt.f32.partialorder %v586_v54, 0.0 }
 0x14d   :  { %v10387_v11 = vpop.f32.mrf.mxu0 }
 0x14f   :  { %v10390_v16 = vpop.f32.mrf.mxu0  ;;  %2723 = vmatpush1.bf16.msra.mxu1 %v966_v12 }
 0x150   :  { %2724 = vmatprep.subr.bf16.mxu1 %v10130_v30  ;;  %v602_v41 = vadd.f32 %v10390_v16, %v10370_v47 }
 0x151   :  { %v10394_v20 = vpop.f32.mrf.mxu0 }
 0x152   :  { %v594_v16 = vadd.f32 %v10370_v47, %v10394_v20  ;;  %vm790_vm11 = vcmp.gt.f32.partialorder %v602_v41, 0.0 }
 0x153   :  { %v10397_v25 = vpop.f32.mrf.mxu0  ;;  %2725 = vmatpush1.bf16.msra.mxu1 %v965_v21 }
 0x154   :  { %2726 = vmatprep.subr.bf16.mxu1 %v10130_v30  ;;  %v605_v32 = vadd.f32 %v10397_v25, %v10370_v47  ;;  %vm788_vm13 = vcmp.gt.f32.partialorder %v594_v16, 0.0 }
 0x155   :  { %v10402_v29 = vpop.f32.mrf.mxu0 }
 0x156   :  { %v855_v45 = vmul.f32 0.2, %v605_v32  ;;  %v597_v25 = vadd.f32 %v10370_v47, %v10402_v29  ;;  %vm791_vm10 = vcmp.gt.f32.partialorder %v605_v32, 0.0 }
 0x157   :  { %v8800_v39 = vpop.f32.mrf.mxu0  ;;  %2727 = vmatpush1.bf16.msra.mxu1 %v964_v31 }
 0x158   :  { %2728 = vmatprep.subr.bf16.mxu1 %v10130_v30  ;;  %v618_v9 = vadd.f32 %v8800_v39, %v10370_v47  ;;  %v853_v29 = vmul.f32 0.2, %v597_v25  ;;  %vm789_vm12 = vcmp.gt.f32.partialorder %v597_v25, 0.0 }
 0x159   :  { %v609_v43 = vpop.f32.mrf.mxu0 }
 0x15a   :  { %v858_v24 = vmul.f32 0.2, %v618_v9  ;;  %v610_v26 = vadd.f32 %v10370_v47, %v609_v43  ;;  %vm794_vm7 = vcmp.gt.f32.partialorder %v618_v9, 0.0 }
 0x15b   :  { %v8801_v48 = vpop.f32.mrf.mxu0  ;;  %2729 = vmatpush1.bf16.msra.mxu1 %v963_v44 }
 0x15c   :  { %2730 = vmatprep.subr.bf16.mxu1 %v10130_v30  ;;  %v621_v5 = vadd.f32 %v8801_v48, %v10370_v47  ;;  %v856_v42 = vmul.f32 0.2, %v610_v26  ;;  %v922_v40 = vsel %vm794_vm7, %v618_v9, %v858_v24  ;;  %vm792_vm9 = vcmp.gt.f32.partialorder %v610_v26, 0.0 }
 0x15d   :  { %v612_v51 = vpop.f32.mrf.mxu0  ;;  %v854_v48 = vmul.f32 0.2, %v602_v41 }
 0x15e   :  { %v859_v19 = vmul.f32 0.2, %v621_v5  ;;  %v613_v21 = vadd.f32 %v10370_v47, %v612_v51  ;;  %vm795_vm6 = vcmp.gt.f32.partialorder %v621_v5, 0.0  ;;  %v920_v49 = vsel %vm792_vm9, %v610_v26, %v856_v42  ;;  %v9386_v26 = vld [vmem:[#allocation4] ss:$16 sps:$4 sm:$0xff]  }
 0x15f   :  { %v8804_v55 = vpop.f32.mrf.mxu0  ;;  %2731 = vmatpush1.bf16.msra.mxu1 %v962_v52  ;;  %v589_v51 = vadd.f32 %v10383_v7, %v10370_v47  ;;  %v919_v52 = vsel %vm791_vm10, %v605_v32, %v855_v45  ;;  %v918_v20 = vsel %vm790_vm11, %v602_v41, %v854_v48  ;;  %v581_v7 = vadd.f32 %v10370_v47, %v10387_v11 }
 0x160   :  { %v634_v56 = vadd.f32 %v8804_v55, %v10370_v47  ;;  %2732 = vmatprep.subr.bf16.mxu1 %v10130_v30  ;;  %v857_v33 = vmul.f32 0.2, %v613_v21  ;;  %v923_v34 = vsel %vm795_vm6, %v621_v5, %v859_v19  ;;  %vm793_vm8 = vcmp.gt.f32.partialorder %v613_v21, 0.0 }
 0x161   :  { %v625_v58 = vpop.f32.mrf.mxu0  ;;  %v973_v44 = vpack.c.bf16 %v923_v34, %v922_v40  ;;  %v852_v55 = vmul.f32 0.2, %v594_v16  ;;  %v851_v57 = vmul.f32 0.2, %v589_v51  ;;  %vm787_vm14 = vcmp.gt.f32.partialorder %v589_v51, 0.0 }
 0x162   :  { %v626_v60 = vadd.f32 %v10370_v47, %v625_v58  ;;  %v862_v63 = vmul.f32 0.2, %v634_v56  ;;  %vm798_vm2 = vcmp.gt.f32.partialorder %v634_v56, 0.0  ;;  %v921_v46 = vsel %vm793_vm8, %v613_v21, %v857_v33  ;;  %v9389_v33 = vld [vmem:[#allocation4 + $0x24] ss:$16 sps:$4 sm:$0xff]  }
 0x163   :  { %v8805_v62 = vpop.f32.mrf.mxu0  ;;  %2733 = vmatpush1.bf16.msra.mxu1 %v961_v36  ;;  %v972_v35 = vpack.c.bf16 %v921_v46, %v920_v49  ;;  %v917_v58 = vsel %vm789_vm12, %v597_v25, %v853_v29  ;;  %v915_v1 = vsel %vm787_vm14, %v589_v51, %v851_v57  ;;  %vm785_vm1 = vcmp.gt.f32.partialorder %v581_v7, 0.0 }
 0x164   :  { %v637_v0 = vadd.f32 %v8805_v62, %v10370_v47  ;;  %2734 = vmatprep.subr.bf16.mxu1 %v10130_v30  ;;  %v860_v10 = vmul.f32 0.2, %v626_v60  ;;  %v926_v14 = vsel %vm798_vm2, %v634_v56, %v862_v63  ;;  %vm796_vm5 = vcmp.gt.f32.partialorder %v626_v60, 0.0 }
 0x165   :  { %v628_v3 = vpop.f32.mrf.mxu0  ;;  %v971_v56 = vpack.c.bf16 %v919_v52, %v918_v20  ;;  %v848_v11 = vmul.f32 0.2, %v578_v61  ;;  %v914_v5 = vsel %vm786_vm15, %v586_v54, %v850_v59  ;;  %vm784_vm2 = vcmp.gt.f32.partialorder %v578_v61, 0.0 }
 0x166   :  { %vm799_vm3 = vcmp.gt.f32.partialorder %v637_v0, 0.0  ;;  %v863_v6 = vmul.f32 0.2, %v637_v0  ;;  %v629_v8 = vadd.f32 %v10370_v47, %v628_v3  ;;  %v924_v27 = vsel %vm796_vm5, %v626_v60, %v860_v10 }
 0x167   :  { %v10422_v12 = vpop.f32.mrf.mxu0  ;;  %2735 = vmatpush1.bf16.msra.mxu1 %v960_v4  ;;  %v916_v60 = vsel %vm788_vm13, %v594_v16, %v852_v55  ;;  %v969_v2 = vpack.c.bf16 %v915_v1, %v914_v5  ;;  %v9391_v55 = vld [vmem:[#allocation4 + $0x20] ss:$16 sps:$4 sm:$0xff]  }
 0x168   :  { %vm797_vm4 = vcmp.gt.f32.partialorder %v629_v8, 0.0  ;;  %v861_v13 = vmul.f32 0.2, %v629_v8  ;;  %2736 = vmatprep.subr.bf16.mxu1 %v10130_v30  ;;  %v927_v15 = vsel %vm799_vm3, %v637_v0, %v863_v6  ;;  %v970_v63 = vpack.c.bf16 %v917_v58, %v916_v60  ;;  %v9470_v60 = vld [vmem:[#allocation6 + $0x8] sm:$0xff]   ;;  %v9394_v5 = vld [vmem:[#allocation4 + $0x40] ss:$16 sps:$4 sm:$0xff]  }
 0x169   :  { %v10425_v17 = vpop.f32.mrf.mxu0  ;;  %v975_v18 = vpack.c.bf16 %v927_v15, %v926_v14  ;;  %v849_v0 = vmul.f32 0.2, %v581_v7  ;;  %v912_v15 = vsel %vm784_vm2, %v578_v61, %v848_v11 }
 0x16a   :  { %v925_v22 = vsel %vm797_vm4, %v629_v8, %v861_v13 }
 0x16b   :  { %v10428_v23 = vpop.f32.mrf.mxu0  ;;  %2737 = vmatpush2.bf16.msra.mxu1 %v975_v18  ;;  %v974_v31 = vpack.c.bf16 %v925_v22, %v924_v27  ;;  %v913_v8 = vsel %vm785_vm1, %v581_v7, %v849_v0 }
 0x16c   :  { %2738 = vmatprep.subr.bf16.mxu1 %v10130_v30  ;;  %v968_v19 = vpack.c.bf16 %v913_v8, %v912_v15 }
 0x16d   :  { %v10432_v28 = vpop.f32.mrf.mxu0 }
 0x16f   :  { %v10436_v39 = vpop.f32.mrf.mxu0  ;;  %2739 = vmatpush2.bf16.msra.mxu1 %v974_v31 }
 0x170   :  { %2740 = vmatprep.subr.bf16.mxu1 %v10130_v30 }
 0x171   :  { %v10441_v43 = vpop.f32.mrf.mxu0 }
 0x173   :  { %v10445_v37 = vpop.f32.mrf.mxu0  ;;  %2741 = vmatpush2.bf16.msra.mxu1 %v973_v44 }
 0x174   :  { %2742 = vmatprep.subr.bf16.mxu1 %v10130_v30  ;;  %v669_v52 = vadd.f32 %v10445_v37, %v10370_v47 }
 0x175   :  { %v10450_v50 = vpop.f32.mrf.mxu0 }
 0x176   :  { %v871_v37 = vmul.f32 0.2, %v669_v52  ;;  %v661_v59 = vadd.f32 %v10370_v47, %v10450_v50  ;;  %vm807_vm11 = vcmp.gt.f32.partialorder %v669_v52, 0.0  ;;  %v653_v50 = vadd.f32 %v10428_v23, %v10370_v47 }
 0x177   :  { %v8816_v53 = vpop.f32.mrf.mxu0  ;;  %2743 = vmatpush2.bf16.msra.mxu1 %v972_v35  ;;  %v645_v23 = vadd.f32 %v10370_v47, %v10432_v28 }
 0x178   :  { %2744 = vmatprep.subr.bf16.mxu1 %v10130_v30  ;;  %v682_v27 = vadd.f32 %v8816_v53, %v10370_v47  ;;  %v935_v11 = vsel %vm807_vm11, %v669_v52, %v871_v37  ;;  %vm805_vm13 = vcmp.gt.f32.partialorder %v661_v59, 0.0  ;;  %vm803_vm15 = vcmp.gt.f32.partialorder %v653_v50, 0.0 }
 0x179   :  { %v10457_v38 = vpop.f32.mrf.mxu0  ;;  %vm801_vm2 = vcmp.gt.f32.partialorder %v645_v23, 0.0 }
 0x17a   :  { %v874_v16 = vmul.f32 0.2, %v682_v27  ;;  %v674_v49 = vadd.f32 %v10370_v47, %v10457_v38  ;;  %vm810_vm8 = vcmp.gt.f32.partialorder %v682_v27, 0.0  ;;  %v666_v38 = vadd.f32 %v10436_v39, %v10370_v47 }
 0x17b   :  { %v8817_v36 = vpop.f32.mrf.mxu0  ;;  %2745 = vmatpush2.bf16.msra.mxu1 %v971_v56  ;;  %v9392_v56 = vld [vmem:[#allocation4 + $0x44] ss:$16 sps:$4 sm:$0xff]  }
 0x17c   :  { %2746 = vmatprep.subr.bf16.mxu1 %v10130_v30  ;;  %v685_v21 = vadd.f32 %v8817_v36, %v10370_v47  ;;  %v938_v57 = vsel %vm810_vm8, %v682_v27, %v874_v16  ;;  %v872_v7 = vmul.f32 0.2, %v674_v49  ;;  %vm808_vm10 = vcmp.gt.f32.partialorder %v674_v49, 0.0 }
 0x17d   :  { %v676_v62 = vpop.f32.mrf.mxu0  ;;  %v870_v39 = vmul.f32 0.2, %v666_v38  ;;  %vm806_vm12 = vcmp.gt.f32.partialorder %v666_v38, 0.0  ;;  %v865_v27 = vmul.f32 0.2, %v645_v23 }
 0x17e   :  { %v875_v45 = vmul.f32 0.2, %v685_v21  ;;  %v677_v25 = vadd.f32 %v10370_v47, %v676_v62  ;;  %vm811_vm7 = vcmp.gt.f32.partialorder %v685_v21, 0.0  ;;  %v936_v0 = vsel %vm808_vm10, %v674_v49, %v872_v7  ;;  %v9401_v7 = vld [vmem:[#allocation4 + $0xa4] ss:$16 sps:$4 sm:$0xff]  }
 0x17f   :  { %v8820_v3 = vpop.f32.mrf.mxu0  ;;  %2747 = vmatpush2.bf16.msra.mxu1 %v970_v63  ;;  %v658_v63 = vadd.f32 %v10370_v47, %v10441_v43  ;;  %v650_v43 = vadd.f32 %v10422_v12, %v10370_v47  ;;  %v934_v8 = vsel %vm806_vm12, %v666_v38, %v870_v39  ;;  %v642_v12 = vadd.f32 %v10370_v47, %v10425_v17 }
 0x180   :  { %v698_v4 = vadd.f32 %v8820_v3, %v10370_v47  ;;  %2748 = vmatprep.subr.bf16.mxu1 %v10130_v30  ;;  %v939_v53 = vsel %vm811_vm7, %v685_v21, %v875_v45  ;;  %v873_v54 = vmul.f32 0.2, %v677_v25  ;;  %vm809_vm9 = vcmp.gt.f32.partialorder %v677_v25, 0.0 }
 0x181   :  { %v689_v6 = vpop.f32.mrf.mxu0  ;;  %v981_v58 = vpack.c.bf16 %v939_v53, %v938_v57  ;;  %vm804_vm14 = vcmp.gt.f32.partialorder %v658_v63, 0.0  ;;  %vm802_vm1 = vcmp.gt.f32.partialorder %v650_v43, 0.0  ;;  %v929_v45 = vsel %vm801_vm2, %v645_v23, %v865_v27 }
 0x182   :  { %v878_v9 = vmul.f32 0.2, %v698_v4  ;;  %vm814_vm3 = vcmp.gt.f32.partialorder %v698_v4, 0.0  ;;  %v690_v13 = vadd.f32 %v10370_v47, %v689_v6  ;;  %v937_v61 = vsel %vm809_vm9, %v677_v25, %v873_v54 }
 0x183   :  { %v8821_v10 = vpop.f32.mrf.mxu0  ;;  %2749 = vmatpush2.bf16.msra.mxu1 %v969_v2  ;;  %v980_v1 = vpack.c.bf16 %v937_v61, %v936_v0  ;;  %v9395_v2 = vld [vmem:[#allocation4 + $0x64] ss:$16 sps:$4 sm:$0xff]  }
 0x184   :  { %v701_v14 = vadd.f32 %v8821_v10, %v10370_v47  ;;  %2750 = vmatprep.subr.bf16.mxu1 %v10130_v30  ;;  %v942_v31 = vsel %vm814_vm3, %v698_v4, %v878_v9  ;;  %v876_v34 = vmul.f32 0.2, %v690_v13  ;;  %vm812_vm6 = vcmp.gt.f32.partialorder %v690_v13, 0.0 }
 0x185   :  { %v692_v18 = vpop.f32.mrf.mxu0  ;;  %v869_v4 = vmul.f32 0.2, %v661_v59  ;;  %v868_v9 = vmul.f32 0.2, %v658_v63  ;;  %v979_v10 = vpack.c.bf16 %v935_v11, %v934_v8  ;;  %vm800_vm3 = vcmp.gt.f32.partialorder %v642_v12, 0.0 }
 0x186   :  { %vm815_vm4 = vcmp.gt.f32.partialorder %v701_v14, 0.0  ;;  %v879_v22 = vmul.f32 0.2, %v701_v14  ;;  %v693_v24 = vadd.f32 %v10370_v47, %v692_v18  ;;  %v940_v35 = vsel %vm812_vm6, %v690_v13, %v876_v34 }
 0x187   :  { %v10472_v32 = vpop.f32.mrf.mxu0  ;;  %2751 = vmatpush2.bf16.msra.mxu1 %v968_v19  ;;  %v933_v15 = vsel %vm805_vm13, %v661_v59, %v869_v4  ;;  %v866_v19 = vmul.f32 0.2, %v650_v43  ;;  %v932_v21 = vsel %vm804_vm14, %v658_v63, %v868_v9 }
 0x188   :  { %v943_v41 = vsel %vm815_vm4, %v701_v14, %v879_v22  ;;  %vm813_vm5 = vcmp.gt.f32.partialorder %v693_v24, 0.0  ;;  %v877_v42 = vmul.f32 0.2, %v693_v24  ;;  %8838 = vmatprep.subr.bf16.mxu1 %v9470_v60  ;;  %v867_v14 = vmul.f32 0.2, %v653_v50 }
 0x189   :  { %v983_v40 = vpack.c.bf16 %v943_v41, %v942_v31  ;;  %v10474_v44 = vpop.f32.mrf.mxu0  ;;  %v978_v22 = vpack.c.bf16 %v933_v15, %v932_v21  ;;  %v9397_v31 = vld [vmem:[#allocation4 + $0x60] ss:$16 sps:$4 sm:$0xff]   ;;  %v930_v34 = vsel %vm802_vm1, %v650_v43, %v866_v19  ;;  %v864_v41 = vmul.f32 0.2, %v642_v12  ;;  %v9404_v43 = vld [vmem:[#allocation4 + $0xc4] ss:$16 sps:$4 sm:$0xff]  }
 0x18a   :  { %v941_v46 = vsel %vm813_vm5, %v693_v24, %v877_v42  ;;  %2753 = vmatmul.mubr.bf16.vlgmr.msra.gmra.mxu1 %v9386_v26  ;;  %v931_v26 = vsel %vm803_vm15, %v653_v50, %v867_v14 }
 0x18b   :  { %v10477_v48 = vpop.f32.mrf.mxu0  ;;  %3330 = vmatpush1.bf16.msra.mxu0 %v983_v40  ;;  %2760 = vmatprep.mubr.bf16.mxu1 %v9389_v33  ;;  %v982_v51 = vpack.c.bf16 %v941_v46, %v940_v35  ;;  %v9398_v33 = vld [vmem:[#allocation4 + $0x84] ss:$16 sps:$4 sm:$0xff]   ;;  %v977_v17 = vpack.c.bf16 %v931_v26, %v930_v34  ;;  %v928_v16 = vsel %vm800_vm3, %v642_v12, %v864_v41 }
 0x18c   :  { %3331 = vmatprep.subr.bf16.mxu0 %v10130_v30  ;;  %8839 = vmatpush3.bf16.msra.mxu1 %v9470_v60  ;;  %v717_v12 = vadd.f32 %v10477_v48, %v10370_v47  ;;  %v714_v26 = vadd.f32 %v10472_v32, %v10370_v47  ;;  %v706_v41 = vadd.f32 %v10370_v47, %v10474_v44 }
 0x18d   :  { %v10482_v29 = vpop.f32.mrf.mxu0 }
 0x18e   :  { %vm819_vm1 = vcmp.gt.f32.partialorder %v717_v12, 0.0  ;;  %v882_v34 = vmul.f32 0.2, %v714_v26  ;;  %vm818_vm2 = vcmp.gt.f32.partialorder %v714_v26, 0.0 }
 0x18f   :  { %v10486_v20 = vpop.f32.mrf.mxu0  ;;  %3332 = vmatpush1.bf16.msra.mxu0 %v982_v51  ;;  %v976_v51 = vpack.c.bf16 %v929_v45, %v928_v16  ;;  %v9409_v45 = vld [vmem:[#allocation4 + $0xe0] ss:$16 sps:$4 sm:$0xff]  }
 0x190   :  { %3333 = vmatprep.subr.bf16.mxu0 %v10130_v30  ;;  %v730_v8 = vadd.f32 %v10486_v20, %v10370_v47 }
 0x191   :  { %v10491_v36 = vpop.f32.mrf.mxu0 }
 0x192   :  { %2761 = vmatmul.mubr.bf16.gmra.mxu1 %v9391_v55  ;;  %v886_v15 = vmul.f32 0.2, %v730_v8  ;;  %vm822_vm13 = vcmp.gt.f32.partialorder %v730_v8, 0.0 }
 0x193   :  { %v10495_v62 = vpop.f32.mrf.mxu0  ;;  %3334 = vmatpush1.bf16.msra.mxu0 %v981_v58  ;;  %2768 = vmatprep.mubr.bf16.mxu1 %v9392_v56  ;;  %v9400_v56 = vld [vmem:[#allocation4 + $0x80] ss:$16 sps:$4 sm:$0xff]  }
 0x194   :  { %3335 = vmatprep.subr.bf16.mxu0 %v10130_v30  ;;  %v733_v4 = vadd.f32 %v10495_v62, %v10370_v47  ;;  %v950_v27 = vsel %vm822_vm13, %v730_v8, %v886_v15  ;;  %v9452_v8 = vld [vmem:[#allocation4 + $0x1e4] ss:$16 sps:$4 sm:$0xff]   ;;  %v9463_v15 = vld [vmem:[#allocation4 + $0x108] ss:$16 sps:$4 sm:$0xff]  }
 0x195   :  { %v10500_v3 = vpop.f32.mrf.mxu0 }
 0x196   :  { %v887_v14 = vmul.f32 0.2, %v733_v4  ;;  %v725_v23 = vadd.f32 %v10370_v47, %v10500_v3  ;;  %vm823_vm12 = vcmp.gt.f32.partialorder %v733_v4, 0.0  ;;  %v9406_v3 = vld [vmem:[#allocation4 + $0xc0] ss:$16 sps:$4 sm:$0xff]  }
 0x197   :  { %v8832_v6 = vpop.f32.mrf.mxu0  ;;  %3336 = vmatpush1.bf16.msra.mxu0 %v980_v1 }
 0x198   :  { %3337 = vmatprep.subr.bf16.mxu0 %v10130_v30  ;;  %v746_v38 = vadd.f32 %v8832_v6, %v10370_v47  ;;  %v951_v21 = vsel %vm823_vm12, %v733_v4, %v887_v14  ;;  %vm821_vm14 = vcmp.gt.f32.partialorder %v725_v23, 0.0  ;;  %v9446_v4 = vld [vmem:[#allocation4 + $0x1c4] ss:$16 sps:$4 sm:$0xff]  }
 0x199   :  { %v10507_v13 = vpop.f32.mrf.mxu0  ;;  %v9458_v14 = vld [vmem:[#allocation4 + $0x204] ss:$16 sps:$4 sm:$0xff]  }
 0x19a   :  { %2769 = vmatmul.mubr.bf16.gmra.mxu1 %v9394_v5  ;;  %v890_v0 = vmul.f32 0.2, %v746_v38  ;;  %v738_v1 = vadd.f32 %v10370_v47, %v10507_v13  ;;  %vm826_vm9 = vcmp.gt.f32.partialorder %v746_v38, 0.0 }
 0x19b   :  { %v8833_v18 = vpop.f32.mrf.mxu0  ;;  %3338 = vmatpush1.bf16.msra.mxu0 %v979_v10  ;;  %2776 = vmatprep.mubr.bf16.mxu1 %v9395_v2  ;;  %v9403_v2 = vld [vmem:[#allocation4 + $0xa0] ss:$16 sps:$4 sm:$0xff]  }
 0x19c   :  { %3339 = vmatprep.subr.bf16.mxu0 %v10130_v30  ;;  %v749_v53 = vadd.f32 %v8833_v18, %v10370_v47  ;;  %v954_v9 = vsel %vm826_vm9, %v746_v38, %v890_v0  ;;  %v888_v10 = vmul.f32 0.2, %v738_v1  ;;  %vm824_vm11 = vcmp.gt.f32.partialorder %v738_v1, 0.0  ;;  %v9424_v38 = vld [vmem:[#allocation4 + $0x4c] ss:$16 sps:$4 sm:$0xff]  }
 0x19d   :  { %v740_v24 = vpop.f32.mrf.mxu0  ;;  %v722_v18 = vadd.f32 %v10370_v47, %v10491_v36  ;;  %v987_v36 = vpack.c.bf16 %v951_v21, %v950_v27  ;;  %v9440_v0 = vld [vmem:[#allocation4 + $0x1a4] ss:$16 sps:$4 sm:$0xff]   ;;  %v9479_v27 = vld [vmem:[#allocation4 + $0x16c] ss:$16 sps:$4 sm:$0xff]  }
 0x19e   :  { %v891_v60 = vmul.f32 0.2, %v749_v53  ;;  %v741_v39 = vadd.f32 %v10370_v47, %v740_v24  ;;  %vm827_vm8 = vcmp.gt.f32.partialorder %v749_v53, 0.0  ;;  %v952_v20 = vsel %vm824_vm11, %v738_v1, %v888_v10  ;;  %v9407_v24 = vld [vmem:[#allocation4 + $0xe4] ss:$16 sps:$4 sm:$0xff]  }
 0x19f   :  { %v8836_v28 = vpop.f32.mrf.mxu0  ;;  %3340 = vmatpush1.bf16.msra.mxu0 %v978_v22  ;;  %v885_v22 = vmul.f32 0.2, %v725_v23  ;;  %vm820_vm15 = vcmp.gt.f32.partialorder %v722_v18, 0.0  ;;  %v9442_v1 = vld [vmem:[#allocation4 + $0xac] ss:$16 sps:$4 sm:$0xff]  }
 0x1a0   :  { %v762_v42 = vadd.f32 %v8836_v28, %v10370_v47  ;;  %3341 = vmatprep.subr.bf16.mxu0 %v10130_v30  ;;  %v955_v5 = vsel %vm827_vm8, %v749_v53, %v891_v60  ;;  %v889_v6 = vmul.f32 0.2, %v741_v39  ;;  %vm825_vm10 = vcmp.gt.f32.partialorder %v741_v39, 0.0  ;;  %v9418_v53 = vld [vmem:[#allocation4 + $0x2c] ss:$16 sps:$4 sm:$0xff]  }
 0x1a1   :  { %v753_v40 = vpop.f32.mrf.mxu0  ;;  %v989_v13 = vpack.c.bf16 %v955_v5, %v954_v9  ;;  %v883_v28 = vmul.f32 0.2, %v717_v12  ;;  %v949_v48 = vsel %vm821_vm14, %v725_v23, %v885_v22  ;;  %v9436_v60 = vld [vmem:[#allocation4 + $0x8c] ss:$16 sps:$4 sm:$0xff]   ;;  %v9456_v10 = vld [vmem:[#allocation4 + $0x1e0] ss:$16 sps:$4 sm:$0xff]  }
 0x1a2   :  { %2777 = vmatmul.mubr.bf16.gmra.mxu1 %v9397_v31  ;;  %v894_v25 = vmul.f32 0.2, %v762_v42  ;;  %vm830_vm4 = vcmp.gt.f32.partialorder %v762_v42, 0.0  ;;  %v754_v49 = vadd.f32 %v10370_v47, %v753_v40  ;;  %v953_v62 = vsel %vm825_vm10, %v741_v39, %v889_v6  ;;  %v9438_v39 = vld [vmem:[#allocation4 + $0x180] ss:$16 sps:$4 sm:$0xff]   ;;  %v9543_v6 = vld [vmem:[#allocation6 + $0x18] sm:$0xff]  }
 0x1a3   :  { %v8837_v46 = vpop.f32.mrf.mxu0  ;;  %3342 = vmatpush1.bf16.msra.mxu0 %v977_v17  ;;  %2784 = vmatprep.mubr.bf16.mxu1 %v9398_v33  ;;  %v988_v19 = vpack.c.bf16 %v953_v62, %v952_v20  ;;  %v884_v31 = vmul.f32 0.2, %v722_v18  ;;  %v709_v33 = vadd.f32 %v10370_v47, %v10482_v29  ;;  %v947_v17 = vsel %vm819_vm1, %v717_v12, %v883_v28  ;;  %v9410_v29 = vld [vmem:[#allocation4 + $0x104] ss:$16 sps:$4 sm:$0xff]   ;;  %v9448_v5 = vld [vmem:[#allocation4 + $0xcc] ss:$16 sps:$4 sm:$0xff]  }
 0x1a4   :  { %v765_v35 = vadd.f32 %v8837_v46, %v10370_v47  ;;  %3343 = vmatprep.subr.bf16.mxu0 %v10130_v30  ;;  %v958_v57 = vsel %vm830_vm4, %v762_v42, %v894_v25  ;;  %v892_v58 = vmul.f32 0.2, %v754_v49  ;;  %vm828_vm7 = vcmp.gt.f32.partialorder %v754_v49, 0.0  ;;  %v9454_v9 = vld [vmem:[#allocation4 + $0xec] ss:$16 sps:$4 sm:$0xff]  }
 0x1a5   :  { %v756_v52 = vpop.f32.mrf.mxu0  ;;  %v948_v32 = vsel %vm820_vm15, %v722_v18, %v884_v31  ;;  %v881_v40 = vmul.f32 0.2, %v709_v33  ;;  %vm817_vm3 = vcmp.gt.f32.partialorder %v709_v33, 0.0  ;;  %v946_v25 = vsel %vm818_vm2, %v714_v26, %v882_v34  ;;  %v9460_v23 = vld [vmem:[#allocation4 + $0x10c] ss:$16 sps:$4 sm:$0xff]  }
 0x1a6   :  { %vm831_vm5 = vcmp.gt.f32.partialorder %v765_v35, 0.0  ;;  %v895_v54 = vmul.f32 0.2, %v765_v35  ;;  %v757_v55 = vadd.f32 %v10370_v47, %v756_v52  ;;  %v956_v50 = vsel %vm828_vm7, %v754_v49, %v892_v58  ;;  %v9416_v52 = vld [vmem:[#allocation4 + $0x124] ss:$16 sps:$4 sm:$0xff]  }
 0x1a7   :  { %3344 = vmatpush1.bf16.msra.mxu0 %v976_v51  ;;  %v986_v42 = vpack.c.bf16 %v949_v48, %v948_v32  ;;  %v880_v46 = vmul.f32 0.2, %v706_v41  ;;  %vm816_vm4 = vcmp.gt.f32.partialorder %v706_v41, 0.0  ;;  %v985_v16 = vpack.c.bf16 %v947_v17, %v946_v25  ;;  %v9415_v51 = vld [vmem:[#allocation4 + $0x100] ss:$16 sps:$4 sm:$0xff]  }
 0x1a8   :  { %v959_v37 = vsel %vm831_vm5, %v765_v35, %v895_v54  ;;  %vm829_vm6 = vcmp.gt.f32.partialorder %v757_v55, 0.0  ;;  %v893_v59 = vmul.f32 0.2, %v757_v55  ;;  %3345 = vmatprep.subr.bf16.mxu0 %v10130_v30  ;;  %v945_v49 = vsel %vm817_vm3, %v709_v33, %v881_v40  ;;  %v9412_v35 = vld [vmem:[#allocation4 + $0x8] ss:$16 sps:$4 sm:$0xff]  }
 0x1a9   :  { %v991_v61 = vpack.c.bf16 %v959_v37, %v958_v57  ;;  %v944_v47 = vsel %vm816_vm4, %v706_v41, %v880_v46  ;;  %v9420_v54 = vld [vmem:[#allocation4 + $0x120] ss:$16 sps:$4 sm:$0xff]   ;;  %v9430_v58 = vld [vmem:[#allocation4 + $0x6c] ss:$16 sps:$4 sm:$0xff]   ;;  %v9464_v18 = vld [vmem:[#allocation4 + $0x224] ss:$16 sps:$4 sm:$0xff]  }
 0x1aa   :  { %v957_v63 = vsel %vm829_vm6, %v757_v55, %v893_v59  ;;  %2785 = vmatmul.mubr.bf16.gmra.mxu1 %v9400_v56  ;;  %v984_v44 = vpack.c.bf16 %v945_v49, %v944_v47  ;;  %v9421_v55 = vld [vmem:[#allocation4 + $0x28] ss:$16 sps:$4 sm:$0xff]   ;;  %v9422_v56 = vld [vmem:[#allocation4 + $0x144] ss:$16 sps:$4 sm:$0xff]   ;;  %v9426_v57 = vld [vmem:[#allocation4 + $0x140] ss:$16 sps:$4 sm:$0xff]  }
 0x1ab   :  { %3346 = vmatpush2.bf16.msra.mxu0 %v991_v61  ;;  %2792 = vmatprep.mubr.bf16.mxu1 %v9401_v7  ;;  %v990_v11 = vpack.c.bf16 %v957_v63, %v956_v50  ;;  %v9428_v7 = vld [vmem:[#allocation4 + $0x164] ss:$16 sps:$4 sm:$0xff]   ;;  %v9432_v37 = vld [vmem:[#allocation4 + $0x160] ss:$16 sps:$4 sm:$0xff]   ;;  %v9433_v59 = vld [vmem:[#allocation4 + $0x68] ss:$16 sps:$4 sm:$0xff]  }
 0x1ac   :  { %3347 = vmatprep.subr.bf16.mxu0 %v10130_v30  ;;  %v9434_v61 = vld [vmem:[#allocation4 + $0x184] ss:$16 sps:$4 sm:$0xff]   ;;  %v9439_v63 = vld [vmem:[#allocation4 + $0x88] ss:$16 sps:$4 sm:$0xff]   ;;  %v9444_v50 = vld [vmem:[#allocation4 + $0x1a0] ss:$16 sps:$4 sm:$0xff]  }
 0x1ad   :  { %v9462_v62 = vld [vmem:[#allocation4 + $0x200] ss:$16 sps:$4 sm:$0xff]   ;;  %v9466_v20 = vld [vmem:[#allocation4 + $0x12c] ss:$16 sps:$4 sm:$0xff]   ;;  %v9469_v12 = vld [vmem:[#allocation4 + $0x128] ss:$16 sps:$4 sm:$0xff]  }
 0x1ae   :  { %v9471_v21 = vld [vmem:[#allocation4 + $0x244] ss:$16 sps:$4 sm:$0xff]   ;;  %v9473_v22 = vld [vmem:[#allocation4 + $0x14c] ss:$16 sps:$4 sm:$0xff]   ;;  %v9481_v31 = vld [vmem:[#allocation4 + $0x260] ss:$16 sps:$4 sm:$0xff]  }
 0x1af   :  { %3348 = vmatpush2.bf16.msra.mxu0 %v990_v11  ;;  %v9445_v11 = vld [vmem:[#allocation4 + $0xa8] ss:$16 sps:$4 sm:$0xff]   ;;  %v9477_v26 = vld [vmem:[#allocation4 + $0x264] ss:$16 sps:$4 sm:$0xff]   ;;  %v9487_v33 = vld [vmem:[#allocation4 + $0x18c] ss:$16 sps:$4 sm:$0xff]  }
 0x1b0   :  { %3349 = vmatprep.subr.bf16.mxu0 %v10130_v30  ;;  %v9483_v28 = vld [vmem:[#allocation4 + $0x284] ss:$16 sps:$4 sm:$0xff]   ;;  %v9485_v48 = vld [vmem:[#allocation4 + $0x188] ss:$16 sps:$4 sm:$0xff]   ;;  %v9488_v34 = vld [vmem:[#allocation4 + $0x280] ss:$16 sps:$4 sm:$0xff]  }
 0x1b1   :  { %v9489_v41 = vld [vmem:[#allocation4 + $0x2a4] ss:$16 sps:$4 sm:$0xff]   ;;  %v9493_v32 = vld [vmem:[#allocation4 + $0x1ac] ss:$16 sps:$4 sm:$0xff]   ;;  %v9494_v17 = vld [vmem:[#allocation4 + $0x2a0] ss:$16 sps:$4 sm:$0xff]  }
 0x1b2   :  { %2793 = vmatmul.mubr.bf16.gmra.mxu1 %v9403_v2  ;;  %v9450_v2 = vld [vmem:[#allocation4 + $0x1c0] ss:$16 sps:$4 sm:$0xff]   ;;  %v9495_v40 = vld [vmem:[#allocation4 + $0x2c4] ss:$16 sps:$4 sm:$0xff]   ;;  %v9503_v49 = vld [vmem:[#allocation4 + $0x1e8] ss:$16 sps:$4 sm:$0xff]  }
 0x1b3   :  { %3350 = vmatpush2.bf16.msra.mxu0 %v989_v13  ;;  %2800 = vmatprep.mubr.bf16.mxu1 %v9404_v43  ;;  %v9451_v43 = vld [vmem:[#allocation4 + $0xc8] ss:$16 sps:$4 sm:$0xff]   ;;  %v9500_v25 = vld [vmem:[#allocation4 + $0x2c0] ss:$16 sps:$4 sm:$0xff]   ;;  %v9501_v46 = vld [vmem:[#allocation4 + $0x2e4] ss:$16 sps:$4 sm:$0xff]  }
 0x1b4   :  { %3351 = vmatprep.subr.bf16.mxu0 %v10130_v30  ;;  %v9457_v13 = vld [vmem:[#allocation4 + $0xe8] ss:$16 sps:$4 sm:$0xff]   ;;  %v9506_v47 = vld [vmem:[#allocation4 + $0x2e0] ss:$16 sps:$4 sm:$0xff]  }
 0x1b7   :  { %3352 = vmatpush2.bf16.msra.mxu0 %v988_v19  ;;  %v9468_v19 = vld [vmem:[#allocation4 + $0x220] ss:$16 sps:$4 sm:$0xff]  }
 0x1b8   :  { %3353 = vmatprep.subr.bf16.mxu0 %v10130_v30 }
 0x1ba   :  { %2801 = vmatmul.mubr.bf16.gmra.mxu1 %v9406_v3  ;;  %v9475_v3 = vld [vmem:[#allocation4 + $0x240] ss:$16 sps:$4 sm:$0xff]  }
 0x1bb   :  { %3354 = vmatpush2.bf16.msra.mxu0 %v987_v36  ;;  %2808 = vmatprep.mubr.bf16.mxu1 %v9407_v24  ;;  %v9476_v24 = vld [vmem:[#allocation4 + $0x148] ss:$16 sps:$4 sm:$0xff]  }
 0x1bc   :  { %3355 = vmatprep.subr.bf16.mxu0 %v10130_v30  ;;  %v9482_v36 = vld [vmem:[#allocation4 + $0x168] ss:$16 sps:$4 sm:$0xff]  }
 0x1bf   :  { %3356 = vmatpush2.bf16.msra.mxu0 %v986_v42  ;;  %v9491_v42 = vld [vmem:[#allocation4 + $0x1a8] ss:$16 sps:$4 sm:$0xff]  }
 0x1c0   :  { %3357 = vmatprep.subr.bf16.mxu0 %v10130_v30 }
 0x1c2   :  { %2809 = vmatmul.mubr.bf16.gmra.mxu1 %v9409_v45  ;;  %v9499_v45 = vld [vmem:[#allocation4 + $0x1cc] ss:$16 sps:$4 sm:$0xff]  }
 0x1c3   :  { %3358 = vmatpush2.bf16.msra.mxu0 %v985_v16  ;;  %2816 = vmatprep.mubr.bf16.mxu1 %v9410_v29  ;;  %v9497_v29 = vld [vmem:[#allocation4 + $0x1c8] ss:$16 sps:$4 sm:$0xff]   ;;  %v9505_v16 = vld [vmem:[#allocation4 + $0x1ec] ss:$16 sps:$4 sm:$0xff]  }
 0x1c4   :  { %3359 = vmatprep.subr.bf16.mxu0 %v10130_v30  ;;  %v9427_v30 = vld [vmem:[#allocation4 + $0x48] ss:$16 sps:$4 sm:$0xff]  }
 0x1c7   :  { %3360 = vmatpush2.bf16.msra.mxu0 %v984_v44  ;;  %v9507_v44 = vld [vmem:[#allocation4 + $0x304] ss:$16 sps:$4 sm:$0xff]  }
 0x1c8   :  { %8892 = vmatprep.subr.bf16.mxu0 %v9543_v6 }
 0x1ca   :  { %2817 = vmatmul.mubr.bf16.gmra.mxu1 %v9415_v51  ;;  %3362 = vmatmul.mubr.bf16.vlgmr.msra.gmra.mxu0 %v9412_v35  ;;  %v9511_v35 = vld [vmem:[#allocation4 + $0x20c] ss:$16 sps:$4 sm:$0xff]   ;;  %v9509_v51 = vld [vmem:[#allocation4 + $0x208] ss:$16 sps:$4 sm:$0xff]  }
 0x1cb   :  { %2824 = vmatprep.mubr.bf16.mxu1 %v9416_v52  ;;  %3369 = vmatprep.mubr.bf16.mxu0 %v9418_v53  ;;  %v9512_v52 = vld [vmem:[#allocation4 + $0x300] ss:$16 sps:$4 sm:$0xff]   ;;  %v9513_v53 = vld [vmem:[#allocation4 + $0x324] ss:$16 sps:$4 sm:$0xff]  }
 0x1cc   :  { %8893 = vmatpush3.bf16.msra.mxu0 %v9543_v6  ;;  %v9527_v6 = vld [vmem:[#allocation4 + $0x268] ss:$16 sps:$4 sm:$0xff]  }
 0x1d2   :  { %2825 = vmatmul.mubr.bf16.gmra.mxu1 %v9420_v54  ;;  %3370 = vmatmul.mubr.bf16.gmra.mxu0 %v9421_v55  ;;  %v9517_v54 = vld [vmem:[#allocation4 + $0x22c] ss:$16 sps:$4 sm:$0xff]  }
 0x1d3   :  { %2832 = vmatprep.mubr.bf16.mxu1 %v9422_v56  ;;  %3377 = vmatprep.mubr.bf16.mxu0 %v9424_v38 }
 0x1da   :  { %2833 = vmatmul.mubr.bf16.gmra.mxu1 %v9426_v57  ;;  %3378 = vmatmul.mubr.bf16.gmra.mxu0 %v9427_v30  ;;  %v9515_v57 = vld [vmem:[#allocation4 + $0x228] ss:$16 sps:$4 sm:$0xff]   ;;  %v9518_v30 = vld [vmem:[#allocation4 + $0x320] ss:$16 sps:$4 sm:$0xff]  }
 0x1db   :  { %2840 = vmatprep.mubr.bf16.mxu1 %v9428_v7  ;;  %3385 = vmatprep.mubr.bf16.mxu0 %v9430_v58  ;;  %v9519_v7 = vld [vmem:[#allocation4 + $0x344] ss:$16 sps:$4 sm:$0xff]   ;;  %v9523_v58 = vld [vmem:[#allocation4 + $0x24c] ss:$16 sps:$4 sm:$0xff]  }
 0x1e2   :  { %2841 = vmatmul.mubr.bf16.gmra.mxu1 %v9432_v37  ;;  %3386 = vmatmul.mubr.bf16.gmra.mxu0 %v9433_v59 }
 0x1e3   :  { %2848 = vmatprep.mubr.bf16.mxu1 %v9434_v61  ;;  %3393 = vmatprep.mubr.bf16.mxu0 %v9436_v60 }
 0x1ea   :  { %2849 = vmatmul.mubr.bf16.gmra.mxu1 %v9438_v39  ;;  %3394 = vmatmul.mubr.bf16.gmra.mxu0 %v9439_v63  ;;  %v9521_v39 = vld [vmem:[#allocation4 + $0x248] ss:$16 sps:$4 sm:$0xff]   ;;  %v9524_v63 = vld [vmem:[#allocation4 + $0x340] ss:$16 sps:$4 sm:$0xff]  }
 0x1eb   :  { %2856 = vmatprep.mubr.bf16.mxu1 %v9440_v0  ;;  %3401 = vmatprep.mubr.bf16.mxu0 %v9442_v1  ;;  %v9525_v0 = vld [vmem:[#allocation4 + $0x364] ss:$16 sps:$4 sm:$0xff]   ;;  %v9529_v1 = vld [vmem:[#allocation4 + $0x26c] ss:$16 sps:$4 sm:$0xff]  }
 0x1f2   :  { %2857 = vmatmul.mubr.bf16.gmra.mxu1 %v9444_v50  ;;  %3402 = vmatmul.mubr.bf16.gmra.mxu0 %v9445_v11 }
 0x1f3   :  { %2864 = vmatprep.mubr.bf16.mxu1 %v9446_v4  ;;  %3409 = vmatprep.mubr.bf16.mxu0 %v9448_v5 }
 0x1fa   :  { %2865 = vmatmul.mubr.bf16.gmra.mxu1 %v9450_v2  ;;  %3410 = vmatmul.mubr.bf16.gmra.mxu0 %v9451_v43  ;;  %v9530_v2 = vld [vmem:[#allocation4 + $0x360] ss:$16 sps:$4 sm:$0xff]   ;;  %v9533_v43 = vld [vmem:[#allocation4 + $0x384] ss:$16 sps:$4 sm:$0xff]  }
 0x1fb   :  { %2872 = vmatprep.mubr.bf16.mxu1 %v9452_v8  ;;  %3417 = vmatprep.mubr.bf16.mxu0 %v9454_v9  ;;  %v9536_v8 = vld [vmem:[#allocation4 + $0x28c] ss:$16 sps:$4 sm:$0xff]  }
 0x202   :  { %2873 = vmatmul.mubr.bf16.gmra.mxu1 %v9456_v10  ;;  %3418 = vmatmul.mubr.bf16.gmra.mxu0 %v9457_v13 }
 0x203   :  { %2880 = vmatprep.mubr.bf16.mxu1 %v9458_v14  ;;  %3425 = vmatprep.mubr.bf16.mxu0 %v9460_v23  ;;  %v9531_v23 = vld [vmem:[#allocation4 + $0x380] ss:$16 sps:$4 sm:$0xff]  }
 0x20a   :  { %2881 = vmatmul.mubr.bf16.gmra.mxu1 %v9462_v62  ;;  %3426 = vmatmul.mubr.bf16.gmra.mxu0 %v9463_v15  ;;  %v9534_v62 = vld [vmem:[#allocation4 + $0x288] ss:$16 sps:$4 sm:$0xff]   ;;  %v9539_v15 = vld [vmem:[#allocation4 + $0x3a4] ss:$16 sps:$4 sm:$0xff]  }
 0x20b   :  { %2888 = vmatprep.mubr.bf16.mxu1 %v9464_v18  ;;  %3433 = vmatprep.mubr.bf16.mxu0 %v9466_v20  ;;  %v9542_v18 = vld [vmem:[#allocation4 + $0x2ac] ss:$16 sps:$4 sm:$0xff]  }
 0x212   :  { %2889 = vmatmul.mubr.bf16.gmra.mxu1 %v9468_v19  ;;  %3434 = vmatmul.mubr.bf16.gmra.mxu0 %v9469_v12 }
 0x213   :  { %2896 = vmatprep.mubr.bf16.mxu1 %v9471_v21  ;;  %3441 = vmatprep.mubr.bf16.mxu0 %v9473_v22  ;;  %v9537_v22 = vld [vmem:[#allocation4 + $0x3a0] ss:$16 sps:$4 sm:$0xff]  }
 0x21a   :  { %2897 = vmatmul.mubr.bf16.gmra.mxu1 %v9475_v3  ;;  %3442 = vmatmul.mubr.bf16.gmra.mxu0 %v9476_v24  ;;  %v9540_v3 = vld [vmem:[#allocation4 + $0x2a8] ss:$16 sps:$4 sm:$0xff]   ;;  %v9546_v24 = vld [vmem:[#allocation4 + $0x3c4] ss:$16 sps:$4 sm:$0xff]  }
 0x21b   :  { %2904 = vmatprep.mubr.bf16.mxu1 %v9477_v26  ;;  %3449 = vmatprep.mubr.bf16.mxu0 %v9479_v27  ;;  %v9549_v26 = vld [vmem:[#allocation4 + $0x2cc] ss:$16 sps:$4 sm:$0xff]  }
 0x222   :  { %2905 = vmatmul.mubr.bf16.gmra.mxu1 %v9481_v31  ;;  %3450 = vmatmul.mubr.bf16.gmra.mxu0 %v9482_v36 }
 0x223   :  { %2912 = vmatprep.mubr.bf16.mxu1 %v9483_v28  ;;  %3457 = vmatprep.mubr.bf16.mxu0 %v9487_v33  ;;  %v9544_v33 = vld [vmem:[#allocation4 + $0x3c0] ss:$16 sps:$4 sm:$0xff]  }
 0x22a   :  { %2913 = vmatmul.mubr.bf16.gmra.mxu1 %v9488_v34  ;;  %3458 = vmatmul.mubr.bf16.gmra.mxu0 %v9485_v48  ;;  %v9547_v48 = vld [vmem:[#allocation4 + $0x2c8] ss:$16 sps:$4 sm:$0xff]   ;;  %v9552_v34 = vld [vmem:[#allocation4 + $0x3e4] ss:$16 sps:$4 sm:$0xff]  }
 0x22b   :  { %2920 = vmatprep.mubr.bf16.mxu1 %v9489_v41  ;;  %3465 = vmatprep.mubr.bf16.mxu0 %v9493_v32  ;;  %v9555_v41 = vld [vmem:[#allocation4 + $0x2ec] ss:$16 sps:$4 sm:$0xff]  }
 0x232   :  { %2921 = vmatmul.mubr.bf16.gmra.mxu1 %v9494_v17  ;;  %3466 = vmatmul.mubr.bf16.gmra.mxu0 %v9491_v42 }
 0x233   :  { %2928 = vmatprep.mubr.bf16.mxu1 %v9495_v40  ;;  %3473 = vmatprep.mubr.bf16.mxu0 %v9499_v45  ;;  %v9550_v45 = vld [vmem:[#allocation4 + $0x3e0] ss:$16 sps:$4 sm:$0xff]  }
 0x23a   :  { %2929 = vmatmul.mubr.bf16.gmra.mxu1 %v9500_v25  ;;  %3474 = vmatmul.mubr.bf16.gmra.mxu0 %v9497_v29  ;;  %v9553_v29 = vld [vmem:[#allocation4 + $0x2e8] ss:$16 sps:$4 sm:$0xff]   ;;  %v9558_v25 = vld [vmem:[#allocation4 + $0x404] ss:$16 sps:$4 sm:$0xff]  }
 0x23b   :  { %2936 = vmatprep.mubr.bf16.mxu1 %v9501_v46  ;;  %3481 = vmatprep.mubr.bf16.mxu0 %v9505_v16  ;;  %v9561_v46 = vld [vmem:[#allocation4 + $0x30c] ss:$16 sps:$4 sm:$0xff]  }
 0x242   :  { %2937 = vmatmul.mubr.bf16.gmra.mxu1 %v9506_v47  ;;  %3482 = vmatmul.mubr.bf16.gmra.mxu0 %v9503_v49 }
 0x243   :  { %2944 = vmatprep.mubr.bf16.mxu1 %v9507_v44  ;;  %3489 = vmatprep.mubr.bf16.mxu0 %v9511_v35  ;;  %v9556_v35 = vld [vmem:[#allocation4 + $0x400] ss:$16 sps:$4 sm:$0xff]  }
 0x24a   :  { %v10549_v55 = vpop.f32.mrf.mxu1  ;;  %2945 = vmatmul.mubr.bf16.gmra.mxu1 %v9512_v52  ;;  %3490 = vmatmul.mubr.bf16.gmra.mxu0 %v9509_v51  ;;  %v9559_v51 = vld [vmem:[#allocation4 + $0x308] ss:$16 sps:$4 sm:$0xff]   ;;  %v9564_v52 = vld [vmem:[#allocation4 + $0x424] ss:$16 sps:$4 sm:$0xff]  }
 0x24b   :  { %2952 = vmatprep.mubr.bf16.mxu1 %v9513_v53  ;;  %3497 = vmatprep.mubr.bf16.mxu0 %v9517_v54  ;;  %v9567_v53 = vld [vmem:[#allocation4 + $0x32c] ss:$16 sps:$4 sm:$0xff]  }
 0x24c   :  { %v2756_v56 = vpop.f32.mrf.mxu1 }
 0x24e   :  { %v10551_v38 = vpop.f32.mrf.mxu1 }
 0x250   :  { %v2759_v37 = vpop.f32.mrf.mxu1 }
 0x252   :  { %v10553_v59 = vpop.f32.mrf.mxu1  ;;  %2953 = vmatmul.mubr.bf16.gmra.mxu1 %v9518_v30  ;;  %3498 = vmatmul.mubr.bf16.gmra.mxu0 %v9515_v57 }
 0x253   :  { %2960 = vmatprep.mubr.bf16.mxu1 %v9519_v7  ;;  %3505 = vmatprep.mubr.bf16.mxu0 %v9523_v58 }
 0x254   :  { %v2764_v61 = vpop.f32.mrf.mxu1 }
 0x256   :  { %v10555_v60 = vpop.f32.mrf.mxu1 }
 0x258   :  { %v2767_v50 = vpop.f32.mrf.mxu1 }
 0x259   :  { %v9573_v50 = vld [vmem:[#allocation4 + $0x34c] ss:$16 sps:$4 sm:$0xff]  }
 0x25a   :  { %v10557_v11 = vpop.f32.mrf.mxu1  ;;  %2961 = vmatmul.mubr.bf16.gmra.mxu1 %v9524_v63  ;;  %3506 = vmatmul.mubr.bf16.gmra.mxu0 %v9521_v39  ;;  %v9562_v39 = vld [vmem:[#allocation4 + $0x420] ss:$16 sps:$4 sm:$0xff]   ;;  %v9565_v63 = vld [vmem:[#allocation4 + $0x328] ss:$16 sps:$4 sm:$0xff]  }
 0x25b   :  { %2968 = vmatprep.mubr.bf16.mxu1 %v9525_v0  ;;  %3513 = vmatprep.mubr.bf16.mxu0 %v9529_v1  ;;  %v9570_v1 = vld [vmem:[#allocation4 + $0x444] ss:$16 sps:$4 sm:$0xff]  }
 0x25c   :  { %v2772_v4 = vpop.f32.mrf.mxu1 }
 0x25e   :  { %v10559_v5 = vpop.f32.mrf.mxu1 }
 0x260   :  { %v2775_v9 = vpop.f32.mrf.mxu1 }
 0x262   :  { %v10561_v10 = vpop.f32.mrf.mxu1  ;;  %2969 = vmatmul.mubr.bf16.gmra.mxu1 %v9530_v2  ;;  %3514 = vmatmul.mubr.bf16.gmra.mxu0 %v9527_v6 }
 0x263   :  { %2976 = vmatprep.mubr.bf16.mxu1 %v9533_v43  ;;  %3521 = vmatprep.mubr.bf16.mxu0 %v9536_v8 }
 0x264   :  { %v2780_v13 = vpop.f32.mrf.mxu1 }
 0x266   :  { %v10563_v14 = vpop.f32.mrf.mxu1 }
 0x268   :  { %v2783_v20 = vpop.f32.mrf.mxu1 }
 0x269   :  { %v9576_v20 = vld [vmem:[#allocation4 + $0x464] ss:$16 sps:$4 sm:$0xff]  }
 0x26a   :  { %v10565_v19 = vpop.f32.mrf.mxu1  ;;  %2977 = vmatmul.mubr.bf16.gmra.mxu1 %v9531_v23  ;;  %3522 = vmatmul.mubr.bf16.gmra.mxu0 %v9534_v62  ;;  %v9568_v62 = vld [vmem:[#allocation4 + $0x440] ss:$16 sps:$4 sm:$0xff]  }
 0x26b   :  { %2984 = vmatprep.mubr.bf16.mxu1 %v9539_v15  ;;  %3529 = vmatprep.mubr.bf16.mxu0 %v9542_v18  ;;  %v9571_v15 = vld [vmem:[#allocation4 + $0x348] ss:$16 sps:$4 sm:$0xff]  }
 0x26c   :  { %v2788_v12 = vpop.f32.mrf.mxu1 }
 0x26d   :  { %v9579_v12 = vld [vmem:[#allocation4 + $0x36c] ss:$16 sps:$4 sm:$0xff]  }
 0x26e   :  { %v10567_v21 = vpop.f32.mrf.mxu1 }
 0x270   :  { %v2791_v27 = vpop.f32.mrf.mxu1 }
 0x272   :  { %v10569_v31 = vpop.f32.mrf.mxu1  ;;  %2985 = vmatmul.mubr.bf16.gmra.mxu1 %v9537_v22  ;;  %3530 = vmatmul.mubr.bf16.gmra.mxu0 %v9540_v3 }
 0x273   :  { %2992 = vmatprep.mubr.bf16.mxu1 %v9546_v24  ;;  %3537 = vmatprep.mubr.bf16.mxu0 %v9549_v26 }
 0x274   :  { %v2796_v36 = vpop.f32.mrf.mxu1 }
 0x276   :  { %v10571_v28 = vpop.f32.mrf.mxu1 }
 0x278   :  { %v2799_v32 = vpop.f32.mrf.mxu1 }
 0x27a   :  { %v10573_v42 = vpop.f32.mrf.mxu1  ;;  %2993 = vmatmul.mubr.bf16.gmra.mxu1 %v9544_v33  ;;  %3538 = vmatmul.mubr.bf16.gmra.mxu0 %v9547_v48 }
 0x27b   :  { %3000 = vmatprep.mubr.bf16.mxu1 %v9552_v34  ;;  %3545 = vmatprep.mubr.bf16.mxu0 %v9555_v41  ;;  %v9574_v34 = vld [vmem:[#allocation4 + $0x460] ss:$16 sps:$4 sm:$0xff]   ;;  %v9577_v41 = vld [vmem:[#allocation4 + $0x368] ss:$16 sps:$4 sm:$0xff]  }
 0x27c   :  { %v2804_v17 = vpop.f32.mrf.mxu1 }
 0x27d   :  { %v9582_v17 = vld [vmem:[#allocation4 + $0x484] ss:$16 sps:$4 sm:$0xff]  }
 0x27e   :  { %v10575_v40 = vpop.f32.mrf.mxu1 }
 0x280   :  { %v2807_v16 = vpop.f32.mrf.mxu1 }
 0x282   :  { %v10577_v49 = vpop.f32.mrf.mxu1  ;;  %3001 = vmatmul.mubr.bf16.gmra.mxu1 %v9550_v45  ;;  %3546 = vmatmul.mubr.bf16.gmra.mxu0 %v9553_v29  ;;  %v9585_v45 = vld [vmem:[#allocation4 + $0x38c] ss:$16 sps:$4 sm:$0xff]  }
 0x283   :  { %3008 = vmatprep.mubr.bf16.mxu1 %v9558_v25  ;;  %3553 = vmatprep.mubr.bf16.mxu0 %v9561_v46 }
 0x284   :  { %v2812_v47 = vpop.f32.mrf.mxu1 }
 0x286   :  { %v10579_v44 = vpop.f32.mrf.mxu1 }
 0x288   :  { %v2815_v54 = vpop.f32.mrf.mxu1 }
 0x289   :  { %v9583_v54 = vld [vmem:[#allocation4 + $0x388] ss:$16 sps:$4 sm:$0xff]  }
 0x28a   :  { %v10581_v56 = vpop.f32.mrf.mxu1  ;;  %3009 = vmatmul.mubr.bf16.gmra.mxu1 %v9556_v35  ;;  %v3363_v57 = vpop.f32.mrf.mxu0  ;;  %3554 = vmatmul.mubr.bf16.gmra.mxu0 %v9559_v51 }
 0x28b   :  { %v10584_v30 = vadd.f32 %v3363_v57, %v10549_v55  ;;  %3016 = vmatprep.mubr.bf16.mxu1 %v9564_v52  ;;  %3561 = vmatprep.mubr.bf16.mxu0 %v9567_v53  ;;  %v9580_v53 = vld [vmem:[#allocation4 + $0x480] ss:$16 sps:$4 sm:$0xff]  }
 0x28c   :  { %v2820_v7 = vpop.f32.mrf.mxu1  ;;  %v3365_v58 = vpop.f32.mrf.mxu0 }
 0x28d   :  { %v9588_v7 = vld [vmem:[#allocation4 + $0x4a4] ss:$16 sps:$4 sm:$0xff]   ;;  %v9591_v58 = vld [vmem:[#allocation4 + $0x3ac] ss:$16 sps:$4 sm:$0xff]  }
 0x28e   :  { %v10586_v37 = vpop.f32.mrf.mxu1  ;;  %v3366_v61 = vpop.f32.mrf.mxu0 }
 0x28f   :  { %v10589_v0 = vadd.f32 %v3366_v61, %v10551_v38 }
 0x290   :  { %v2823_v4 = vpop.f32.mrf.mxu1  ;;  %v3368_v6 = vpop.f32.mrf.mxu0 }
 0x292   :  { %v10593_v2 = vpop.f32.mrf.mxu1  ;;  %3017 = vmatmul.mubr.bf16.gmra.mxu1 %v9562_v39  ;;  %v3371_v43 = vpop.f32.mrf.mxu0  ;;  %3562 = vmatmul.mubr.bf16.gmra.mxu0 %v9565_v63 }
 0x293   :  { %v10596_v8 = vadd.f32 %v3371_v43, %v10553_v59  ;;  %3024 = vmatprep.mubr.bf16.mxu1 %v9570_v1  ;;  %3569 = vmatprep.mubr.bf16.mxu0 %v9573_v50  ;;  %v9651_v59 = vld [vmem:[#allocation4 + $0x4ec] ss:$16 sps:$4 sm:$0xff]  }
 0x294   :  { %v2828_v9 = vpop.f32.mrf.mxu1  ;;  %v3373_v38 = vpop.f32.mrf.mxu0 }
 0x295   :  { %v9586_v9 = vld [vmem:[#allocation4 + $0x4a0] ss:$16 sps:$4 sm:$0xff]   ;;  %v9589_v38 = vld [vmem:[#allocation4 + $0x3a8] ss:$16 sps:$4 sm:$0xff]  }
 0x296   :  { %v10598_v13 = vpop.f32.mrf.mxu1  ;;  %v3374_v23 = vpop.f32.mrf.mxu0 }
 0x297   :  { %v10601_v18 = vadd.f32 %v3374_v23, %v10555_v60 }
 0x298   :  { %v2831_v22 = vpop.f32.mrf.mxu1  ;;  %v3376_v3 = vpop.f32.mrf.mxu0 }
 0x29a   :  { %v10605_v24 = vpop.f32.mrf.mxu1  ;;  %3025 = vmatmul.mubr.bf16.gmra.mxu1 %v9568_v62  ;;  %v3379_v26 = vpop.f32.mrf.mxu0  ;;  %3570 = vmatmul.mubr.bf16.gmra.mxu0 %v9571_v15  ;;  %v9594_v62 = vld [vmem:[#allocation4 + $0x4c4] ss:$16 sps:$4 sm:$0xff]   ;;  %v9597_v15 = vld [vmem:[#allocation4 + $0x3cc] ss:$16 sps:$4 sm:$0xff]  }
 0x29b   :  { %v10608_v27 = vadd.f32 %v3379_v26, %v10557_v11  ;;  %3032 = vmatprep.mubr.bf16.mxu1 %v9576_v20  ;;  %3577 = vmatprep.mubr.bf16.mxu0 %v9579_v12  ;;  %v9648_v11 = vld [vmem:[#allocation4 + $0x5e4] ss:$16 sps:$4 sm:$0xff]  }
 0x29c   :  { %v2836_v36 = vpop.f32.mrf.mxu1  ;;  %v3381_v60 = vpop.f32.mrf.mxu0 }
 0x29e   :  { %v10610_v33 = vpop.f32.mrf.mxu1  ;;  %v3382_v48 = vpop.f32.mrf.mxu0 }
 0x29f   :  { %v10613_v32 = vadd.f32 %v3382_v48, %v10559_v5 }
 0x2a0   :  { %v2839_v29 = vpop.f32.mrf.mxu1  ;;  %v3384_v25 = vpop.f32.mrf.mxu0 }
 0x2a1   :  { %v9603_v29 = vld [vmem:[#allocation4 + $0x3ec] ss:$16 sps:$4 sm:$0xff]  }
 0x2a2   :  { %v10617_v46 = vpop.f32.mrf.mxu1  ;;  %3033 = vmatmul.mubr.bf16.gmra.mxu1 %v9574_v34  ;;  %v3387_v16 = vpop.f32.mrf.mxu0  ;;  %3578 = vmatmul.mubr.bf16.gmra.mxu0 %v9577_v41  ;;  %v9592_v34 = vld [vmem:[#allocation4 + $0x4c0] ss:$16 sps:$4 sm:$0xff]   ;;  %v9595_v41 = vld [vmem:[#allocation4 + $0x3c8] ss:$16 sps:$4 sm:$0xff]  }
 0x2a3   :  { %v10620_v47 = vadd.f32 %v3387_v16, %v10561_v10  ;;  %3040 = vmatprep.mubr.bf16.mxu1 %v9582_v17  ;;  %3585 = vmatprep.mubr.bf16.mxu0 %v9585_v45  ;;  %v9600_v45 = vld [vmem:[#allocation4 + $0x4e4] ss:$16 sps:$4 sm:$0xff]  }
 0x2a4   :  { %v2844_v35 = vpop.f32.mrf.mxu1  ;;  %v3389_v5 = vpop.f32.mrf.mxu0 }
 0x2a6   :  { %v10622_v51 = vpop.f32.mrf.mxu1  ;;  %v3390_v52 = vpop.f32.mrf.mxu0 }
 0x2a7   :  { %v10625_v57 = vadd.f32 %v3390_v52, %v10563_v14 }
 0x2a8   :  { %v2847_v61 = vpop.f32.mrf.mxu1  ;;  %v3392_v39 = vpop.f32.mrf.mxu0 }
 0x2a9   :  { %v9601_v61 = vld [vmem:[#allocation4 + $0x3e8] ss:$16 sps:$4 sm:$0xff]  }
 0x2aa   :  { %v10629_v63 = vpop.f32.mrf.mxu1  ;;  %3041 = vmatmul.mubr.bf16.gmra.mxu1 %v9580_v53  ;;  %v3395_v1 = vpop.f32.mrf.mxu0  ;;  %3586 = vmatmul.mubr.bf16.gmra.mxu0 %v9583_v54 }
 0x2ab   :  { %v10632_v50 = vadd.f32 %v3395_v1, %v10565_v19  ;;  %3048 = vmatprep.mubr.bf16.mxu1 %v9588_v7  ;;  %3593 = vmatprep.mubr.bf16.mxu0 %v9591_v58  ;;  %v9598_v58 = vld [vmem:[#allocation4 + $0x4e0] ss:$16 sps:$4 sm:$0xff]   ;;  %v9606_v1 = vld [vmem:[#allocation4 + $0x504] ss:$16 sps:$4 sm:$0xff]   ;;  %v9645_v19 = vld [vmem:[#allocation4 + $0x4cc] ss:$16 sps:$4 sm:$0xff]  }
 0x2ac   :  { %v2852_v4 = vpop.f32.mrf.mxu1  ;;  %v3397_v14 = vpop.f32.mrf.mxu0 }
 0x2ad   :  { %v9609_v4 = vld [vmem:[#allocation4 + $0x40c] ss:$16 sps:$4 sm:$0xff]  }
 0x2ae   :  { %v10634_v6 = vpop.f32.mrf.mxu1  ;;  %v3398_v43 = vpop.f32.mrf.mxu0 }
 0x2af   :  { %v10637_v23 = vadd.f32 %v3398_v43, %v10567_v21 }
 0x2b0   :  { %v2855_v20 = vpop.f32.mrf.mxu1  ;;  %v3400_v12 = vpop.f32.mrf.mxu0 }
 0x2b2   :  { %v10641_v22 = vpop.f32.mrf.mxu1  ;;  %3049 = vmatmul.mubr.bf16.gmra.mxu1 %v9586_v9  ;;  %v3403_v3 = vpop.f32.mrf.mxu0  ;;  %3594 = vmatmul.mubr.bf16.gmra.mxu0 %v9589_v38 }
 0x2b3   :  { %v10644_v26 = vadd.f32 %v3403_v3, %v10569_v31  ;;  %3056 = vmatprep.mubr.bf16.mxu1 %v9594_v62  ;;  %3601 = vmatprep.mubr.bf16.mxu0 %v9597_v15  ;;  %v9604_v3 = vld [vmem:[#allocation4 + $0x500] ss:$16 sps:$4 sm:$0xff]   ;;  %v9642_v31 = vld [vmem:[#allocation4 + $0x5c4] ss:$16 sps:$4 sm:$0xff]  }
 0x2b4   :  { %v2860_v36 = vpop.f32.mrf.mxu1  ;;  %v3405_v21 = vpop.f32.mrf.mxu0 }
 0x2b5   :  { %v9607_v36 = vld [vmem:[#allocation4 + $0x408] ss:$16 sps:$4 sm:$0xff]  }
 0x2b6   :  { %v10646_v60 = vpop.f32.mrf.mxu1  ;;  %v3406_v48 = vpop.f32.mrf.mxu0 }
 0x2b7   :  { %v10649_v17 = vadd.f32 %v3406_v48, %v10571_v28  ;;  %v9612_v48 = vld [vmem:[#allocation4 + $0x524] ss:$16 sps:$4 sm:$0xff]  }
 0x2b8   :  { %v2863_v25 = vpop.f32.mrf.mxu1  ;;  %v3408_v16 = vpop.f32.mrf.mxu0 }
 0x2ba   :  { %v10653_v35 = vpop.f32.mrf.mxu1  ;;  %3057 = vmatmul.mubr.bf16.gmra.mxu1 %v9592_v34  ;;  %v3411_v5 = vpop.f32.mrf.mxu0  ;;  %3602 = vmatmul.mubr.bf16.gmra.mxu0 %v9595_v41  ;;  %v9615_v34 = vld [vmem:[#allocation4 + $0x42c] ss:$16 sps:$4 sm:$0xff]  }
 0x2bb   :  { %v10656_v52 = vadd.f32 %v3411_v5, %v10573_v42  ;;  %3064 = vmatprep.mubr.bf16.mxu1 %v9600_v45  ;;  %3609 = vmatprep.mubr.bf16.mxu0 %v9603_v29 }
 0x2bc   :  { %v2868_v53 = vpop.f32.mrf.mxu1  ;;  %v3413_v28 = vpop.f32.mrf.mxu0 }
 0x2be   :  { %v10658_v54 = vpop.f32.mrf.mxu1  ;;  %v3414_v7 = vpop.f32.mrf.mxu0 }
 0x2bf   :  { %v10661_v39 = vadd.f32 %v3414_v7, %v10575_v40  ;;  %v9610_v7 = vld [vmem:[#allocation4 + $0x520] ss:$16 sps:$4 sm:$0xff]  }
 0x2c0   :  { %v2871_v14 = vpop.f32.mrf.mxu1  ;;  %v3416_v43 = vpop.f32.mrf.mxu0 }
 0x2c2   :  { %v10665_v9 = vpop.f32.mrf.mxu1  ;;  %3065 = vmatmul.mubr.bf16.gmra.mxu1 %v9598_v58  ;;  %v3419_v38 = vpop.f32.mrf.mxu0  ;;  %3610 = vmatmul.mubr.bf16.gmra.mxu0 %v9601_v61  ;;  %v9613_v58 = vld [vmem:[#allocation4 + $0x428] ss:$16 sps:$4 sm:$0xff]  }
 0x2c3   :  { %v10668_v62 = vadd.f32 %v3419_v38, %v10577_v49  ;;  %3072 = vmatprep.mubr.bf16.mxu1 %v9606_v1  ;;  %3617 = vmatprep.mubr.bf16.mxu0 %v9609_v4  ;;  %v9618_v1 = vld [vmem:[#allocation4 + $0x544] ss:$16 sps:$4 sm:$0xff]   ;;  %v9621_v4 = vld [vmem:[#allocation4 + $0x44c] ss:$16 sps:$4 sm:$0xff]  }
 0x2c4   :  { %v2876_v15 = vpop.f32.mrf.mxu1  ;;  %v3421_v40 = vpop.f32.mrf.mxu0  ;;  %v9639_v49 = vld [vmem:[#allocation4 + $0x4ac] ss:$16 sps:$4 sm:$0xff]  }
 0x2c5   :  { %12144 = vst [vmem:[#allocation20_spill] sm:$0xff] %v10668_v62 }
 0x2c6   :  { %v10670_v20 = vpop.f32.mrf.mxu1  ;;  %v3422_v12 = vpop.f32.mrf.mxu0 }
 0x2c7   :  { %v10673_v21 = vadd.f32 %v3422_v12, %v10579_v44 }
 0x2c8   :  { %v2879_v41 = vpop.f32.mrf.mxu1  ;;  %v3424_v45 = vpop.f32.mrf.mxu0 }
 0x2c9   :  { %12145 = vst [vmem:[#allocation21_spill] sm:$0xff] %v10673_v21  ;;  %v9624_v45 = vld [vmem:[#allocation4 + $0x564] ss:$16 sps:$4 sm:$0xff]  }
 0x2ca   :  { %v10677_v29 = vpop.f32.mrf.mxu1  ;;  %3073 = vmatmul.mubr.bf16.gmra.mxu1 %v9604_v3  ;;  %v3427_v25 = vpop.f32.mrf.mxu0  ;;  %3618 = vmatmul.mubr.bf16.gmra.mxu0 %v9607_v36 }
 0x2cb   :  { %v10680_v16 = vadd.f32 %v3427_v25, %v10581_v56  ;;  %3080 = vmatprep.mubr.bf16.mxu1 %v9612_v48  ;;  %3625 = vmatprep.mubr.bf16.mxu0 %v9615_v34  ;;  %v9616_v48 = vld [vmem:[#allocation4 + $0x540] ss:$16 sps:$4 sm:$0xff]   ;;  %v9619_v34 = vld [vmem:[#allocation4 + $0x448] ss:$16 sps:$4 sm:$0xff]   ;;  %v9627_v25 = vld [vmem:[#allocation4 + $0x46c] ss:$16 sps:$4 sm:$0xff]  }
 0x2cc   :  { %v2884_v5 = vpop.f32.mrf.mxu1  ;;  %v3429_v44 = vpop.f32.mrf.mxu0  ;;  %v9669_v56 = vld [vmem:[#allocation4 + $0x54c] ss:$16 sps:$4 sm:$0xff]  }
 0x2ce   :  { %v10682_v53 = vpop.f32.mrf.mxu1  ;;  %v3430_v28 = vpop.f32.mrf.mxu0 }
 0x2cf   :  { %v10685_v61 = vadd.f32 %v3430_v28, %v10586_v37 }
 0x2d0   :  { %v2887_v14 = vpop.f32.mrf.mxu1  ;;  %v3432_v43 = vpop.f32.mrf.mxu0 }
 0x2d1   :  { %v9622_v43 = vld [vmem:[#allocation4 + $0x560] ss:$16 sps:$4 sm:$0xff]  }
 0x2d2   :  { %v10689_v38 = vpop.f32.mrf.mxu1  ;;  %3081 = vmatmul.mubr.bf16.gmra.mxu1 %v9610_v7  ;;  %v3435_v15 = vpop.f32.mrf.mxu0  ;;  %3626 = vmatmul.mubr.bf16.gmra.mxu0 %v9613_v58 }
 0x2d3   :  { %v10692_v40 = vadd.f32 %v3435_v15, %v10593_v2  ;;  %3088 = vmatprep.mubr.bf16.mxu1 %v9618_v1  ;;  %3633 = vmatprep.mubr.bf16.mxu0 %v9621_v4  ;;  %v9625_v15 = vld [vmem:[#allocation4 + $0x468] ss:$16 sps:$4 sm:$0xff]  }
 0x2d4   :  { %v2892_v12 = vpop.f32.mrf.mxu1  ;;  %v3437_v37 = vpop.f32.mrf.mxu0 }
 0x2d5   :  { %v9630_v37 = vld [vmem:[#allocation4 + $0x584] ss:$16 sps:$4 sm:$0xff]  }
 0x2d6   :  { %v10694_v3 = vpop.f32.mrf.mxu1  ;;  %v3438_v36 = vpop.f32.mrf.mxu0 }
 0x2d7   :  { %v10697_v41 = vadd.f32 %v3438_v36, %v10598_v13  ;;  %v9633_v36 = vld [vmem:[#allocation4 + $0x48c] ss:$16 sps:$4 sm:$0xff]  }
 0x2d8   :  { %v2895_v5 = vpop.f32.mrf.mxu1  ;;  %v3440_v44 = vpop.f32.mrf.mxu0 }
 0x2da   :  { %v10701_v28 = vpop.f32.mrf.mxu1  ;;  %3089 = vmatmul.mubr.bf16.gmra.mxu1 %v9616_v48  ;;  %v3443_v7 = vpop.f32.mrf.mxu0  ;;  %3634 = vmatmul.mubr.bf16.gmra.mxu0 %v9619_v34 }
 0x2db   :  { %v10704_v58 = vadd.f32 %v3443_v7, %v10605_v24  ;;  %3096 = vmatprep.mubr.bf16.mxu1 %v9624_v45  ;;  %3641 = vmatprep.mubr.bf16.mxu0 %v9627_v25  ;;  %v9663_v24 = vld [vmem:[#allocation4 + $0x52c] ss:$16 sps:$4 sm:$0xff]  }
 0x2dc   :  { %v2900_v1 = vpop.f32.mrf.mxu1  ;;  %v3445_v13 = vpop.f32.mrf.mxu0 }
 0x2dd   :  { %v9628_v13 = vld [vmem:[#allocation4 + $0x580] ss:$16 sps:$4 sm:$0xff]  }
 0x2de   :  { %v10706_v4 = vpop.f32.mrf.mxu1  ;;  %v3446_v14 = vpop.f32.mrf.mxu0 }
 0x2df   :  { %v10709_v12 = vadd.f32 %v3446_v14, %v10610_v33  ;;  %v9631_v14 = vld [vmem:[#allocation4 + $0x488] ss:$16 sps:$4 sm:$0xff]  }
 0x2e0   :  { %v2903_v48 = vpop.f32.mrf.mxu1  ;;  %v3448_v5 = vpop.f32.mrf.mxu0 }
 0x2e1   :  { %v9636_v5 = vld [vmem:[#allocation4 + $0x5a4] ss:$16 sps:$4 sm:$0xff]  }
 0x2e2   :  { %v10713_v34 = vpop.f32.mrf.mxu1  ;;  %3097 = vmatmul.mubr.bf16.gmra.mxu1 %v9622_v43  ;;  %v3451_v45 = vpop.f32.mrf.mxu0  ;;  %3642 = vmatmul.mubr.bf16.gmra.mxu0 %v9625_v15 }
 0x2e3   :  { %v10716_v25 = vadd.f32 %v3451_v45, %v10617_v46  ;;  %3104 = vmatprep.mubr.bf16.mxu1 %v9630_v37  ;;  %3649 = vmatprep.mubr.bf16.mxu0 %v9633_v36 }
 0x2e4   :  { %v2908_v44 = vpop.f32.mrf.mxu1  ;;  %v3453_v33 = vpop.f32.mrf.mxu0 }
 0x2e6   :  { %v10718_v7 = vpop.f32.mrf.mxu1  ;;  %v3454_v1 = vpop.f32.mrf.mxu0 }
 0x2e7   :  { %v10721_v48 = vadd.f32 %v3454_v1, %v10622_v51  ;;  %v9634_v1 = vld [vmem:[#allocation4 + $0x5a0] ss:$16 sps:$4 sm:$0xff]  }
 0x2e8   :  { %v2911_v43 = vpop.f32.mrf.mxu1  ;;  %v3456_v42 = vpop.f32.mrf.mxu0 }
 0x2e9   :  { %v9637_v42 = vld [vmem:[#allocation4 + $0x4a8] ss:$16 sps:$4 sm:$0xff]  }
 0x2ea   :  { %v10725_v15 = vpop.f32.mrf.mxu1  ;;  %3105 = vmatmul.mubr.bf16.gmra.mxu1 %v9628_v13  ;;  %v3459_v37 = vpop.f32.mrf.mxu0  ;;  %3650 = vmatmul.mubr.bf16.gmra.mxu0 %v9631_v14 }
 0x2eb   :  { %v10728_v36 = vadd.f32 %v3459_v37, %v10629_v63  ;;  %3112 = vmatprep.mubr.bf16.mxu1 %v9636_v5  ;;  %3657 = vmatprep.mubr.bf16.mxu0 %v9639_v49  ;;  %v9657_v63 = vld [vmem:[#allocation4 + $0x50c] ss:$16 sps:$4 sm:$0xff]  }
 0x2ec   :  { %v2916_v45 = vpop.f32.mrf.mxu1  ;;  %v3461_v51 = vpop.f32.mrf.mxu0 }
 0x2ee   :  { %v10730_v44 = vpop.f32.mrf.mxu1  ;;  %v3462_v33 = vpop.f32.mrf.mxu0 }
 0x2ef   :  { %v10733_v43 = vadd.f32 %v3462_v33, %v10634_v6  ;;  %v9640_v33 = vld [vmem:[#allocation4 + $0x5c0] ss:$16 sps:$4 sm:$0xff]  }
 0x2f0   :  { %v2919_v13 = vpop.f32.mrf.mxu1  ;;  %v3464_v10 = vpop.f32.mrf.mxu0 }
 0x2f1   :  { %v9643_v10 = vld [vmem:[#allocation4 + $0x4c8] ss:$16 sps:$4 sm:$0xff]  }
 0x2f2   :  { %v10737_v14 = vpop.f32.mrf.mxu1  ;;  %3113 = vmatmul.mubr.bf16.gmra.mxu1 %v9634_v1  ;;  %v3467_v49 = vpop.f32.mrf.mxu0  ;;  %3658 = vmatmul.mubr.bf16.gmra.mxu0 %v9637_v42 }
 0x2f3   :  { %v10740_v5 = vadd.f32 %v3467_v49, %v10641_v22  ;;  %3120 = vmatprep.mubr.bf16.mxu1 %v9642_v31  ;;  %3665 = vmatprep.mubr.bf16.mxu0 %v9645_v19  ;;  %v9654_v22 = vld [vmem:[#allocation4 + $0x604] ss:$16 sps:$4 sm:$0xff]  }
 0x2f4   :  { %v2924_v37 = vpop.f32.mrf.mxu1  ;;  %v3469_v6 = vpop.f32.mrf.mxu0 }
 0x2f6   :  { %v10742_v45 = vpop.f32.mrf.mxu1  ;;  %v3470_v51 = vpop.f32.mrf.mxu0 }
 0x2f7   :  { %v10745_v13 = vadd.f32 %v3470_v51, %v10646_v60  ;;  %v9646_v51 = vld [vmem:[#allocation4 + $0x5e0] ss:$16 sps:$4 sm:$0xff]  }
 0x2f8   :  { %v2927_v1 = vpop.f32.mrf.mxu1  ;;  %v3472_v55 = vpop.f32.mrf.mxu0 }
 0x2f9   :  { %v9649_v55 = vld [vmem:[#allocation4 + $0x4e8] ss:$16 sps:$4 sm:$0xff]  }
 0x2fa   :  { %v10749_v42 = vpop.f32.mrf.mxu1  ;;  %3121 = vmatmul.mubr.bf16.gmra.mxu1 %v9640_v33  ;;  %v3475_v19 = vpop.f32.mrf.mxu0  ;;  %3666 = vmatmul.mubr.bf16.gmra.mxu0 %v9643_v10 }
 0x2fb   :  { %v10752_v31 = vadd.f32 %v3475_v19, %v10653_v35  ;;  %3128 = vmatprep.mubr.bf16.mxu1 %v9648_v11  ;;  %3673 = vmatprep.mubr.bf16.mxu0 %v9651_v59  ;;  %v9660_v35 = vld [vmem:[#allocation4 + $0x624] ss:$16 sps:$4 sm:$0xff]  }
 0x2fc   :  { %v2932_v49 = vpop.f32.mrf.mxu1  ;;  %v3477_v60 = vpop.f32.mrf.mxu0 }
 0x2fe   :  { %v10754_v37 = vpop.f32.mrf.mxu1  ;;  %v3478_v6 = vpop.f32.mrf.mxu0 }
 0x2ff   :  { %v10757_v1 = vadd.f32 %v3478_v6, %v10658_v54  ;;  %v9652_v6 = vld [vmem:[#allocation4 + $0x600] ss:$16 sps:$4 sm:$0xff]  }
 0x300   :  { %v2935_v33 = vpop.f32.mrf.mxu1  ;;  %v3480_v46 = vpop.f32.mrf.mxu0 }
 0x301   :  { %v9655_v46 = vld [vmem:[#allocation4 + $0x508] ss:$16 sps:$4 sm:$0xff]  }
 0x302   :  { %v10761_v10 = vpop.f32.mrf.mxu1  ;;  %3129 = vmatmul.mubr.bf16.gmra.mxu1 %v9646_v51  ;;  %v3483_v59 = vpop.f32.mrf.mxu0  ;;  %3674 = vmatmul.mubr.bf16.gmra.mxu0 %v9649_v55 }
 0x303   :  { %v10764_v11 = vadd.f32 %v3483_v59, %v10665_v9  ;;  %3136 = vmatprep.mubr.bf16.mxu1 %v9654_v22  ;;  %3681 = vmatprep.mubr.bf16.mxu0 %v9657_v63  ;;  %v9666_v9 = vld [vmem:[#allocation4 + $0x644] ss:$16 sps:$4 sm:$0xff]  }
 0x304   :  { %v2940_v19 = vpop.f32.mrf.mxu1  ;;  %v3485_v54 = vpop.f32.mrf.mxu0 }
 0x306   :  { %v10766_v49 = vpop.f32.mrf.mxu1  ;;  %v3486_v60 = vpop.f32.mrf.mxu0 }
 0x307   :  { %v10769_v33 = vadd.f32 %v3486_v60, %v10670_v20  ;;  %v9658_v60 = vld [vmem:[#allocation4 + $0x620] ss:$16 sps:$4 sm:$0xff]  }
 0x308   :  { %v2943_v51 = vpop.f32.mrf.mxu1  ;;  %v3488_v2 = vpop.f32.mrf.mxu0 }
 0x309   :  { %v9661_v2 = vld [vmem:[#allocation4 + $0x528] ss:$16 sps:$4 sm:$0xff]  }
 0x30a   :  { %v10773_v55 = vpop.f32.mrf.mxu1  ;;  %3137 = vmatmul.mubr.bf16.gmra.mxu1 %v9652_v6  ;;  %v3491_v63 = vpop.f32.mrf.mxu0  ;;  %3682 = vmatmul.mubr.bf16.gmra.mxu0 %v9655_v46 }
 0x30b   :  { %v10776_v22 = vadd.f32 %v3491_v63, %v10677_v29  ;;  %3144 = vmatprep.mubr.bf16.mxu1 %v9660_v35  ;;  %3689 = vmatprep.mubr.bf16.mxu0 %v9663_v24  ;;  %v9672_v29 = vld [vmem:[#allocation4 + $0x664] ss:$16 sps:$4 sm:$0xff]  }
 0x30c   :  { %v2948_v59 = vpop.f32.mrf.mxu1  ;;  %v3493_v20 = vpop.f32.mrf.mxu0 }
 0x30d   :  { %12146 = vst [vmem:[#allocation22_spill] sm:$0xff] %v10776_v22  ;;  %v9675_v22 = vld [vmem:[#allocation4 + $0x56c] ss:$16 sps:$4 sm:$0xff]  }
 0x30e   :  { %v10778_v19 = vpop.f32.mrf.mxu1  ;;  %v3494_v54 = vpop.f32.mrf.mxu0 }
 0x30f   :  { %v10781_v51 = vadd.f32 %v3494_v54, %v10682_v53  ;;  %v9664_v54 = vld [vmem:[#allocation4 + $0x640] ss:$16 sps:$4 sm:$0xff]  }
 0x310   :  { %v2951_v6 = vpop.f32.mrf.mxu1  ;;  %v3496_v62 = vpop.f32.mrf.mxu0 }
 0x311   :  { %12147 = vst [vmem:[#allocation23_spill] sm:$0xff] %v10781_v51  ;;  %v9667_v62 = vld [vmem:[#allocation4 + $0x548] ss:$16 sps:$4 sm:$0xff]  }
 0x312   :  { %v10785_v46 = vpop.f32.mrf.mxu1  ;;  %3145 = vmatmul.mubr.bf16.gmra.mxu1 %v9658_v60  ;;  %v3499_v24 = vpop.f32.mrf.mxu0  ;;  %3690 = vmatmul.mubr.bf16.gmra.mxu0 %v9661_v2 }
 0x313   :  { %v10788_v35 = vadd.f32 %v3499_v24, %v10689_v38  ;;  %3152 = vmatprep.mubr.bf16.mxu1 %v9666_v9  ;;  %3697 = vmatprep.mubr.bf16.mxu0 %v9669_v56  ;;  %v9678_v38 = vld [vmem:[#allocation4 + $0x684] ss:$16 sps:$4 sm:$0xff]  }
 0x314   :  { %v2956_v63 = vpop.f32.mrf.mxu1  ;;  %v3501_v53 = vpop.f32.mrf.mxu0 }
 0x315   :  { %12148 = vst [vmem:[#allocation24_spill] sm:$0xff] %v10788_v35  ;;  %v9681_v35 = vld [vmem:[#allocation4 + $0x58c] ss:$16 sps:$4 sm:$0xff]  }
 0x316   :  { %v10790_v59 = vpop.f32.mrf.mxu1  ;;  %v3502_v20 = vpop.f32.mrf.mxu0 }
 0x317   :  { %v10793_v6 = vadd.f32 %v3502_v20, %v10694_v3  ;;  %v9670_v20 = vld [vmem:[#allocation4 + $0x660] ss:$16 sps:$4 sm:$0xff]  }
 0x318   :  { %v2959_v60 = vpop.f32.mrf.mxu1  ;;  %v3504_v51 = vpop.f32.mrf.mxu0 }
 0x319   :  { %12149 = vst [vmem:[#allocation25_spill] sm:$0xff] %v10793_v6  ;;  %v9673_v51 = vld [vmem:[#allocation4 + $0x568] ss:$16 sps:$4 sm:$0xff]  }
 0x31a   :  { %v10797_v2 = vpop.f32.mrf.mxu1  ;;  %3153 = vmatmul.mubr.bf16.gmra.mxu1 %v9664_v54  ;;  %v3507_v56 = vpop.f32.mrf.mxu0  ;;  %3698 = vmatmul.mubr.bf16.gmra.mxu0 %v9667_v62 }
 0x31b   :  { %v10800_v9 = vadd.f32 %v3507_v56, %v10701_v28  ;;  %3160 = vmatprep.mubr.bf16.mxu1 %v9672_v29  ;;  %3705 = vmatprep.mubr.bf16.mxu0 %v9675_v22  ;;  %v9684_v28 = vld [vmem:[#allocation4 + $0x6a4] ss:$16 sps:$4 sm:$0xff]  }
 0x31c   :  { %v2964_v24 = vpop.f32.mrf.mxu1  ;;  %v3509_v3 = vpop.f32.mrf.mxu0 }
 0x31d   :  { %12150 = vst [vmem:[#allocation26_spill] sm:$0xff] %v10800_v9  ;;  %v9687_v9 = vld [vmem:[#allocation4 + $0x5ac] ss:$16 sps:$4 sm:$0xff]  }
 0x31e   :  { %v10802_v63 = vpop.f32.mrf.mxu1  ;;  %v3510_v53 = vpop.f32.mrf.mxu0 }
 0x31f   :  { %v10805_v60 = vadd.f32 %v3510_v53, %v10706_v4  ;;  %v9676_v53 = vld [vmem:[#allocation4 + $0x680] ss:$16 sps:$4 sm:$0xff]  }
 0x320   :  { %v2967_v54 = vpop.f32.mrf.mxu1  ;;  %v3512_v6 = vpop.f32.mrf.mxu0 }
 0x321   :  { %12151 = vst [vmem:[#allocation27_spill] sm:$0xff] %v10805_v60  ;;  %v9679_v6 = vld [vmem:[#allocation4 + $0x588] ss:$16 sps:$4 sm:$0xff]  }
 0x322   :  { %v10809_v62 = vpop.f32.mrf.mxu1  ;;  %3161 = vmatmul.mubr.bf16.gmra.mxu1 %v9670_v20  ;;  %v3515_v22 = vpop.f32.mrf.mxu0  ;;  %3706 = vmatmul.mubr.bf16.gmra.mxu0 %v9673_v51 }
 0x323   :  { %v10812_v29 = vadd.f32 %v3515_v22, %v10713_v34  ;;  %3168 = vmatprep.mubr.bf16.mxu1 %v9678_v38  ;;  %3713 = vmatprep.mubr.bf16.mxu0 %v9681_v35  ;;  %v9690_v34 = vld [vmem:[#allocation4 + $0x6c4] ss:$16 sps:$4 sm:$0xff]  }
 0x324   :  { %v2972_v56 = vpop.f32.mrf.mxu1  ;;  %v3517_v4 = vpop.f32.mrf.mxu0 }
 0x325   :  { %12152 = vst [vmem:[#allocation28_spill] sm:$0xff] %v10812_v29  ;;  %v9693_v29 = vld [vmem:[#allocation4 + $0x5cc] ss:$16 sps:$4 sm:$0xff]  }
 0x326   :  { %v10814_v24 = vpop.f32.mrf.mxu1  ;;  %v3518_v3 = vpop.f32.mrf.mxu0 }
 0x327   :  { %v10817_v54 = vadd.f32 %v3518_v3, %v10718_v7  ;;  %v9682_v3 = vld [vmem:[#allocation4 + $0x6a0] ss:$16 sps:$4 sm:$0xff]  }
 0x328   :  { %v2975_v20 = vpop.f32.mrf.mxu1  ;;  %v3520_v60 = vpop.f32.mrf.mxu0 }
 0x329   :  { %12153 = vst [vmem:[#allocation29_spill] sm:$0xff] %v10817_v54  ;;  %v9685_v60 = vld [vmem:[#allocation4 + $0x5a8] ss:$16 sps:$4 sm:$0xff]  }
 0x32a   :  { %v10821_v51 = vpop.f32.mrf.mxu1  ;;  %3169 = vmatmul.mubr.bf16.gmra.mxu1 %v9676_v53  ;;  %v3523_v35 = vpop.f32.mrf.mxu0  ;;  %3714 = vmatmul.mubr.bf16.gmra.mxu0 %v9679_v6 }
 0x32b   :  { %v10824_v38 = vadd.f32 %v3523_v35, %v10725_v15  ;;  %3176 = vmatprep.mubr.bf16.mxu1 %v9684_v28  ;;  %3721 = vmatprep.mubr.bf16.mxu0 %v9687_v9  ;;  %v9696_v15 = vld [vmem:[#allocation4 + $0x6e4] ss:$16 sps:$4 sm:$0xff]  }
 0x32c   :  { %v2980_v22 = vpop.f32.mrf.mxu1  ;;  %v3525_v7 = vpop.f32.mrf.mxu0 }
 0x32d   :  { %12154 = vst [vmem:[#allocation30_spill] sm:$0xff] %v10824_v38  ;;  %v9699_v38 = vld [vmem:[#allocation4 + $0x5ec] ss:$16 sps:$4 sm:$0xff]  }
 0x32e   :  { %v10826_v56 = vpop.f32.mrf.mxu1  ;;  %v3526_v4 = vpop.f32.mrf.mxu0 }
 0x32f   :  { %v10829_v20 = vadd.f32 %v3526_v4, %v10730_v44  ;;  %v9688_v4 = vld [vmem:[#allocation4 + $0x6c0] ss:$16 sps:$4 sm:$0xff]  }
 0x330   :  { %v2983_v53 = vpop.f32.mrf.mxu1  ;;  %v3528_v54 = vpop.f32.mrf.mxu0 }
 0x331   :  { %12155 = vst [vmem:[#allocation31_spill] sm:$0xff] %v10829_v20  ;;  %v9691_v54 = vld [vmem:[#allocation4 + $0x5c8] ss:$16 sps:$4 sm:$0xff]  }
 0x332   :  { %v10833_v6 = vpop.f32.mrf.mxu1  ;;  %3177 = vmatmul.mubr.bf16.gmra.mxu1 %v9682_v3  ;;  %v3531_v9 = vpop.f32.mrf.mxu0  ;;  %3722 = vmatmul.mubr.bf16.gmra.mxu0 %v9685_v60 }
 0x333   :  { %v10836_v28 = vadd.f32 %v3531_v9, %v10737_v14  ;;  %3184 = vmatprep.mubr.bf16.mxu1 %v9690_v34  ;;  %3729 = vmatprep.mubr.bf16.mxu0 %v9693_v29  ;;  %v9702_v14 = vld [vmem:[#allocation4 + $0x704] ss:$16 sps:$4 sm:$0xff]  }
 0x334   :  { %v2988_v35 = vpop.f32.mrf.mxu1  ;;  %v3533_v44 = vpop.f32.mrf.mxu0 }
 0x335   :  { %12156 = vst [vmem:[#allocation32_spill] sm:$0xff] %v10836_v28  ;;  %v9705_v28 = vld [vmem:[#allocation4 + $0x60c] ss:$16 sps:$4 sm:$0xff]  }
 0x336   :  { %v10838_v22 = vpop.f32.mrf.mxu1  ;;  %v3534_v7 = vpop.f32.mrf.mxu0 }
 0x337   :  { %v10841_v53 = vadd.f32 %v3534_v7, %v10742_v45  ;;  %v9694_v7 = vld [vmem:[#allocation4 + $0x6e0] ss:$16 sps:$4 sm:$0xff]  }
 0x338   :  { %v2991_v3 = vpop.f32.mrf.mxu1  ;;  %v3536_v20 = vpop.f32.mrf.mxu0 }
 0x339   :  { %12157 = vst [vmem:[#allocation33_spill] sm:$0xff] %v10841_v53  ;;  %v9697_v20 = vld [vmem:[#allocation4 + $0x5e8] ss:$16 sps:$4 sm:$0xff]  }
 0x33a   :  { %v10845_v60 = vpop.f32.mrf.mxu1  ;;  %3185 = vmatmul.mubr.bf16.gmra.mxu1 %v9688_v4  ;;  %v3539_v29 = vpop.f32.mrf.mxu0  ;;  %3730 = vmatmul.mubr.bf16.gmra.mxu0 %v9691_v54 }
 0x33b   :  { %v10848_v34 = vadd.f32 %v3539_v29, %v10749_v42  ;;  %3192 = vmatprep.mubr.bf16.mxu1 %v9696_v15  ;;  %3737 = vmatprep.mubr.bf16.mxu0 %v9699_v38  ;;  %v9708_v42 = vld [vmem:[#allocation4 + $0x724] ss:$16 sps:$4 sm:$0xff]  }
 0x33c   :  { %v2996_v9 = vpop.f32.mrf.mxu1  ;;  %v3541_v45 = vpop.f32.mrf.mxu0 }
 0x33d   :  { %12158 = vst [vmem:[#allocation34_spill] sm:$0xff] %v10848_v34  ;;  %v9711_v34 = vld [vmem:[#allocation4 + $0x62c] ss:$16 sps:$4 sm:$0xff]  }
 0x33e   :  { %v10850_v35 = vpop.f32.mrf.mxu1  ;;  %v3542_v44 = vpop.f32.mrf.mxu0 }
 0x33f   :  { %v10853_v3 = vadd.f32 %v3542_v44, %v10754_v37  ;;  %v9700_v44 = vld [vmem:[#allocation4 + $0x700] ss:$16 sps:$4 sm:$0xff]  }
 0x340   :  { %v2999_v4 = vpop.f32.mrf.mxu1  ;;  %v3544_v53 = vpop.f32.mrf.mxu0 }
 0x341   :  { %12159 = vst [vmem:[#allocation35_spill] sm:$0xff] %v10853_v3  ;;  %v9703_v53 = vld [vmem:[#allocation4 + $0x608] ss:$16 sps:$4 sm:$0xff]  }
 0x342   :  { %v10857_v54 = vpop.f32.mrf.mxu1  ;;  %3193 = vmatmul.mubr.bf16.gmra.mxu1 %v9694_v7  ;;  %v3547_v38 = vpop.f32.mrf.mxu0  ;;  %3738 = vmatmul.mubr.bf16.gmra.mxu0 %v9697_v20 }
 0x343   :  { %v10860_v15 = vadd.f32 %v3547_v38, %v10761_v10  ;;  %3200 = vmatprep.mubr.bf16.mxu1 %v9702_v14  ;;  %3745 = vmatprep.mubr.bf16.mxu0 %v9705_v28  ;;  %v9714_v10 = vld [vmem:[#allocation4 + $0x744] ss:$16 sps:$4 sm:$0xff]  }
 0x344   :  { %v3004_v29 = vpop.f32.mrf.mxu1  ;;  %v3549_v37 = vpop.f32.mrf.mxu0 }
 0x345   :  { %12160 = vst [vmem:[#allocation36_spill] sm:$0xff] %v10860_v15  ;;  %v9717_v15 = vld [vmem:[#allocation4 + $0x64c] ss:$16 sps:$4 sm:$0xff]  }
 0x346   :  { %v10862_v9 = vpop.f32.mrf.mxu1  ;;  %v3550_v45 = vpop.f32.mrf.mxu0 }
 0x347   :  { %v10865_v4 = vadd.f32 %v3550_v45, %v10766_v49  ;;  %v9706_v45 = vld [vmem:[#allocation4 + $0x720] ss:$16 sps:$4 sm:$0xff]  }
 0x348   :  { %v3007_v7 = vpop.f32.mrf.mxu1  ;;  %v3552_v3 = vpop.f32.mrf.mxu0 }
 0x349   :  { %12161 = vst [vmem:[#allocation37_spill] sm:$0xff] %v10865_v4  ;;  %v9709_v3 = vld [vmem:[#allocation4 + $0x628] ss:$16 sps:$4 sm:$0xff]  }
 0x34a   :  { %v10869_v20 = vpop.f32.mrf.mxu1  ;;  %3201 = vmatmul.mubr.bf16.gmra.mxu1 %v9700_v44  ;;  %v3555_v28 = vpop.f32.mrf.mxu0  ;;  %3746 = vmatmul.mubr.bf16.gmra.mxu0 %v9703_v53 }
 0x34b   :  { %v10872_v14 = vadd.f32 %v3555_v28, %v10773_v55  ;;  %3208 = vmatprep.mubr.bf16.mxu1 %v9708_v42  ;;  %3753 = vmatprep.mubr.bf16.mxu0 %v9711_v34  ;;  %v9720_v55 = vld [vmem:[#allocation4 + $0x764] ss:$16 sps:$4 sm:$0xff]  }
 0x34c   :  { %v3012_v38 = vpop.f32.mrf.mxu1  ;;  %v3557_v49 = vpop.f32.mrf.mxu0 }
 0x34d   :  { %12162 = vst [vmem:[#allocation38_spill] sm:$0xff] %v10872_v14  ;;  %v9723_v14 = vld [vmem:[#allocation4 + $0x66c] ss:$16 sps:$4 sm:$0xff]  }
 0x34e   :  { %v10874_v29 = vpop.f32.mrf.mxu1  ;;  %v3558_v37 = vpop.f32.mrf.mxu0 }
 0x34f   :  { %v10877_v7 = vadd.f32 %v3558_v37, %v10778_v19  ;;  %v9712_v37 = vld [vmem:[#allocation4 + $0x740] ss:$16 sps:$4 sm:$0xff]  }
 0x350   :  { %v3015_v44 = vpop.f32.mrf.mxu1  ;;  %v3560_v4 = vpop.f32.mrf.mxu0 }
 0x351   :  { %12163 = vst [vmem:[#allocation39_spill] sm:$0xff] %v10877_v7  ;;  %v9715_v4 = vld [vmem:[#allocation4 + $0x648] ss:$16 sps:$4 sm:$0xff]  }
 0x352   :  { %v10881_v53 = vpop.f32.mrf.mxu1  ;;  %3209 = vmatmul.mubr.bf16.gmra.mxu1 %v9706_v45  ;;  %v3563_v34 = vpop.f32.mrf.mxu0  ;;  %3754 = vmatmul.mubr.bf16.gmra.mxu0 %v9709_v3 }
 0x353   :  { %v10884_v42 = vadd.f32 %v3563_v34, %v10785_v46  ;;  %3216 = vmatprep.mubr.bf16.mxu1 %v9714_v10  ;;  %3761 = vmatprep.mubr.bf16.mxu0 %v9717_v15  ;;  %v9726_v46 = vld [vmem:[#allocation4 + $0x784] ss:$16 sps:$4 sm:$0xff]  }
 0x354   :  { %v3020_v28 = vpop.f32.mrf.mxu1  ;;  %v3565_v19 = vpop.f32.mrf.mxu0 }
 0x355   :  { %12164 = vst [vmem:[#allocation40_spill] sm:$0xff] %v10884_v42  ;;  %v9729_v42 = vld [vmem:[#allocation4 + $0x68c] ss:$16 sps:$4 sm:$0xff]  }
 0x356   :  { %v10886_v38 = vpop.f32.mrf.mxu1  ;;  %v3566_v49 = vpop.f32.mrf.mxu0 }
 0x357   :  { %v10889_v44 = vadd.f32 %v3566_v49, %v10790_v59  ;;  %v9718_v49 = vld [vmem:[#allocation4 + $0x760] ss:$16 sps:$4 sm:$0xff]  }
 0x358   :  { %v3023_v45 = vpop.f32.mrf.mxu1  ;;  %v3568_v7 = vpop.f32.mrf.mxu0 }
 0x359   :  { %12165 = vst [vmem:[#allocation41_spill] sm:$0xff] %v10889_v44  ;;  %v9721_v7 = vld [vmem:[#allocation4 + $0x668] ss:$16 sps:$4 sm:$0xff]  }
 0x35a   :  { %v10893_v3 = vpop.f32.mrf.mxu1  ;;  %3217 = vmatmul.mubr.bf16.gmra.mxu1 %v9712_v37  ;;  %v3571_v15 = vpop.f32.mrf.mxu0  ;;  %3762 = vmatmul.mubr.bf16.gmra.mxu0 %v9715_v4 }
 0x35b   :  { %v10896_v10 = vadd.f32 %v3571_v15, %v10797_v2  ;;  %3224 = vmatprep.mubr.bf16.mxu1 %v9720_v55  ;;  %3769 = vmatprep.mubr.bf16.mxu0 %v9723_v14  ;;  %v9735_v2 = vld [vmem:[#allocation4 + $0x6ac] ss:$16 sps:$4 sm:$0xff]  }
 0x35c   :  { %v3028_v34 = vpop.f32.mrf.mxu1  ;;  %v3573_v59 = vpop.f32.mrf.mxu0 }
 0x35d   :  { %12166 = vst [vmem:[#allocation42_spill] sm:$0xff] %v10896_v10  ;;  %v10910_v34 = vld [vmem:[#allocation6] sm:$0xff]  }
 0x35e   :  { %v10898_v28 = vpop.f32.mrf.mxu1  ;;  %v3574_v19 = vpop.f32.mrf.mxu0  ;;  %8856 = vmatprep.subr.bf16.mxu1 %v10910_v34 }
 0x35f   :  { %v10901_v45 = vadd.f32 %v3574_v19, %v10802_v63  ;;  %v9724_v19 = vld [vmem:[#allocation4 + $0x780] ss:$16 sps:$4 sm:$0xff]  }
 0x360   :  { %v3031_v37 = vpop.f32.mrf.mxu1  ;;  %v3576_v44 = vpop.f32.mrf.mxu0 }
 0x361   :  { %12167 = vst [vmem:[#allocation43_spill] sm:$0xff] %v10901_v45  ;;  %v9727_v37 = vld [vmem:[#allocation4 + $0x688] ss:$16 sps:$4 sm:$0xff]  }
 0x362   :  { %v10905_v4 = vpop.f32.mrf.mxu1  ;;  %3225 = vmatmul.mubr.bf16.gmra.mxu1 %v9718_v49  ;;  %v3579_v14 = vpop.f32.mrf.mxu0  ;;  %3770 = vmatmul.mubr.bf16.gmra.mxu0 %v9721_v7  ;;  %v9732_v7 = vld [vmem:[#allocation4 + $0x7a4] ss:$16 sps:$4 sm:$0xff]  }
 0x363   :  { %v10908_v55 = vadd.f32 %v3579_v14, %v10809_v62  ;;  %3232 = vmatprep.mubr.bf16.mxu1 %v9726_v46  ;;  %3777 = vmatprep.mubr.bf16.mxu0 %v9729_v42  ;;  %v9738_v42 = vld [vmem:[#allocation4 + $0x7c4] ss:$16 sps:$4 sm:$0xff]  }
 0x364   :  { %v3036_v15 = vpop.f32.mrf.mxu1  ;;  %v3581_v63 = vpop.f32.mrf.mxu0 }
 0x365   :  { %12168 = vst [vmem:[#allocation44_spill] sm:$0xff] %v10908_v55  ;;  %v9741_v55 = vld [vmem:[#allocation4 + $0x6cc] ss:$16 sps:$4 sm:$0xff]  }
 0x366   :  { %v10912_v59 = vpop.f32.mrf.mxu1  ;;  %v3582_v44 = vpop.f32.mrf.mxu0 }
 0x367   :  { %v10916_v49 = vadd.f32 %v3582_v44, %v10814_v24 }
 0x368   :  { %v3039_v62 = vpop.f32.mrf.mxu1  ;;  %v3584_v14 = vpop.f32.mrf.mxu0 }
 0x369   :  { %12169 = vst [vmem:[#allocation45_spill] sm:$0xff] %v10916_v49  ;;  %v9730_v62 = vld [vmem:[#allocation4 + $0x7a0] ss:$16 sps:$4 sm:$0xff]   ;;  %v9733_v14 = vld [vmem:[#allocation4 + $0x6a8] ss:$16 sps:$4 sm:$0xff]  }
 0x36a   :  { %v10920_v46 = vpop.f32.mrf.mxu1  ;;  %3233 = vmatmul.mubr.bf16.gmra.mxu1 %v9724_v19  ;;  %v3587_v15 = vpop.f32.mrf.mxu0  ;;  %3778 = vmatmul.mubr.bf16.gmra.mxu0 %v9727_v37 }
 0x36b   :  { %v10923_v63 = vadd.f32 %v3587_v15, %v10821_v51  ;;  %3240 = vmatprep.mubr.bf16.mxu1 %v9732_v7  ;;  %3785 = vmatprep.mubr.bf16.mxu0 %v9735_v2  ;;  %v9744_v51 = vld [vmem:[#allocation4 + $0x7e4] ss:$16 sps:$4 sm:$0xff]  }
 0x36c   :  { %v3044_v10 = vpop.f32.mrf.mxu1  ;;  %v3589_v24 = vpop.f32.mrf.mxu0 }
 0x36d   :  { %12170 = vst [vmem:[#allocation46_spill] sm:$0xff] %v10923_v63  ;;  %v9736_v24 = vld [vmem:[#allocation4 + $0x7c0] ss:$16 sps:$4 sm:$0xff]   ;;  %v9747_v63 = vld [vmem:[#allocation4 + $0x6ec] ss:$16 sps:$4 sm:$0xff]  }
 0x36e   :  { %v10925_v44 = vpop.f32.mrf.mxu1  ;;  %v3590_v45 = vpop.f32.mrf.mxu0 }
 0x36f   :  { %v10928_v21 = vadd.f32 %v3590_v45, %v10826_v56 }
 0x370   :  { %v3047_v19 = vpop.f32.mrf.mxu1  ;;  %v3592_v49 = vpop.f32.mrf.mxu0 }
 0x371   :  { %12171 = vst [vmem:[#allocation47_spill] sm:$0xff] %v10928_v21  ;;  %v9739_v49 = vld [vmem:[#allocation4 + $0x6c8] ss:$16 sps:$4 sm:$0xff]  }
 0x372   :  { %v10932_v37 = vpop.f32.mrf.mxu1  ;;  %3241 = vmatmul.mubr.bf16.gmra.mxu1 %v9730_v62  ;;  %v3595_v10 = vpop.f32.mrf.mxu0  ;;  %3786 = vmatmul.mubr.bf16.gmra.mxu0 %v9733_v14 }
 0x373   :  { %v10935_v2 = vadd.f32 %v3595_v10, %v10833_v6  ;;  %3248 = vmatprep.mubr.bf16.mxu1 %v9738_v42  ;;  %3793 = vmatprep.mubr.bf16.mxu0 %v9741_v55  ;;  %v9750_v6 = vld [vmem:[#allocation4 + $0x804] ss:$16 sps:$4 sm:$0xff]  }
 0x374   :  { %v3052_v7 = vpop.f32.mrf.mxu1  ;;  %v3597_v56 = vpop.f32.mrf.mxu0 }
 0x375   :  { %12172 = vst [vmem:[#allocation48_spill] sm:$0xff] %v10935_v2  ;;  %v9753_v2 = vld [vmem:[#allocation4 + $0x70c] ss:$16 sps:$4 sm:$0xff]  }
 0x376   :  { %v10937_v45 = vpop.f32.mrf.mxu1  ;;  %v3598_v15 = vpop.f32.mrf.mxu0 }
 0x377   :  { %v10940_v19 = vadd.f32 %v3598_v15, %v10838_v22  ;;  %v9742_v15 = vld [vmem:[#allocation4 + $0x7e0] ss:$16 sps:$4 sm:$0xff]  }
 0x378   :  { %v3055_v62 = vpop.f32.mrf.mxu1  ;;  %v3600_v21 = vpop.f32.mrf.mxu0 }
 0x379   :  { %12173 = vst [vmem:[#allocation49_spill] sm:$0xff] %v10940_v19  ;;  %v9745_v21 = vld [vmem:[#allocation4 + $0x6e8] ss:$16 sps:$4 sm:$0xff]  }
 0x37a   :  { %v10944_v14 = vpop.f32.mrf.mxu1  ;;  %3249 = vmatmul.mubr.bf16.gmra.mxu1 %v9736_v24  ;;  %v3603_v55 = vpop.f32.mrf.mxu0  ;;  %3794 = vmatmul.mubr.bf16.gmra.mxu0 %v9739_v49 }
 0x37b   :  { %v10947_v42 = vadd.f32 %v3603_v55, %v10845_v60  ;;  %3256 = vmatprep.mubr.bf16.mxu1 %v9744_v51  ;;  %3801 = vmatprep.mubr.bf16.mxu0 %v9747_v63  ;;  %v9756_v60 = vld [vmem:[#allocation4 + $0x824] ss:$16 sps:$4 sm:$0xff]  }
 0x37c   :  { %v3060_v10 = vpop.f32.mrf.mxu1  ;;  %v3605_v22 = vpop.f32.mrf.mxu0 }
 0x37d   :  { %12174 = vst [vmem:[#allocation50_spill] sm:$0xff] %v10947_v42  ;;  %v9759_v42 = vld [vmem:[#allocation4 + $0x72c] ss:$16 sps:$4 sm:$0xff]  }
 0x37e   :  { %v10949_v7 = vpop.f32.mrf.mxu1  ;;  %v3606_v56 = vpop.f32.mrf.mxu0 }
 0x37f   :  { %v10952_v62 = vadd.f32 %v3606_v56, %v10850_v35  ;;  %v9748_v56 = vld [vmem:[#allocation4 + $0x800] ss:$16 sps:$4 sm:$0xff]  }
 0x380   :  { %v3063_v24 = vpop.f32.mrf.mxu1  ;;  %v3608_v19 = vpop.f32.mrf.mxu0 }
 0x381   :  { %12175 = vst [vmem:[#allocation51_spill] sm:$0xff] %v10952_v62  ;;  %v9751_v19 = vld [vmem:[#allocation4 + $0x708] ss:$16 sps:$4 sm:$0xff]  }
 0x382   :  { %v10956_v49 = vpop.f32.mrf.mxu1  ;;  %3257 = vmatmul.mubr.bf16.gmra.mxu1 %v9742_v15  ;;  %v3611_v63 = vpop.f32.mrf.mxu0  ;;  %3802 = vmatmul.mubr.bf16.gmra.mxu0 %v9745_v21 }
 0x383   :  { %v10959_v51 = vadd.f32 %v3611_v63, %v10857_v54  ;;  %3264 = vmatprep.mubr.bf16.mxu1 %v9750_v6  ;;  %3809 = vmatprep.mubr.bf16.mxu0 %v9753_v2  ;;  %v9762_v54 = vld [vmem:[#allocation4 + $0x844] ss:$16 sps:$4 sm:$0xff]  }
 0x384   :  { %v3068_v55 = vpop.f32.mrf.mxu1  ;;  %v3613_v35 = vpop.f32.mrf.mxu0 }
 0x385   :  { %12176 = vst [vmem:[#allocation52_spill] sm:$0xff] %v10959_v51  ;;  %v9765_v51 = vld [vmem:[#allocation4 + $0x74c] ss:$16 sps:$4 sm:$0xff]  }
 0x386   :  { %v10961_v10 = vpop.f32.mrf.mxu1  ;;  %v3614_v22 = vpop.f32.mrf.mxu0 }
 0x387   :  { %v10964_v24 = vadd.f32 %v3614_v22, %v10862_v9  ;;  %v9754_v22 = vld [vmem:[#allocation4 + $0x820] ss:$16 sps:$4 sm:$0xff]  }
 0x388   :  { %v3071_v15 = vpop.f32.mrf.mxu1  ;;  %v3616_v62 = vpop.f32.mrf.mxu0 }
 0x389   :  { %12177 = vst [vmem:[#allocation53_spill] sm:$0xff] %v10964_v24  ;;  %v9757_v62 = vld [vmem:[#allocation4 + $0x728] ss:$16 sps:$4 sm:$0xff]  }
 0x38a   :  { %v10968_v21 = vpop.f32.mrf.mxu1  ;;  %3265 = vmatmul.mubr.bf16.gmra.mxu1 %v9748_v56  ;;  %v3619_v2 = vpop.f32.mrf.mxu0  ;;  %3810 = vmatmul.mubr.bf16.gmra.mxu0 %v9751_v19 }
 0x38b   :  { %v10971_v6 = vadd.f32 %v3619_v2, %v10869_v20  ;;  %3272 = vmatprep.mubr.bf16.mxu1 %v9756_v60  ;;  %3817 = vmatprep.mubr.bf16.mxu0 %v9759_v42  ;;  %v9768_v20 = vld [vmem:[#allocation4 + $0x864] ss:$16 sps:$4 sm:$0xff]  }
 0x38c   :  { %v3076_v63 = vpop.f32.mrf.mxu1  ;;  %v3621_v9 = vpop.f32.mrf.mxu0 }
 0x38d   :  { %12178 = vst [vmem:[#allocation54_spill] sm:$0xff] %v10971_v6  ;;  %v9771_v6 = vld [vmem:[#allocation4 + $0x76c] ss:$16 sps:$4 sm:$0xff]  }
 0x38e   :  { %v10973_v55 = vpop.f32.mrf.mxu1  ;;  %v3622_v35 = vpop.f32.mrf.mxu0 }
 0x38f   :  { %v10976_v15 = vadd.f32 %v3622_v35, %v10874_v29  ;;  %v9760_v35 = vld [vmem:[#allocation4 + $0x840] ss:$16 sps:$4 sm:$0xff]  }
 0x390   :  { %v3079_v56 = vpop.f32.mrf.mxu1  ;;  %v3624_v24 = vpop.f32.mrf.mxu0 }
 0x391   :  { %12179 = vst [vmem:[#allocation55_spill] sm:$0xff] %v10976_v15  ;;  %v9763_v24 = vld [vmem:[#allocation4 + $0x748] ss:$16 sps:$4 sm:$0xff]  }
 0x392   :  { %v10980_v19 = vpop.f32.mrf.mxu1  ;;  %3273 = vmatmul.mubr.bf16.gmra.mxu1 %v9754_v22  ;;  %v3627_v42 = vpop.f32.mrf.mxu0  ;;  %3818 = vmatmul.mubr.bf16.gmra.mxu0 %v9757_v62 }
 0x393   :  { %v10983_v60 = vadd.f32 %v3627_v42, %v10881_v53  ;;  %3280 = vmatprep.mubr.bf16.mxu1 %v9762_v54  ;;  %3825 = vmatprep.mubr.bf16.mxu0 %v9765_v51  ;;  %v9774_v53 = vld [vmem:[#allocation4 + $0x884] ss:$16 sps:$4 sm:$0xff]  }
 0x394   :  { %v3084_v2 = vpop.f32.mrf.mxu1  ;;  %v3629_v29 = vpop.f32.mrf.mxu0 }
 0x395   :  { %12180 = vst [vmem:[#allocation56_spill] sm:$0xff] %v10983_v60  ;;  %v9777_v60 = vld [vmem:[#allocation4 + $0x78c] ss:$16 sps:$4 sm:$0xff]  }
 0x396   :  { %v10985_v63 = vpop.f32.mrf.mxu1  ;;  %v3630_v9 = vpop.f32.mrf.mxu0 }
 0x397   :  { %v10988_v56 = vadd.f32 %v3630_v9, %v10886_v38  ;;  %v9766_v9 = vld [vmem:[#allocation4 + $0x860] ss:$16 sps:$4 sm:$0xff]  }
 0x398   :  { %v3087_v22 = vpop.f32.mrf.mxu1  ;;  %v3632_v15 = vpop.f32.mrf.mxu0 }
 0x399   :  { %12181 = vst [vmem:[#allocation57_spill] sm:$0xff] %v10988_v56  ;;  %v9769_v15 = vld [vmem:[#allocation4 + $0x768] ss:$16 sps:$4 sm:$0xff]  }
 0x39a   :  { %v10992_v62 = vpop.f32.mrf.mxu1  ;;  %3281 = vmatmul.mubr.bf16.gmra.mxu1 %v9760_v35  ;;  %v3635_v51 = vpop.f32.mrf.mxu0  ;;  %3826 = vmatmul.mubr.bf16.gmra.mxu0 %v9763_v24 }
 0x39b   :  { %v10995_v54 = vadd.f32 %v3635_v51, %v10893_v3  ;;  %3288 = vmatprep.mubr.bf16.mxu1 %v9768_v20  ;;  %3833 = vmatprep.mubr.bf16.mxu0 %v9771_v6  ;;  %v9783_v3 = vld [vmem:[#allocation4 + $0x7ac] ss:$16 sps:$4 sm:$0xff]  }
 0x39c   :  { %v3092_v42 = vpop.f32.mrf.mxu1  ;;  %v3637_v38 = vpop.f32.mrf.mxu0 }
 0x39d   :  { %12182 = vst [vmem:[#allocation58_spill] sm:$0xff] %v10995_v54  ;;  %v11009_v42 = vld [vmem:[#allocation6 + $0x28] sm:$0xff]  }
 0x39e   :  { %v10997_v2 = vpop.f32.mrf.mxu1  ;;  %v3638_v29 = vpop.f32.mrf.mxu0  ;;  %12185 = vst [vmem:[#allocation61_spill] sm:$0xff] %v11009_v42  ;;  %8928 = vmatprep.subr.bf16.mxu0 %v11009_v42 }
 0x39f   :  { %v11000_v22 = vadd.f32 %v3638_v29, %v10898_v28  ;;  %v9772_v29 = vld [vmem:[#allocation4 + $0x880] ss:$16 sps:$4 sm:$0xff]  }
 0x3a0   :  { %v3095_v35 = vpop.f32.mrf.mxu1  ;;  %v3640_v56 = vpop.f32.mrf.mxu0 }
 0x3a1   :  { %12183 = vst [vmem:[#allocation59_spill] sm:$0xff] %v11000_v22  ;;  %v9775_v35 = vld [vmem:[#allocation4 + $0x788] ss:$16 sps:$4 sm:$0xff]  }
 0x3a2   :  { %v11004_v24 = vpop.f32.mrf.mxu1  ;;  %3289 = vmatmul.mubr.bf16.gmra.mxu1 %v9766_v9  ;;  %v3643_v6 = vpop.f32.mrf.mxu0  ;;  %3834 = vmatmul.mubr.bf16.gmra.mxu0 %v9769_v15  ;;  %v9780_v15 = vld [vmem:[#allocation4 + $0x8a4] ss:$16 sps:$4 sm:$0xff]  }
 0x3a3   :  { %v11007_v20 = vadd.f32 %v3643_v6, %v10905_v4  ;;  %3296 = vmatprep.mubr.bf16.mxu1 %v9774_v53  ;;  %3841 = vmatprep.mubr.bf16.mxu0 %v9777_v60  ;;  %v9786_v60 = vld [vmem:[#allocation4 + $0x8c4] ss:$16 sps:$4 sm:$0xff]  }
 0x3a4   :  { %v3100_v51 = vpop.f32.mrf.mxu1  ;;  %v3645_v28 = vpop.f32.mrf.mxu0 }
 0x3a5   :  { %12184 = vst [vmem:[#allocation60_spill] sm:$0xff] %v11007_v20  ;;  %v9789_v20 = vld [vmem:[#allocation4 + $0x7cc] ss:$16 sps:$4 sm:$0xff]  }
 0x3a6   :  { %v11011_v38 = vpop.f32.mrf.mxu1  ;;  %v3646_v56 = vpop.f32.mrf.mxu0 }
 0x3a7   :  { %v11015_v9 = vadd.f32 %v3646_v56, %v10912_v59 }
 0x3a8   :  { %v3103_v4 = vpop.f32.mrf.mxu1  ;;  %v3648_v6 = vpop.f32.mrf.mxu0 }
 0x3a9   :  { %12186 = vst [vmem:[#allocation62_spill] sm:$0xff] %v11015_v9  ;;  %v9778_v4 = vld [vmem:[#allocation4 + $0x8a0] ss:$16 sps:$4 sm:$0xff]   ;;  %v9781_v6 = vld [vmem:[#allocation4 + $0x7a8] ss:$16 sps:$4 sm:$0xff]  }
 0x3aa   :  { %v11019_v53 = vpop.f32.mrf.mxu1  ;;  %3297 = vmatmul.mubr.bf16.gmra.mxu1 %v9772_v29  ;;  %v3651_v51 = vpop.f32.mrf.mxu0  ;;  %3842 = vmatmul.mubr.bf16.gmra.mxu0 %v9775_v35 }
 0x3ab   :  { %v11022_v28 = vadd.f32 %v3651_v51, %v10920_v46  ;;  %3304 = vmatprep.mubr.bf16.mxu1 %v9780_v15  ;;  %3849 = vmatprep.mubr.bf16.mxu0 %v9783_v3  ;;  %v9792_v46 = vld [vmem:[#allocation4 + $0x8e4] ss:$16 sps:$4 sm:$0xff]  }
 0x3ac   :  { %v3108_v54 = vpop.f32.mrf.mxu1  ;;  %v3653_v59 = vpop.f32.mrf.mxu0 }
 0x3ad   :  { %12187 = vst [vmem:[#allocation63_spill] sm:$0xff] %v11022_v28  ;;  %v9784_v59 = vld [vmem:[#allocation4 + $0x8c0] ss:$16 sps:$4 sm:$0xff]   ;;  %v9795_v28 = vld [vmem:[#allocation4 + $0x7ec] ss:$16 sps:$4 sm:$0xff]  }
 0x3ae   :  { %v11024_v56 = vpop.f32.mrf.mxu1  ;;  %v3654_v22 = vpop.f32.mrf.mxu0 }
 0x3af   :  { %v11027_v42 = vadd.f32 %v3654_v22, %v10925_v44 }
 0x3b0   :  { %v3111_v29 = vpop.f32.mrf.mxu1  ;;  %v3656_v9 = vpop.f32.mrf.mxu0 }
 0x3b1   :  { %12188 = vst [vmem:[#allocation64_spill] sm:$0xff] %v11027_v42  ;;  %v9787_v9 = vld [vmem:[#allocation4 + $0x7c8] ss:$16 sps:$4 sm:$0xff]  }
 0x3b2   :  { %v11031_v35 = vpop.f32.mrf.mxu1  ;;  %3305 = vmatmul.mubr.bf16.gmra.mxu1 %v9778_v4  ;;  %v3659_v54 = vpop.f32.mrf.mxu0  ;;  %3850 = vmatmul.mubr.bf16.gmra.mxu0 %v9781_v6 }
 0x3b3   :  { %v11034_v3 = vadd.f32 %v3659_v54, %v10932_v37  ;;  %3312 = vmatprep.mubr.bf16.mxu1 %v9786_v60  ;;  %3857 = vmatprep.mubr.bf16.mxu0 %v9789_v20  ;;  %v9798_v37 = vld [vmem:[#allocation4 + $0x80c] ss:$16 sps:$4 sm:$0xff]  }
 0x3b4   :  { %v3116_v15 = vpop.f32.mrf.mxu1  ;;  %v3661_v44 = vpop.f32.mrf.mxu0 }
 0x3b5   :  { %12189 = vst [vmem:[#allocation65_spill] sm:$0xff] %v11034_v3 }
 0x3b6   :  { %v11036_v22 = vpop.f32.mrf.mxu1  ;;  %v3662_v51 = vpop.f32.mrf.mxu0 }
 0x3b7   :  { %v11039_v29 = vadd.f32 %v3662_v51, %v10937_v45  ;;  %v9790_v51 = vld [vmem:[#allocation4 + $0x8e0] ss:$16 sps:$4 sm:$0xff]  }
 0x3b8   :  { %v3119_v4 = vpop.f32.mrf.mxu1  ;;  %v3664_v42 = vpop.f32.mrf.mxu0 }
 0x3b9   :  { %v9793_v42 = vld [vmem:[#allocation4 + $0x7e8] ss:$16 sps:$4 sm:$0xff]  }
 0x3ba   :  { %v11043_v6 = vpop.f32.mrf.mxu1  ;;  %3313 = vmatmul.mubr.bf16.gmra.mxu1 %v9784_v59  ;;  %v3667_v20 = vpop.f32.mrf.mxu0  ;;  %3858 = vmatmul.mubr.bf16.gmra.mxu0 %v9787_v9 }
 0x3bb   :  { %v11046_v60 = vadd.f32 %v3667_v20, %v10944_v14  ;;  %3320 = vmatprep.mubr.bf16.mxu1 %v9792_v46  ;;  %3865 = vmatprep.mubr.bf16.mxu0 %v9795_v28  ;;  %v12190_v20 = vpack.c.bf16 %v10685_v61, %v10680_v16 }
 0x3bc   :  { %v3124_v54 = vpop.f32.mrf.mxu1  ;;  %v3669_v45 = vpop.f32.mrf.mxu0 }
 0x3be   :  { %v11048_v15 = vpop.f32.mrf.mxu1  ;;  %v3670_v44 = vpop.f32.mrf.mxu0 }
 0x3bf   :  { %v11051_v4 = vadd.f32 %v3670_v44, %v10949_v7  ;;  %v9796_v44 = vld [vmem:[#allocation4 + $0x808] ss:$16 sps:$4 sm:$0xff]  }
 0x3c0   :  { %v3127_v3 = vpop.f32.mrf.mxu1  ;;  %v3672_v59 = vpop.f32.mrf.mxu0 }
 0x3c2   :  { %v11055_v14 = vpop.f32.mrf.mxu1  ;;  %3321 = vmatmul.mubr.bf16.gmra.mxu1 %v9790_v51  ;;  %v3675_v28 = vpop.f32.mrf.mxu0  ;;  %3866 = vmatmul.mubr.bf16.gmra.mxu0 %v9793_v42  ;;  %v9801_v51 = vld [vmem:[#allocation4 + $0x82c] ss:$16 sps:$4 sm:$0xff]  }
 0x3c3   :  { %v11058_v46 = vadd.f32 %v3675_v28, %v10956_v49  ;;  %8840 = vmatprep.mubr.msk.bf16.mxu1 %vm382_vm0, %v12190_v20  ;;  %3873 = vmatprep.mubr.bf16.mxu0 %v9798_v37  ;;  %v11071_v28 = vld [vmem:[#allocation6 + $0x10] sm:$0xff]   ;;  %v12191_v37 = vpack.c.bf16 %v10697_v41, %v10692_v40  ;;  %v9799_v41 = vld [vmem:[#allocation4 + $0x828] ss:$16 sps:$4 sm:$0xff]  }
 0x3c4   :  { %v3132_v7 = vpop.f32.mrf.mxu1  ;;  %v3677_v3 = vpop.f32.mrf.mxu0 }
 0x3c6   :  { %v11064_v54 = vpop.f32.mrf.mxu1  ;;  %v3678_v45 = vpop.f32.mrf.mxu0 }
 0x3c7   :  { %v11067_v59 = vadd.f32 %v3678_v45, %v10961_v10 }
 0x3c8   :  { %v3135_v42 = vpop.f32.mrf.mxu1  ;;  %v3680_v9 = vpop.f32.mrf.mxu0 }
 0x3c9   :  { %v12192_v9 = vpack.c.bf16 %v10709_v12, %v10704_v58 }
 0x3ca   :  { %v11073_v16 = vpop.f32.mrf.mxu1  ;;  %v3683_v61 = vpop.f32.mrf.mxu0  ;;  %3874 = vmatmul.mubr.bf16.gmra.mxu0 %v9796_v44  ;;  %8841 = vmatmul.mubr.msk.bf16.vlgmr.msra.gmra.mxu1 %vm382_vm0, %v12191_v37 }
 0x3cb   :  { %v11080_v10 = vadd.f32 %v3683_v61, %v10968_v21  ;;  %8844 = vmatprep.mubr.msk.bf16.mxu1 %vm382_vm0, %v12192_v9  ;;  %3881 = vmatprep.mubr.bf16.mxu0 %v9801_v51  ;;  %v9804_v21 = vld [vmem:[#allocation4 + $0x84c] ss:$16 sps:$4 sm:$0xff]  }
 0x3cc   :  { %v3140_v20 = vpop.f32.mrf.mxu1  ;;  %v3685_v7 = vpop.f32.mrf.mxu0  ;;  %8857 = vmatpush3.bf16.msra.mxu1 %v10910_v34  ;;  %v12193_v34 = vpack.c.bf16 %v10721_v48, %v10716_v25  ;;  %v9807_v25 = vld [vmem:[#allocation4 + $0x86c] ss:$16 sps:$4 sm:$0xff]  }
 0x3cd   :  { %8874 = vmatprep.subr.bf16.mxu1 %v11071_v28 }
 0x3ce   :  { %v11088_v3 = vpop.f32.mrf.mxu1  ;;  %v3686_v40 = vpop.f32.mrf.mxu0 }
 0x3cf   :  { %v11091_v45 = vadd.f32 %v3686_v40, %v10973_v55  ;;  %v12194_v55 = vpack.c.bf16 %v10733_v43, %v10728_v36  ;;  %v9802_v40 = vld [vmem:[#allocation4 + $0x848] ss:$16 sps:$4 sm:$0xff]   ;;  %v12195_v43 = vpack.c.bf16 %v10745_v13, %v10740_v5  ;;  %v9811_v5 = vld [vmem:[#allocation4 + $0x88c] ss:$16 sps:$4 sm:$0xff]  }
 0x3d0   :  { %v3143_v44 = vpop.f32.mrf.mxu1  ;;  %v3688_v42 = vpop.f32.mrf.mxu0 }
 0x3d1   :  { %v4675_v58 = vpack.c.bf16 %v11091_v45, %v11080_v10 }
 0x3d2   :  { %v11095_v12 = vpop.f32.mrf.mxu1  ;;  %v3691_v51 = vpop.f32.mrf.mxu0  ;;  %3882 = vmatmul.mubr.bf16.gmra.mxu0 %v9799_v41  ;;  %8845 = vmatmul.mubr.msk.bf16.gmra.mxu1 %vm382_vm0, %v12193_v34 }
 0x3d3   :  { %v11102_v61 = vadd.f32 %v3691_v51, %v10980_v19  ;;  %8848 = vmatprep.mubr.msk.bf16.mxu1 %vm382_vm0, %v12194_v55  ;;  %3889 = vmatprep.mubr.bf16.mxu0 %v9804_v21 }
 0x3d4   :  { %v3148_v37 = vpop.f32.mrf.mxu1  ;;  %v3693_v9 = vpop.f32.mrf.mxu0 }
 0x3d5   :  { %v9805_v9 = vld [vmem:[#allocation4 + $0x868] ss:$16 sps:$4 sm:$0xff]  }
 0x3d6   :  { %v11108_v20 = vpop.f32.mrf.mxu1  ;;  %v3694_v7 = vpop.f32.mrf.mxu0 }
 0x3d7   :  { %v11111_v41 = vadd.f32 %v3694_v7, %v10985_v63  ;;  %v12196_v63 = vpack.c.bf16 %v10757_v1, %v10752_v31  ;;  %v12197_v1 = vpack.c.bf16 %v10769_v33, %v10764_v11  ;;  %v9814_v11 = vld [vmem:[#allocation4 + $0x8ac] ss:$16 sps:$4 sm:$0xff]  }
 0x3d8   :  { %v3151_v48 = vpop.f32.mrf.mxu1  ;;  %v3696_v44 = vpop.f32.mrf.mxu0 }
 0x3d9   :  { %v4676_v19 = vpack.c.bf16 %v11111_v41, %v11102_v61 }
 0x3da   :  { %v11115_v42 = vpop.f32.mrf.mxu1  ;;  %v3699_v36 = vpop.f32.mrf.mxu0  ;;  %3890 = vmatmul.mubr.bf16.gmra.mxu0 %v9802_v40  ;;  %8849 = vmatmul.mubr.msk.bf16.gmra.mxu1 %vm382_vm0, %v12195_v43 }
 0x3db   :  { %v11122_v21 = vadd.f32 %v3699_v36, %v10992_v62  ;;  %8852 = vmatprep.mubr.msk.bf16.mxu1 %vm382_vm0, %v12196_v63  ;;  %3897 = vmatprep.mubr.bf16.mxu0 %v9807_v25 }
 0x3dc   :  { %v3156_v51 = vpop.f32.mrf.mxu1  ;;  %v3701_v34 = vpop.f32.mrf.mxu0 }
 0x3dd   :  { %v9809_v51 = vld [vmem:[#allocation4 + $0x888] ss:$16 sps:$4 sm:$0xff]  }
 0x3de   :  { %v11128_v55 = vpop.f32.mrf.mxu1  ;;  %v3702_v37 = vpop.f32.mrf.mxu0 }
 0x3df   :  { %v11131_v7 = vadd.f32 %v3702_v37, %v10997_v2  ;;  %v12198_v2 = vpack.c.bf16 %v10589_v0, %v10584_v30 }
 0x3e0   :  { %v3159_v13 = vpop.f32.mrf.mxu1  ;;  %v3704_v40 = vpop.f32.mrf.mxu0 }
 0x3e1   :  { %v4677_v62 = vpack.c.bf16 %v11131_v7, %v11122_v21  ;;  %v12200_v13 = vpack.c.bf16 %v10613_v32, %v10608_v27 }
 0x3e2   :  { %v11135_v48 = vpop.f32.mrf.mxu1  ;;  %v3707_v31 = vpop.f32.mrf.mxu0  ;;  %3898 = vmatmul.mubr.bf16.gmra.mxu0 %v9805_v9  ;;  %8853 = vmatmul.mubr.msk.bf16.gmra.mxu1 %vm382_vm0, %v12197_v1  ;;  %v11155_v9 = vld [vmem:[#allocation6 + $0x20] sm:$0xff]  }
 0x3e3   :  { %v11142_v25 = vadd.f32 %v3707_v31, %v11004_v24  ;;  %8858 = vmatprep.mubr.msk.bf16.mxu1 %vm382_vm0, %v12198_v2  ;;  %3905 = vmatprep.mubr.bf16.mxu0 %v9811_v5  ;;  %v12199_v5 = vpack.c.bf16 %v10601_v18, %v10596_v8  ;;  %v9812_v18 = vld [vmem:[#allocation4 + $0x8a8] ss:$16 sps:$4 sm:$0xff]  }
 0x3e4   :  { %v3164_v44 = vpop.f32.mrf.mxu1  ;;  %v3709_v36 = vpop.f32.mrf.mxu0 }
 0x3e6   :  { %v11148_v43 = vpop.f32.mrf.mxu1  ;;  %v3710_v63 = vpop.f32.mrf.mxu0 }
 0x3e7   :  { %v11151_v34 = vadd.f32 %v3710_v63, %v11011_v38 }
 0x3e8   :  { %v3167_v33 = vpop.f32.mrf.mxu1  ;;  %v3712_v37 = vpop.f32.mrf.mxu0 }
 0x3e9   :  { %v4678_v24 = vpack.c.bf16 %v11151_v34, %v11142_v25 }
 0x3ea   :  { %v11157_v30 = vpop.f32.mrf.mxu1  ;;  %v3715_v0 = vpop.f32.mrf.mxu0  ;;  %3906 = vmatmul.mubr.bf16.gmra.mxu0 %v9809_v51  ;;  %8859 = vmatmul.mubr.msk.bf16.vlgmr.msra.gmra.mxu1 %vm382_vm0, %v12199_v5  ;;  %v9815_v5 = vld [vmem:[#allocation4 + $0x8c8] ss:$16 sps:$4 sm:$0xff]  }
 0x3eb   :  { %v11164_v38 = vadd.f32 %v3715_v0, %v11019_v53  ;;  %8862 = vmatprep.mubr.msk.bf16.mxu1 %vm382_vm0, %v12200_v13  ;;  %3913 = vmatprep.mubr.bf16.mxu0 %v9814_v11  ;;  %v9817_v53 = vld [vmem:[#allocation4 + $0x8cc] ss:$16 sps:$4 sm:$0xff]  }
 0x3ec   :  { %v3172_v40 = vpop.f32.mrf.mxu1  ;;  %v3717_v31 = vpop.f32.mrf.mxu0  ;;  %8875 = vmatpush3.bf16.msra.mxu1 %v11071_v28  ;;  %v12201_v28 = vpack.c.bf16 %v10625_v57, %v10620_v47  ;;  %v9820_v47 = vld [vmem:[#allocation4 + $0x8ec] ss:$16 sps:$4 sm:$0xff]  }
 0x3ed   :  { %8910 = vmatprep.subr.bf16.mxu1 %v11155_v9 }
 0x3ee   :  { %v11172_v1 = vpop.f32.mrf.mxu1  ;;  %v3718_v8 = vpop.f32.mrf.mxu0 }
 0x3ef   :  { %v11175_v2 = vadd.f32 %v3718_v8, %v11024_v56  ;;  %v12202_v56 = vpack.c.bf16 %v10637_v23, %v10632_v50  ;;  %v12203_v23 = vpack.c.bf16 %v10649_v17, %v10644_v26  ;;  %v12204_v8 = vpack.c.bf16 %v10661_v39, %v10656_v52 }
 0x3f0   :  { %v3175_v44 = vpop.f32.mrf.mxu1  ;;  %v3720_v36 = vpop.f32.mrf.mxu0 }
 0x3f1   :  { %v4679_v27 = vpack.c.bf16 %v11175_v2, %v11164_v38  ;;  %v9818_v36 = vld [vmem:[#allocation4 + $0x8e8] ss:$16 sps:$4 sm:$0xff]   ;;  %v12272_v2 = vld [vmem:[#allocation65_spill] sm:$0xff] }
 0x3f2   :  { %v11179_v32 = vpop.f32.mrf.mxu1  ;;  %v3723_v63 = vpop.f32.mrf.mxu0  ;;  %3914 = vmatmul.mubr.bf16.gmra.mxu0 %v9812_v18  ;;  %8863 = vmatmul.mubr.msk.bf16.gmra.mxu1 %vm382_vm0, %v12201_v28 }
 0x3f3   :  { %v11186_v51 = vadd.f32 %v3723_v63, %v11031_v35  ;;  %8866 = vmatprep.mubr.msk.bf16.mxu1 %vm382_vm0, %v12202_v56  ;;  %3921 = vmatprep.mubr.bf16.mxu0 %v9817_v53 }
 0x3f4   :  { %v3180_v11 = vpop.f32.mrf.mxu1  ;;  %v3725_v33 = vpop.f32.mrf.mxu0 }
 0x3f5   :  { %v12205_v11 = vld [vmem:[#allocation21_spill] sm:$0xff]  ;;  %v12206_v33 = vld [vmem:[#allocation20_spill] sm:$0xff] }
 0x3f6   :  { %v11192_v37 = vpop.f32.mrf.mxu1  ;;  %v3726_v0 = vpop.f32.mrf.mxu0 }
 0x3f7   :  { %v11195_v13 = vadd.f32 %v3726_v0, %v11036_v22  ;;  %v12207_v0 = vpack.c.bf16 %v12205_v11, %v12206_v33  ;;  %v11243_v11 = vld [vmem:[#allocation6 + $0x30] sm:$0xff]   ;;  %v11245_v33 = vld [vmem:[#allocation6 + $0x38] sm:$0xff]  }
 0x3f8   :  { %v3183_v57 = vpop.f32.mrf.mxu1  ;;  %v3728_v40 = vpop.f32.mrf.mxu0 }
 0x3f9   :  { %v12212_v57 = vld [vmem:[#allocation38_spill] sm:$0xff] }
 0x3fa   :  { %v11199_v31 = vpop.f32.mrf.mxu1  ;;  %v3731_v50 = vpop.f32.mrf.mxu0  ;;  %3922 = vmatmul.mubr.bf16.gmra.mxu0 %v9815_v5  ;;  %8867 = vmatmul.mubr.msk.bf16.gmra.mxu1 %vm382_vm0, %v12203_v23  ;;  %v12208_v5 = vld [vmem:[#allocation23_spill] sm:$0xff] }
 0x3fb   :  { %8870 = vmatprep.mubr.msk.bf16.mxu1 %vm382_vm0, %v12204_v8  ;;  %3929 = vmatprep.mubr.bf16.mxu0 %v9820_v47  ;;  %v11212_v63 = vadd.f32 %v3731_v50, %v11043_v6  ;;  %v12209_v6 = vld [vmem:[#allocation22_spill] sm:$0xff] }
 0x3fc   :  { %v3188_v22 = vpop.f32.mrf.mxu1  ;;  %v3733_v18 = vpop.f32.mrf.mxu0  ;;  %v12210_v47 = vpack.c.bf16 %v12208_v5, %v12209_v6  ;;  %v12214_v6 = vld [vmem:[#allocation25_spill] sm:$0xff] }
 0x3fe   :  { %v11209_v53 = vpop.f32.mrf.mxu1  ;;  %v3734_v44 = vpop.f32.mrf.mxu0 }
 0x3ff   :  { %v11215_v28 = vadd.f32 %v3734_v44, %v11048_v15  ;;  %v12211_v15 = vld [vmem:[#allocation39_spill] sm:$0xff] }
 0x400   :  { %v3191_v26 = vpop.f32.mrf.mxu1  ;;  %v3736_v17 = vpop.f32.mrf.mxu0  ;;  %v12213_v40 = vpack.c.bf16 %v12211_v15, %v12212_v57  ;;  %v12220_v57 = vld [vmem:[#allocation27_spill] sm:$0xff] }
 0x402   :  { %v11219_v39 = vpop.f32.mrf.mxu1  ;;  %v3739_v56 = vpop.f32.mrf.mxu0  ;;  %3930 = vmatmul.mubr.bf16.gmra.mxu0 %v9818_v36  ;;  %8871 = vmatmul.mubr.msk.bf16.gmra.mxu1 %vm382_vm0, %v12207_v0 }
 0x403   :  { %8876 = vmatprep.mubr.msk.bf16.mxu1 %vm382_vm0, %v12210_v47  ;;  %8894 = vmatprep.mubr.msk.bf16.mxu0 %vm382_vm0, %v12213_v40  ;;  %v11236_v18 = vadd.f32 %v3739_v56, %v11055_v14  ;;  %v12215_v47 = vld [vmem:[#allocation24_spill] sm:$0xff]  ;;  %v12217_v14 = vld [vmem:[#allocation41_spill] sm:$0xff]  ;;  %v12221_v40 = vld [vmem:[#allocation26_spill] sm:$0xff] }
 0x404   :  { %v3196_v50 = vpop.f32.mrf.mxu1  ;;  %v3741_v23 = vpop.f32.mrf.mxu0  ;;  %v12216_v15 = vpack.c.bf16 %v12214_v6, %v12215_v47  ;;  %v12226_v6 = vld [vmem:[#allocation61_spill] sm:$0xff] }
 0x405   :  { %v12222_v50 = vpack.c.bf16 %v12220_v57, %v12221_v40  ;;  %v12223_v23 = vld [vmem:[#allocation43_spill] sm:$0xff] }
 0x406   :  { %v11233_v8 = vpop.f32.mrf.mxu1  ;;  %v3742_v22 = vpop.f32.mrf.mxu0 }
 0x407   :  { %v11239_v44 = vadd.f32 %v3742_v22, %v11064_v54  ;;  %v12218_v54 = vld [vmem:[#allocation40_spill] sm:$0xff]  ;;  %v12224_v22 = vld [vmem:[#allocation42_spill] sm:$0xff] }
 0x408   :  { %v3199_v36 = vpop.f32.mrf.mxu1  ;;  %v3744_v26 = vpop.f32.mrf.mxu0  ;;  %v12219_v56 = vpack.c.bf16 %v12217_v14, %v12218_v54 }
 0x409   :  { %v12225_v36 = vpack.c.bf16 %v12223_v23, %v12224_v22  ;;  %v12228_v23 = vld [vmem:[#allocation28_spill] sm:$0xff] }
 0x40a   :  { %v11247_v0 = vpop.f32.mrf.mxu1  ;;  %v3747_v5 = vpop.f32.mrf.mxu0  ;;  %8877 = vmatmul.mubr.msk.bf16.vlgmr.msra.gmra.mxu1 %vm382_vm0, %v12216_v15  ;;  %8895 = vmatmul.mubr.msk.bf16.vlgmr.msra.gmra.mxu0 %vm382_vm0, %v12219_v56 }
 0x40b   :  { %8880 = vmatprep.mubr.msk.bf16.mxu1 %vm382_vm0, %v12222_v50  ;;  %8898 = vmatprep.mubr.msk.bf16.mxu0 %vm382_vm0, %v12225_v36  ;;  %v11272_v14 = vadd.f32 %v3747_v5, %v11073_v16  ;;  %v12227_v50 = vld [vmem:[#allocation29_spill] sm:$0xff]  ;;  %v12234_v5 = vld [vmem:[#allocation30_spill] sm:$0xff] }
 0x40c   :  { %v3204_v26 = vpop.f32.mrf.mxu1  ;;  %v3749_v17 = vpop.f32.mrf.mxu0  ;;  %8911 = vmatpush3.bf16.msra.mxu1 %v11155_v9  ;;  %8929 = vmatpush3.bf16.msra.mxu0 %v12226_v6  ;;  %v12229_v22 = vpack.c.bf16 %v12227_v50, %v12228_v23  ;;  %v12230_v36 = vld [vmem:[#allocation45_spill] sm:$0xff] }
 0x40d   :  { %8946 = vmatprep.subr.bf16.mxu1 %v11243_v11  ;;  %8964 = vmatprep.subr.bf16.mxu0 %v11245_v33  ;;  %v12231_v26 = vld [vmem:[#allocation44_spill] sm:$0xff] }
 0x40e   :  { %v11269_v47 = vpop.f32.mrf.mxu1  ;;  %v3750_v15 = vpop.f32.mrf.mxu0  ;;  %v12232_v16 = vpack.c.bf16 %v12230_v36, %v12231_v26 }
 0x40f   :  { %v11275_v54 = vadd.f32 %v3750_v15, %v11088_v3  ;;  %v12233_v3 = vld [vmem:[#allocation31_spill] sm:$0xff] }
 0x410   :  { %v3207_v56 = vpop.f32.mrf.mxu1  ;;  %v3752_v57 = vpop.f32.mrf.mxu0  ;;  %v12235_v6 = vpack.c.bf16 %v12233_v3, %v12234_v5  ;;  %v12236_v15 = vld [vmem:[#allocation47_spill] sm:$0xff] }
 0x411   :  { %v12237_v56 = vld [vmem:[#allocation46_spill] sm:$0xff] }
 0x412   :  { %v11279_v17 = vpop.f32.mrf.mxu1  ;;  %v3755_v40 = vpop.f32.mrf.mxu0  ;;  %8881 = vmatmul.mubr.msk.bf16.gmra.mxu1 %vm382_vm0, %v12229_v22  ;;  %8899 = vmatmul.mubr.msk.bf16.gmra.mxu0 %vm382_vm0, %v12232_v16  ;;  %v12238_v57 = vpack.c.bf16 %v12236_v15, %v12237_v56  ;;  %v12239_v15 = vld [vmem:[#allocation33_spill] sm:$0xff] }
 0x413   :  { %8884 = vmatprep.mubr.msk.bf16.mxu1 %vm382_vm0, %v12235_v6  ;;  %v11300_v22 = vadd.f32 %v3755_v40, %v11095_v12  ;;  %v12242_v56 = vld [vmem:[#allocation49_spill] sm:$0xff]  ;;  %v12246_v40 = vld [vmem:[#allocation34_spill] sm:$0xff] }
 0x414   :  { %8902 = vmatprep.mubr.msk.bf16.mxu0 %vm382_vm0, %v12238_v57  ;;  %v3212_v9 = vpop.f32.mrf.mxu1  ;;  %v3757_v49 = vpop.f32.mrf.mxu0  ;;  %v12243_v57 = vld [vmem:[#allocation48_spill] sm:$0xff] }
 0x415   :  { %v12240_v9 = vld [vmem:[#allocation32_spill] sm:$0xff]  ;;  %v12244_v12 = vpack.c.bf16 %v12242_v56, %v12243_v57 }
 0x416   :  { %v11297_v50 = vpop.f32.mrf.mxu1  ;;  %v3758_v23 = vpop.f32.mrf.mxu0  ;;  %v12241_v49 = vpack.c.bf16 %v12239_v15, %v12240_v9 }
 0x417   :  { %v11303_v36 = vadd.f32 %v3758_v23, %v11108_v20  ;;  %v12245_v20 = vld [vmem:[#allocation35_spill] sm:$0xff] }
 0x418   :  { %v3215_v26 = vpop.f32.mrf.mxu1  ;;  %v3760_v16 = vpop.f32.mrf.mxu0  ;;  %v12247_v23 = vpack.c.bf16 %v12245_v20, %v12246_v40 }
 0x419   :  { %v12248_v26 = vld [vmem:[#allocation51_spill] sm:$0xff]  ;;  %v12249_v16 = vld [vmem:[#allocation50_spill] sm:$0xff] }
 0x41a   :  { %v11307_v5 = vpop.f32.mrf.mxu1  ;;  %v3763_v6 = vpop.f32.mrf.mxu0  ;;  %8885 = vmatmul.mubr.msk.bf16.gmra.mxu1 %vm382_vm0, %v12241_v49  ;;  %8903 = vmatmul.mubr.msk.bf16.gmra.mxu0 %vm382_vm0, %v12244_v12  ;;  %v12250_v3 = vpack.c.bf16 %v12248_v26, %v12249_v16  ;;  %v12254_v26 = vld [vmem:[#allocation53_spill] sm:$0xff]  ;;  %v12255_v16 = vld [vmem:[#allocation52_spill] sm:$0xff] }
 0x41b   :  { %8888 = vmatprep.mubr.msk.bf16.mxu1 %vm382_vm0, %v12247_v23  ;;  %v11328_v49 = vadd.f32 %v3763_v6, %v11115_v42  ;;  %v12256_v42 = vpack.c.bf16 %v12254_v26, %v12255_v16  ;;  %v12258_v6 = vld [vmem:[#allocation54_spill] sm:$0xff] }
 0x41c   :  { %8906 = vmatprep.mubr.msk.bf16.mxu0 %vm382_vm0, %v12250_v3  ;;  %v3220_v52 = vpop.f32.mrf.mxu1  ;;  %v3765_v35 = vpop.f32.mrf.mxu0  ;;  %v12251_v3 = vld [vmem:[#allocation37_spill] sm:$0xff] }
 0x41d   :  { %v12252_v52 = vld [vmem:[#allocation36_spill] sm:$0xff] }
 0x41e   :  { %v11325_v15 = vpop.f32.mrf.mxu1  ;;  %v3766_v9 = vpop.f32.mrf.mxu0  ;;  %v12253_v35 = vpack.c.bf16 %v12251_v3, %v12252_v52 }
 0x41f   :  { %v11331_v56 = vadd.f32 %v3766_v9, %v11128_v55  ;;  %v12257_v55 = vld [vmem:[#allocation55_spill] sm:$0xff] }
 0x420   :  { %v3223_v57 = vpop.f32.mrf.mxu1  ;;  %v3768_v12 = vpop.f32.mrf.mxu0  ;;  %v12259_v9 = vpack.c.bf16 %v12257_v55, %v12258_v6  ;;  %v11363_v6 = vld [vmem:[#allocation6 + $0x40] sm:$0xff]  }
 0x421   :  { %v4831_v20 = vpack.c.bf16 %v11331_v56, %v11328_v49 }
 0x422   :  { %v11335_v40 = vpop.f32.mrf.mxu1  ;;  %v3771_v23 = vpop.f32.mrf.mxu0  ;;  %8889 = vmatmul.mubr.msk.bf16.gmra.mxu1 %vm382_vm0, %v12253_v35  ;;  %8907 = vmatmul.mubr.msk.bf16.gmra.mxu0 %vm382_vm0, %v12256_v42 }
 0x423   :  { %8912 = vmatprep.mubr.msk.bf16.mxu1 %vm382_vm0, %v12259_v9  ;;  %8930 = vmatprep.mubr.msk.bf16.mxu0 %vm382_vm0, %v4675_v58  ;;  %v11356_v35 = vadd.f32 %v3771_v23, %v11135_v48  ;;  %v12260_v58 = vld [vmem:[#allocation57_spill] sm:$0xff]  ;;  %v12261_v9 = vld [vmem:[#allocation56_spill] sm:$0xff]  ;;  %v12263_v48 = vld [vmem:[#allocation59_spill] sm:$0xff] }
 0x424   :  { %v3228_v57 = vpop.f32.mrf.mxu1  ;;  %v3773_v12 = vpop.f32.mrf.mxu0 }
 0x425   :  { %v12262_v57 = vpack.c.bf16 %v12260_v58, %v12261_v9  ;;  %v12267_v58 = vld [vmem:[#allocation60_spill] sm:$0xff] }
 0x426   :  { %v11353_v3 = vpop.f32.mrf.mxu1  ;;  %v3774_v52 = vpop.f32.mrf.mxu0 }
 0x427   :  { %v11359_v26 = vadd.f32 %v3774_v52, %v11148_v43  ;;  %v12264_v43 = vld [vmem:[#allocation58_spill] sm:$0xff] }
 0x428   :  { %v3231_v16 = vpop.f32.mrf.mxu1  ;;  %v3776_v42 = vpop.f32.mrf.mxu0  ;;  %v12265_v23 = vpack.c.bf16 %v12263_v48, %v12264_v43 }
 0x429   :  { %v4832_v55 = vpack.c.bf16 %v11359_v26, %v11356_v35 }
 0x42a   :  { %v11365_v10 = vpop.f32.mrf.mxu1  ;;  %v3779_v45 = vpop.f32.mrf.mxu0  ;;  %8913 = vmatmul.mubr.msk.bf16.vlgmr.msra.gmra.mxu1 %vm382_vm0, %v12262_v57  ;;  %8931 = vmatmul.mubr.msk.bf16.vlgmr.msra.gmra.mxu0 %vm382_vm0, %v4676_v19 }
 0x42b   :  { %8916 = vmatprep.mubr.msk.bf16.mxu1 %vm382_vm0, %v12265_v23  ;;  %8934 = vmatprep.mubr.msk.bf16.mxu0 %vm382_vm0, %v4677_v62  ;;  %v11389_v19 = vadd.f32 %v3779_v45, %v11157_v30  ;;  %v12269_v30 = vld [vmem:[#allocation64_spill] sm:$0xff] }
 0x42c   :  { %v3236_v12 = vpop.f32.mrf.mxu1  ;;  %v3781_v52 = vpop.f32.mrf.mxu0  ;;  %8947 = vmatpush3.bf16.msra.mxu1 %v11243_v11  ;;  %8965 = vmatpush3.bf16.msra.mxu0 %v11245_v33  ;;  %v12266_v33 = vld [vmem:[#allocation62_spill] sm:$0xff] }
 0x42d   :  { %8982 = vmatprep.subr.bf16.mxu1 %v11363_v6  ;;  %v12268_v9 = vpack.c.bf16 %v12266_v33, %v12267_v58 }
 0x42e   :  { %v11386_v61 = vpop.f32.mrf.mxu1  ;;  %v3782_v41 = vpop.f32.mrf.mxu0 }
 0x42f   :  { %v11392_v16 = vadd.f32 %v3782_v41, %v11172_v1  ;;  %v12270_v1 = vld [vmem:[#allocation63_spill] sm:$0xff] }
 0x430   :  { %v3239_v21 = vpop.f32.mrf.mxu1  ;;  %v3784_v7 = vpop.f32.mrf.mxu0  ;;  %v12271_v45 = vpack.c.bf16 %v12269_v30, %v12270_v1 }
 0x431   :  { %v4833_v62 = vpack.c.bf16 %v11392_v16, %v11389_v19  ;;  %v12276_v19 = vpack.c.bf16 %v11215_v28, %v11212_v63  ;;  %v12277_v63 = vpack.c.bf16 %v11067_v59, %v11058_v46  ;;  %v12278_v28 = vpack.c.bf16 %v11239_v44, %v11236_v18 }
 0x432   :  { %v11396_v42 = vpop.f32.mrf.mxu1  ;;  %v3787_v11 = vpop.f32.mrf.mxu0  ;;  %8917 = vmatmul.mubr.msk.bf16.gmra.mxu1 %vm382_vm0, %v12268_v9  ;;  %8935 = vmatmul.mubr.msk.bf16.gmra.mxu0 %vm382_vm0, %v4678_v24 }
 0x433   :  { %8920 = vmatprep.mubr.msk.bf16.mxu1 %vm382_vm0, %v12271_v45  ;;  %8938 = vmatprep.mubr.msk.bf16.mxu0 %vm382_vm0, %v4679_v27  ;;  %v11417_v12 = vadd.f32 %v3787_v11, %v11179_v32  ;;  %v12273_v27 = vpack.c.bf16 %v11039_v29, %v12272_v2  ;;  %v12274_v32 = vpack.c.bf16 %v11195_v13, %v11186_v51 }
 0x434   :  { %v3244_v57 = vpop.f32.mrf.mxu1  ;;  %v3789_v48 = vpop.f32.mrf.mxu0 }
 0x436   :  { %v11414_v43 = vpop.f32.mrf.mxu1  ;;  %v3790_v23 = vpop.f32.mrf.mxu0 }
 0x437   :  { %v11420_v25 = vadd.f32 %v3790_v23, %v11192_v37  ;;  %v12275_v37 = vpack.c.bf16 %v11051_v4, %v11046_v60 }
 0x438   :  { %v3247_v34 = vpop.f32.mrf.mxu1  ;;  %v3792_v24 = vpop.f32.mrf.mxu0 }
 0x439   :  { %v4834_v52 = vpack.c.bf16 %v11420_v25, %v11417_v12 }
 0x43a   :  { %v11424_v41 = vpop.f32.mrf.mxu1  ;;  %v3795_v38 = vpop.f32.mrf.mxu0  ;;  %8921 = vmatmul.mubr.msk.bf16.gmra.mxu1 %vm382_vm0, %v12273_v27  ;;  %8939 = vmatmul.mubr.msk.bf16.gmra.mxu0 %vm382_vm0, %v12274_v32 }
 0x43b   :  { %8924 = vmatprep.mubr.msk.bf16.mxu1 %vm382_vm0, %v12275_v37  ;;  %8942 = vmatprep.mubr.msk.bf16.mxu0 %vm382_vm0, %v12276_v19  ;;  %v3796_v11 = vadd.f32 %v3795_v38, %v11199_v31  ;;  %v12279_v31 = vpack.c.bf16 %v11275_v54, %v11272_v14  ;;  %v12280_v14 = vpack.c.bf16 %v11303_v36, %v11300_v22 }
 0x43c   :  { %v3252_v16 = vpop.f32.mrf.mxu1  ;;  %v3797_v21 = vpop.f32.mrf.mxu0 }
 0x43e   :  { %v11442_v29 = vpop.f32.mrf.mxu1  ;;  %v3798_v7 = vpop.f32.mrf.mxu0 }
 0x43f   :  { %v3799_v51 = vadd.f32 %v3798_v7, %v11209_v53 }
 0x440   :  { %v3255_v13 = vpop.f32.mrf.mxu1  ;;  %v3800_v33 = vpop.f32.mrf.mxu0 }
 0x441   :  { %v4835_v58 = vpack.c.bf16 %v3799_v51, %v3796_v11 }
 0x442   :  { %v11446_v60 = vpop.f32.mrf.mxu1  ;;  %v3803_v4 = vpop.f32.mrf.mxu0  ;;  %8925 = vmatmul.mubr.msk.bf16.gmra.mxu1 %vm382_vm0, %v12277_v63  ;;  %8943 = vmatmul.mubr.msk.bf16.gmra.mxu0 %vm382_vm0, %v12278_v28 }
 0x443   :  { %8948 = vmatprep.mubr.msk.bf16.mxu1 %vm382_vm0, %v12279_v31  ;;  %v3804_v45 = vadd.f32 %v3803_v4, %v11219_v39 }
 0x444   :  { %v3260_v53 = vpop.f32.mrf.mxu1  ;;  %v3805_v9 = vpop.f32.mrf.mxu0 }
 0x446   :  { %v11460_v30 = vpop.f32.mrf.mxu1  ;;  %v3806_v1 = vpop.f32.mrf.mxu0 }
 0x447   :  { %v3807_v46 = vadd.f32 %v3806_v1, %v11233_v8 }
 0x448   :  { %v3263_v59 = vpop.f32.mrf.mxu1  ;;  %v3808_v57 = vpop.f32.mrf.mxu0 }
 0x449   :  { %v4836_v48 = vpack.c.bf16 %v3807_v46, %v3804_v45 }
 0x44a   :  { %v11464_v18 = vpop.f32.mrf.mxu1  ;;  %v3811_v44 = vpop.f32.mrf.mxu0  ;;  %8949 = vmatmul.mubr.msk.bf16.vlgmr.msra.gmra.mxu1 %vm382_vm0, %v12280_v14 }
 0x44b   :  { %8952 = vmatprep.mubr.msk.bf16.mxu1 %vm382_vm0, %v4831_v20  ;;  %8983 = vmatpush3.bf16.msra.mxu1 %v11363_v6  ;;  %v3812_v12 = vadd.f32 %v3811_v44, %v11247_v0 }
 0x44c   :  { %v3268_v39 = vpop.f32.mrf.mxu1  ;;  %v3813_v8 = vpop.f32.mrf.mxu0 }
 0x44e   :  { %v11475_v54 = vpop.f32.mrf.mxu1  ;;  %v3814_v23 = vpop.f32.mrf.mxu0 }
 0x44f   :  { %v3815_v25 = vadd.f32 %v3814_v23, %v11269_v47 }
 0x450   :  { %v3271_v34 = vpop.f32.mrf.mxu1  ;;  %v3816_v22 = vpop.f32.mrf.mxu0 }
 0x451   :  { %v4983_v36 = vpack.c.bf16 %v3815_v25, %v3812_v12 }
 0x452   :  { %v11479_v24 = vpop.f32.mrf.mxu1  ;;  %v3819_v38 = vpop.f32.mrf.mxu0  ;;  %8953 = vmatmul.mubr.msk.bf16.gmra.mxu1 %vm382_vm0, %v4832_v55 }
 0x453   :  { %8956 = vmatprep.mubr.msk.bf16.mxu1 %vm382_vm0, %v4833_v62  ;;  %8966 = vmatprep.mubr.msk.bf16.mxu0 %vm382_vm0, %v4983_v36  ;;  %v3820_v20 = vadd.f32 %v3819_v38, %v11279_v17 }
 0x454   :  { %v3276_v49 = vpop.f32.mrf.mxu1  ;;  %v3821_v56 = vpop.f32.mrf.mxu0 }
 0x456   :  { %v11487_v0 = vpop.f32.mrf.mxu1  ;;  %v3822_v47 = vpop.f32.mrf.mxu0 }
 0x457   :  { %v3823_v6 = vadd.f32 %v3822_v47, %v11297_v50 }
 0x458   :  { %v3279_v2 = vpop.f32.mrf.mxu1  ;;  %v3824_v27 = vpop.f32.mrf.mxu0 }
 0x459   :  { %v4984_v32 = vpack.c.bf16 %v3823_v6, %v3820_v20 }
 0x45a   :  { %v11491_v37 = vpop.f32.mrf.mxu1  ;;  %v3827_v35 = vpop.f32.mrf.mxu0  ;;  %8957 = vmatmul.mubr.msk.bf16.gmra.mxu1 %vm382_vm0, %v4834_v52 }
 0x45b   :  { %8967 = vmatmul.mubr.msk.bf16.vlgmr.msra.gmra.mxu0 %vm382_vm0, %v4984_v32  ;;  %8960 = vmatprep.mubr.msk.bf16.mxu1 %vm382_vm0, %v4835_v58  ;;  %v3828_v17 = vadd.f32 %v3827_v35, %v11307_v5 }
 0x45c   :  { %v3284_v26 = vpop.f32.mrf.mxu1  ;;  %v3829_v55 = vpop.f32.mrf.mxu0 }
 0x45e   :  { %v11496_v62 = vpop.f32.mrf.mxu1  ;;  %v3830_v19 = vpop.f32.mrf.mxu0 }
 0x45f   :  { %v3831_v50 = vadd.f32 %v3830_v19, %v11325_v15 }
 0x460   :  { %v3287_v16 = vpop.f32.mrf.mxu1  ;;  %v3832_v21 = vpop.f32.mrf.mxu0 }
 0x461   :  { %v4985_v7 = vpack.c.bf16 %v3831_v50, %v3828_v17 }
 0x462   :  { %v11500_v11 = vpop.f32.mrf.mxu1  ;;  %v3835_v51 = vpop.f32.mrf.mxu0  ;;  %8961 = vmatmul.mubr.msk.bf16.gmra.mxu1 %vm382_vm0, %v4836_v48 }
 0x463   :  { %8970 = vmatprep.mubr.msk.bf16.mxu0 %vm382_vm0, %v4985_v7  ;;  %v3836_v4 = vadd.f32 %v3835_v51, %v11335_v40 }
 0x464   :  { %v3292_v52 = vpop.f32.mrf.mxu1  ;;  %v3837_v13 = vpop.f32.mrf.mxu0 }
 0x466   :  { %v11504_v33 = vpop.f32.mrf.mxu1  ;;  %v3838_v58 = vpop.f32.mrf.mxu0 }
 0x467   :  { %v3839_v5 = vadd.f32 %v3838_v58, %v11353_v3 }
 0x468   :  { %v3295_v15 = vpop.f32.mrf.mxu1  ;;  %v3840_v63 = vpop.f32.mrf.mxu0 }
 0x469   :  { %v4986_v28 = vpack.c.bf16 %v3839_v5, %v3836_v4 }
 0x46a   :  { %v11508_v31 = vpop.f32.mrf.mxu1  ;;  %v3843_v53 = vpop.f32.mrf.mxu0 }
 0x46b   :  { %8971 = vmatmul.mubr.msk.bf16.gmra.mxu0 %vm382_vm0, %v4986_v28  ;;  %v3844_v59 = vadd.f32 %v3843_v53, %v11365_v10 }
 0x46c   :  { %v3300_v9 = vpop.f32.mrf.mxu1  ;;  %v3845_v1 = vpop.f32.mrf.mxu0 }
 0x46e   :  { %v11511_v45 = vpop.f32.mrf.mxu1  ;;  %v3846_v46 = vpop.f32.mrf.mxu0 }
 0x46f   :  { %v3847_v57 = vadd.f32 %v3846_v46, %v11386_v61 }
 0x470   :  { %v3303_v40 = vpop.f32.mrf.mxu1  ;;  %v3848_v48 = vpop.f32.mrf.mxu0 }
 0x471   :  { %v4987_v3 = vpack.c.bf16 %v3847_v57, %v3844_v59 }
 0x472   :  { %v11515_v44 = vpop.f32.mrf.mxu1  ;;  %v3851_v14 = vpop.f32.mrf.mxu0 }
 0x473   :  { %8974 = vmatprep.mubr.msk.bf16.mxu0 %vm382_vm0, %v4987_v3  ;;  %v3852_v25 = vadd.f32 %v3851_v14, %v11396_v42 }
 0x474   :  { %v3308_v39 = vpop.f32.mrf.mxu1  ;;  %v3853_v8 = vpop.f32.mrf.mxu0 }
 0x476   :  { %v11518_v23 = vpop.f32.mrf.mxu1  ;;  %v3854_v12 = vpop.f32.mrf.mxu0 }
 0x477   :  { %v3855_v34 = vadd.f32 %v3854_v12, %v11414_v43 }
 0x478   :  { %v3311_v10 = vpop.f32.mrf.mxu1  ;;  %v3856_v22 = vpop.f32.mrf.mxu0 }
 0x479   :  { %v4988_v61 = vpack.c.bf16 %v3855_v34, %v3852_v25 }
 0x47a   :  { %v11522_v36 = vpop.f32.mrf.mxu1  ;;  %v3859_v38 = vpop.f32.mrf.mxu0 }
 0x47b   :  { %8975 = vmatmul.mubr.msk.bf16.gmra.mxu0 %vm382_vm0, %v4988_v61  ;;  %v3860_v6 = vadd.f32 %v3859_v38, %v11424_v41 }
 0x47c   :  { %v3316_v49 = vpop.f32.mrf.mxu1  ;;  %v3861_v56 = vpop.f32.mrf.mxu0 }
 0x47e   :  { %v11525_v47 = vpop.f32.mrf.mxu1  ;;  %v3862_v20 = vpop.f32.mrf.mxu0 }
 0x47f   :  { %v3863_v2 = vadd.f32 %v3862_v20, %v11442_v29 }
 0x480   :  { %v3319_v42 = vpop.f32.mrf.mxu1  ;;  %v3864_v27 = vpop.f32.mrf.mxu0 }
 0x481   :  { %v4989_v43 = vpack.c.bf16 %v3863_v2, %v3860_v6 }
 0x482   :  { %v11529_v32 = vpop.f32.mrf.mxu1  ;;  %v3867_v35 = vpop.f32.mrf.mxu0 }
 0x483   :  { %8978 = vmatprep.mubr.msk.bf16.mxu0 %vm382_vm0, %v4989_v43  ;;  %v3868_v50 = vadd.f32 %v3867_v35, %v11446_v60 }
 0x484   :  { %v3324_v26 = vpop.f32.mrf.mxu1  ;;  %v3869_v55 = vpop.f32.mrf.mxu0 }
 0x486   :  { %v11532_v19 = vpop.f32.mrf.mxu1  ;;  %v3870_v17 = vpop.f32.mrf.mxu0 }
 0x487   :  { %v3871_v16 = vadd.f32 %v3870_v17, %v11460_v30 }
 0x488   :  { %v3327_v41 = vpop.f32.mrf.mxu1  ;;  %v3872_v21 = vpop.f32.mrf.mxu0 }
 0x489   :  { %v4990_v29 = vpack.c.bf16 %v3871_v16, %v3868_v50 }
 0x48a   :  { %v3875_v7 = vpop.f32.mrf.mxu0  ;;  %v8842_v51 = vpop.f32.mrf.mxu1 }
 0x48b   :  { %8979 = vmatmul.mubr.msk.bf16.gmra.mxu0 %vm382_vm0, %v4990_v29  ;;  %v3876_v5 = vadd.f32 %v3875_v7, %v11464_v18 }
 0x48c   :  { %v3877_v52 = vpop.f32.mrf.mxu0  ;;  %v4023_v13 = vpop.f32.mrf.mxu1 }
 0x48e   :  { %v3878_v58 = vpop.f32.mrf.mxu0  ;;  %v8843_v4 = vpop.f32.mrf.mxu1 }
 0x48f   :  { %v3879_v15 = vadd.f32 %v3878_v58, %v11475_v54 }
 0x490   :  { %v3880_v63 = vpop.f32.mrf.mxu0  ;;  %v11539_v28 = vpop.f32.mrf.mxu1 }
 0x491   :  { %v5137_v60 = vpack.c.bf16 %v3879_v15, %v3876_v5 }
 0x492   :  { %v3883_v30 = vpop.f32.mrf.mxu0  ;;  %v8846_v53 = vpop.f32.mrf.mxu1 }
 0x493   :  { %8984 = vmatprep.mubr.msk.bf16.mxu1 %vm382_vm0, %v5137_v60  ;;  %v3884_v57 = vadd.f32 %v3883_v30, %v11479_v24 }
 0x494   :  { %v3885_v9 = vpop.f32.mrf.mxu0  ;;  %v4039_v1 = vpop.f32.mrf.mxu1 }
 0x496   :  { %v3886_v46 = vpop.f32.mrf.mxu0  ;;  %v8847_v59 = vpop.f32.mrf.mxu1 }
 0x497   :  { %v3887_v40 = vadd.f32 %v3886_v46, %v11487_v0 }
 0x498   :  { %v3888_v48 = vpop.f32.mrf.mxu0  ;;  %v11544_v18 = vpop.f32.mrf.mxu1 }
 0x499   :  { %v5138_v54 = vpack.c.bf16 %v3887_v40, %v3884_v57 }
 0x49a   :  { %v3891_v3 = vpop.f32.mrf.mxu0  ;;  %v8850_v14 = vpop.f32.mrf.mxu1 }
 0x49b   :  { %8985 = vmatmul.mubr.msk.bf16.vlgmr.msra.gmra.mxu1 %vm382_vm0, %v5138_v54  ;;  %v3892_v34 = vadd.f32 %v3891_v3, %v11491_v37 }
 0x49c   :  { %v3893_v39 = vpop.f32.mrf.mxu0  ;;  %v4055_v8 = vpop.f32.mrf.mxu1 }
 0x49e   :  { %v3894_v12 = vpop.f32.mrf.mxu0  ;;  %v8851_v25 = vpop.f32.mrf.mxu1 }
 0x49f   :  { %v3895_v10 = vadd.f32 %v3894_v12, %v11496_v62 }
 0x4a0   :  { %v3896_v22 = vpop.f32.mrf.mxu0  ;;  %v11549_v24 = vpop.f32.mrf.mxu1 }
 0x4a1   :  { %v5139_v0 = vpack.c.bf16 %v3895_v10, %v3892_v34 }
 0x4a2   :  { %v3899_v61 = vpop.f32.mrf.mxu0  ;;  %v8854_v38 = vpop.f32.mrf.mxu1 }
 0x4a3   :  { %8988 = vmatprep.mubr.msk.bf16.mxu1 %vm382_vm0, %v5139_v0  ;;  %v3900_v2 = vadd.f32 %v3899_v61, %v11500_v11 }
 0x4a4   :  { %v3901_v49 = vpop.f32.mrf.mxu0  ;;  %v4071_v56 = vpop.f32.mrf.mxu1 }
 0x4a6   :  { %v3902_v20 = vpop.f32.mrf.mxu0  ;;  %v8855_v6 = vpop.f32.mrf.mxu1 }
 0x4a7   :  { %v3903_v42 = vadd.f32 %v3902_v20, %v11504_v33 }
 0x4a8   :  { %v3904_v27 = vpop.f32.mrf.mxu0  ;;  %v11554_v37 = vpop.f32.mrf.mxu1 }
 0x4a9   :  { %v5140_v62 = vpack.c.bf16 %v3903_v42, %v3900_v2 }
 0x4aa   :  { %v3907_v43 = vpop.f32.mrf.mxu0  ;;  %v8860_v35 = vpop.f32.mrf.mxu1 }
 0x4ab   :  { %v4159_v26 = vadd.f32 %v8860_v35, %v8842_v51  ;;  %8989 = vmatmul.mubr.msk.bf16.gmra.mxu1 %vm382_vm0, %v5140_v62  ;;  %v3908_v21 = vadd.f32 %v3907_v43, %v11508_v31 }
 0x4ac   :  { %v3909_v55 = vpop.f32.mrf.mxu0  ;;  %v4150_v17 = vpop.f32.mrf.mxu1 }
 0x4ad   :  { %v4151_v50 = vadd.f32 %v4150_v17, %v4023_v13 }
 0x4ae   :  { %v3910_v16 = vpop.f32.mrf.mxu0  ;;  %v8861_v41 = vpop.f32.mrf.mxu1 }
 0x4af   :  { %v3911_v11 = vadd.f32 %v3910_v16, %v11511_v45  ;;  %v4162_v29 = vadd.f32 %v8861_v41, %v8843_v4 }
 0x4b0   :  { %v3912_v33 = vpop.f32.mrf.mxu0  ;;  %v11559_v7 = vpop.f32.mrf.mxu1 }
 0x4b1   :  { %v5141_v52 = vpack.c.bf16 %v3911_v11, %v3908_v21 }
 0x4b2   :  { %v3915_v58 = vpop.f32.mrf.mxu0  ;;  %v8864_v5 = vpop.f32.mrf.mxu1 }
 0x4b3   :  { %v4175_v15 = vadd.f32 %v8864_v5, %v8846_v53  ;;  %8992 = vmatprep.mubr.msk.bf16.mxu1 %vm382_vm0, %v5141_v52  ;;  %v3916_v9 = vadd.f32 %v3915_v58, %v11515_v44 }
 0x4b4   :  { %v3917_v51 = vpop.f32.mrf.mxu0  ;;  %v4166_v63 = vpop.f32.mrf.mxu1 }
 0x4b5   :  { %v4167_v60 = vadd.f32 %v4166_v63, %v4039_v1 }
 0x4b6   :  { %v3918_v13 = vpop.f32.mrf.mxu0  ;;  %v8865_v30 = vpop.f32.mrf.mxu1 }
 0x4b7   :  { %v3919_v31 = vadd.f32 %v3918_v13, %v11518_v23  ;;  %v4178_v45 = vadd.f32 %v8865_v30, %v8847_v59 }
 0x4b8   :  { %v3920_v4 = vpop.f32.mrf.mxu0  ;;  %v11564_v46 = vpop.f32.mrf.mxu1 }
 0x4b9   :  { %v5142_v57 = vpack.c.bf16 %v3919_v31, %v3916_v9 }
 0x4ba   :  { %v3923_v40 = vpop.f32.mrf.mxu0  ;;  %v8868_v48 = vpop.f32.mrf.mxu1 }
 0x4bb   :  { %v4191_v54 = vadd.f32 %v8868_v48, %v8850_v14  ;;  %8993 = vmatmul.mubr.msk.bf16.gmra.mxu1 %vm382_vm0, %v5142_v57  ;;  %v3924_v34 = vadd.f32 %v3923_v40, %v11522_v36 }
 0x4bc   :  { %v3925_v53 = vpop.f32.mrf.mxu0  ;;  %v4182_v3 = vpop.f32.mrf.mxu1 }
 0x4bd   :  { %v4183_v39 = vadd.f32 %v4182_v3, %v4055_v8 }
 0x4be   :  { %v3926_v1 = vpop.f32.mrf.mxu0  ;;  %v8869_v12 = vpop.f32.mrf.mxu1 }
 0x4bf   :  { %v3927_v44 = vadd.f32 %v3926_v1, %v11525_v47  ;;  %v4194_v23 = vadd.f32 %v8869_v12, %v8851_v25 }
 0x4c0   :  { %v3928_v59 = vpop.f32.mrf.mxu0  ;;  %v11569_v10 = vpop.f32.mrf.mxu1 }
 0x4c1   :  { %v5143_v22 = vpack.c.bf16 %v3927_v44, %v3924_v34 }
 0x4c2   :  { %v3931_v0 = vpop.f32.mrf.mxu0  ;;  %v8872_v61 = vpop.f32.mrf.mxu1 }
 0x4c3   :  { %v4207_v49 = vadd.f32 %v8872_v61, %v8854_v38  ;;  %8996 = vmatprep.mubr.msk.bf16.mxu1 %vm382_vm0, %v5143_v22  ;;  %v3932_v27 = vadd.f32 %v3931_v0, %v11529_v32 }
 0x4c4   :  { %v3933_v14 = vpop.f32.mrf.mxu0  ;;  %v4198_v20 = vpop.f32.mrf.mxu1 }
 0x4c5   :  { %v4199_v2 = vadd.f32 %v4198_v20, %v4071_v56 }
 0x4c6   :  { %v3934_v8 = vpop.f32.mrf.mxu0  ;;  %v8873_v42 = vpop.f32.mrf.mxu1 }
 0x4c7   :  { %v3935_v36 = vadd.f32 %v3934_v8, %v11532_v19  ;;  %v4210_v47 = vadd.f32 %v8873_v42, %v8855_v6 }
 0x4c8   :  { %v3936_v25 = vpop.f32.mrf.mxu0  ;;  %v11574_v62 = vpop.f32.mrf.mxu1 }
 0x4c9   :  { %v5144_v43 = vpack.c.bf16 %v3935_v36, %v3932_v27 }
 0x4ca   :  { %v8878_v35 = vpop.f32.mrf.mxu1  ;;  %v8896_v55 = vpop.f32.mrf.mxu0 }
 0x4cb   :  { %v4353_v17 = vadd.f32 %v8878_v35, %v4159_v26  ;;  %8997 = vmatmul.mubr.msk.bf16.gmra.mxu1 %vm382_vm0, %v5144_v43  ;;  %vm5360_vm0 = vcmask 261120  }
 0x4cc   :  { %v4288_v38 = vpop.f32.mrf.mxu1  ;;  %v11577_v16 = vpop.f32.mrf.mxu0 }
 0x4cd   :  { %v4507_v56 = vadd.f32 %v8896_v55, %v4353_v17  ;;  %v11579_v41 = vadd.f32 %v4288_v38, %v4151_v50 }
 0x4ce   :  { %v8879_v21 = vpop.f32.mrf.mxu1  ;;  %v11581_v32 = vpop.f32.mrf.mxu0 }
 0x4cf   :  { %v11583_v19 = vadd.f32 %v8879_v21, %v4162_v29 }
 0x4d0   :  { %v11585_v6 = vpop.f32.mrf.mxu1  ;;  %v11587_v11 = vpop.f32.mrf.mxu0 }
 0x4d2   :  { %v8882_v33 = vpop.f32.mrf.mxu1  ;;  %v8900_v52 = vpop.f32.mrf.mxu0 }
 0x4d3   :  { %v4357_v26 = vadd.f32 %v8882_v33, %v4175_v15 }
 0x4d4   :  { %v4304_v58 = vpop.f32.mrf.mxu1  ;;  %v11589_v5 = vpop.f32.mrf.mxu0 }
 0x4d5   :  { %v4511_v51 = vadd.f32 %v8900_v52, %v4357_v26  ;;  %v11591_v63 = vadd.f32 %v4304_v58, %v4167_v60 }
 0x4d6   :  { %v8883_v50 = vpop.f32.mrf.mxu1  ;;  %v11593_v13 = vpop.f32.mrf.mxu0 }
 0x4d7   :  { %v11595_v30 = vadd.f32 %v8883_v50, %v4178_v45 }
 0x4d8   :  { %v11597_v29 = vpop.f32.mrf.mxu1  ;;  %v11599_v9 = vpop.f32.mrf.mxu0 }
 0x4da   :  { %v8886_v31 = vpop.f32.mrf.mxu1  ;;  %v8904_v4 = vpop.f32.mrf.mxu0 }
 0x4db   :  { %v4361_v57 = vadd.f32 %v8886_v31, %v4191_v54 }
 0x4dc   :  { %v4320_v40 = vpop.f32.mrf.mxu1  ;;  %v11601_v15 = vpop.f32.mrf.mxu0 }
 0x4dd   :  { %v4515_v48 = vadd.f32 %v8904_v4, %v4361_v57  ;;  %v11603_v53 = vadd.f32 %v4320_v40, %v4183_v39 }
 0x4de   :  { %v8887_v60 = vpop.f32.mrf.mxu1  ;;  %v11605_v3 = vpop.f32.mrf.mxu0 }
 0x4df   :  { %v11607_v1 = vadd.f32 %v8887_v60, %v4194_v23 }
 0x4e0   :  { %v11609_v45 = vpop.f32.mrf.mxu1  ;;  %v11611_v12 = vpop.f32.mrf.mxu0 }
 0x4e2   :  { %v8890_v34 = vpop.f32.mrf.mxu1  ;;  %v8908_v59 = vpop.f32.mrf.mxu0 }
 0x4e3   :  { %v4365_v44 = vadd.f32 %v8890_v34, %v4207_v49 }
 0x4e4   :  { %v4336_v22 = vpop.f32.mrf.mxu1  ;;  %v11641_v33 = vpop.f32.mrf.mxu0 }
 0x4e5   :  { %v4519_v54 = vadd.f32 %v8908_v59, %v4365_v44  ;;  %v11613_v0 = vadd.f32 %v4336_v22, %v4199_v2 }
 0x4e6   :  { %v8891_v61 = vpop.f32.mrf.mxu1  ;;  %v11643_v52 = vpop.f32.mrf.mxu0 }
 0x4e7   :  { %v11615_v14 = vadd.f32 %v8891_v61, %v4210_v47 }
 0x4e8   :  { %v11617_v39 = vpop.f32.mrf.mxu1  ;;  %v11645_v26 = vpop.f32.mrf.mxu0 }
 0x4e9   :  { %12286 = vst [vmem:[#allocation38_spill] sm:$0xff] %v11645_v26 }
 0x4ea   :  { %v8914_v20 = vpop.f32.mrf.mxu1 }
 0x4eb   :  { %v11619_v8 = vadd.f32 %v8914_v20, %v4507_v56 }
 0x4ec   :  { %v4596_v23 = vpop.f32.mrf.mxu1 }
 0x4ee   :  { %v11621_v42 = vpop.f32.mrf.mxu1 }
 0x4f0   :  { %v4599_v27 = vpop.f32.mrf.mxu1 }
 0x4f2   :  { %v8918_v36 = vpop.f32.mrf.mxu1 }
 0x4f3   :  { %v11623_v25 = vadd.f32 %v8918_v36, %v4511_v51  ;;  %v8932_v51 = vpop.f32.mrf.mxu0 }
 0x4f4   :  { %v11625_v49 = vpop.f32.mrf.mxu1 }
 0x4f5   :  { %v4750_v31 = vpop.f32.mrf.mxu0 }
 0x4f6   :  { %v11627_v43 = vpop.f32.mrf.mxu1 }
 0x4f7   :  { %v8933_v57 = vpop.f32.mrf.mxu0 }
 0x4f8   :  { %v11629_v2 = vpop.f32.mrf.mxu1 }
 0x4fa   :  { %v8922_v47 = vpop.f32.mrf.mxu1 }
 0x4fb   :  { %v11631_v35 = vadd.f32 %v8922_v47, %v4515_v48  ;;  %v4753_v48 = vpop.f32.mrf.mxu0 }
 0x4fc   :  { %v11633_v55 = vpop.f32.mrf.mxu1 }
 0x4fd   :  { %12281 = vst [vmem:[#allocation21_spill] sm:$0xff] %v11631_v35  ;;  %12282 = vst [vmem:[#allocation20_spill] sm:$0xff] %v11633_v55  ;;  %v11653_v34 = vpop.f32.mrf.mxu0 }
 0x4fe   :  { %v11635_v17 = vpop.f32.mrf.mxu1 }
 0x4ff   :  { %12283 = vst [vmem:[#allocation23_spill] sm:$0xff] %v11635_v17  ;;  %v11655_v59 = vpop.f32.mrf.mxu0 }
 0x500   :  { %v11637_v38 = vpop.f32.mrf.mxu1 }
 0x501   :  { %12284 = vst [vmem:[#allocation22_spill] sm:$0xff] %v11637_v38 }
 0x502   :  { %v8926_v56 = vpop.f32.mrf.mxu1 }
 0x503   :  { %v11639_v21 = vadd.f32 %v8926_v56, %v4519_v54  ;;  %v11657_v54 = vpop.f32.mrf.mxu0 }
 0x504   :  { %v11647_v58 = vpop.f32.mrf.mxu1  ;;  %12290 = vst [vmem:[#allocation40_spill] sm:$0xff] %v11657_v54 }
 0x505   :  { %12285 = vst [vmem:[#allocation39_spill] sm:$0xff] %v11639_v21  ;;  %12287 = vst [vmem:[#allocation25_spill] sm:$0xff] %v11647_v58  ;;  %v11661_v20 = vpop.f32.mrf.mxu0 }
 0x506   :  { %v11649_v50 = vpop.f32.mrf.mxu1  ;;  %12292 = vst [vmem:[#allocation26_spill] sm:$0xff] %v11661_v20 }
 0x507   :  { %12288 = vst [vmem:[#allocation24_spill] sm:$0xff] %v11649_v50  ;;  %v11665_v47 = vpop.f32.mrf.mxu0 }
 0x508   :  { %v11651_v4 = vpop.f32.mrf.mxu1  ;;  %12293 = vst [vmem:[#allocation43_spill] sm:$0xff] %v11665_v47 }
 0x509   :  { %12289 = vst [vmem:[#allocation41_spill] sm:$0xff] %v11651_v4  ;;  %v11669_v4 = vpop.f32.mrf.mxu0 }
 0x50a   :  { %v8950_v40 = vpop.f32.mrf.mxu1  ;;  %12295 = vst [vmem:[#allocation61_spill] sm:$0xff] %v11669_v4 }
 0x50b   :  { %v11673_v50 = vpop.f32.mrf.mxu0 }
 0x50c   :  { %v4904_v60 = vpop.f32.mrf.mxu1  ;;  %12297 = vst [vmem:[#allocation28_spill] sm:$0xff] %v11673_v50 }
 0x50d   :  { %v11677_v38 = vpop.f32.mrf.mxu0 }
 0x50e   :  { %v8951_v44 = vpop.f32.mrf.mxu1  ;;  %12299 = vst [vmem:[#allocation44_spill] sm:$0xff] %v11677_v38 }
 0x510   :  { %v4907_v22 = vpop.f32.mrf.mxu1 }
 0x512   :  { %v11659_v61 = vpop.f32.mrf.mxu1 }
 0x513   :  { %12291 = vst [vmem:[#allocation27_spill] sm:$0xff] %v11659_v61  ;;  %v11681_v61 = vpop.f32.mrf.mxu0 }
 0x514   :  { %v11663_v36 = vpop.f32.mrf.mxu1  ;;  %12301 = vst [vmem:[#allocation30_spill] sm:$0xff] %v11681_v61 }
 0x515   :  { %v11685_v54 = vpop.f32.mrf.mxu0 }
 0x516   :  { %v11667_v56 = vpop.f32.mrf.mxu1  ;;  %12303 = vst [vmem:[#allocation46_spill] sm:$0xff] %v11685_v54  ;;  %v4505_v54 = vadd.f32 %v11577_v16, %v11579_v41 }
 0x517   :  { %12294 = vst [vmem:[#allocation42_spill] sm:$0xff] %v11667_v56  ;;  %v11689_v56 = vpop.f32.mrf.mxu0 }
 0x518   :  { %v11671_v21 = vpop.f32.mrf.mxu1  ;;  %12305 = vst [vmem:[#allocation32_spill] sm:$0xff] %v11689_v56 }
 0x519   :  { %12296 = vst [vmem:[#allocation29_spill] sm:$0xff] %v11671_v21  ;;  %v11693_v21 = vpop.f32.mrf.mxu0 }
 0x51a   :  { %v11675_v58 = vpop.f32.mrf.mxu1  ;;  %12307 = vst [vmem:[#allocation48_spill] sm:$0xff] %v11693_v21 }
 0x51b   :  { %12298 = vst [vmem:[#allocation45_spill] sm:$0xff] %v11675_v58  ;;  %v4154_v58 = vadd.f32 %v11559_v7, %v11539_v28  ;;  %v4508_v7 = vadd.f32 %v11581_v32, %v11583_v19  ;;  %v4509_v32 = vadd.f32 %v11589_v5, %v11591_v63  ;;  %v4202_v63 = vadd.f32 %v11574_v62, %v11554_v37 }
 0x51c   :  { %v11679_v17 = vpop.f32.mrf.mxu1 }
 0x51d   :  { %12300 = vst [vmem:[#allocation31_spill] sm:$0xff] %v11679_v17  ;;  %v8968_v17 = vpop.f32.mrf.mxu0  ;;  %v4352_v61 = vadd.f32 %v11585_v6, %v4154_v58  ;;  %v4662_v55 = vadd.f32 %v11621_v42, %v4508_v7  ;;  %v4186_v42 = vadd.f32 %v11569_v10, %v11549_v24  ;;  %v4512_v10 = vadd.f32 %v11593_v13, %v11595_v30  ;;  %v12316_v7 = vld [vmem:[#allocation27_spill] sm:$0xff] }
 0x51e   :  { %v11683_v35 = vpop.f32.mrf.mxu1 }
 0x51f   :  { %12302 = vst [vmem:[#allocation47_spill] sm:$0xff] %v11683_v35  ;;  %v4506_v56 = vadd.f32 %v11587_v11, %v4352_v61  ;;  %v4659_v35 = vadd.f32 %v4596_v23, %v4505_v54  ;;  %v4170_v11 = vadd.f32 %v11564_v46, %v11544_v18  ;;  %v4815_v23 = vadd.f32 %v8932_v51, %v11619_v8  ;;  %v11719_v8 = vld [vmem:[#allocation13 + $0x1] ss:$0 sm:$0xff] }
 0x520   :  { %v11687_v47 = vpop.f32.mrf.mxu1  ;;  %v4663_v18 = vadd.f32 %v11625_v49, %v4509_v32  ;;  %v4360_v51 = vadd.f32 %v11609_v45, %v4186_v42  ;;  %v4513_v49 = vadd.f32 %v11601_v15, %v11603_v53  ;;  %v4516_v45 = vadd.f32 %v11605_v3, %v11607_v1  ;;  %v12319_v42 = vld [vmem:[#allocation23_spill] sm:$0xff] }
 0x521   :  { %12304 = vst [vmem:[#allocation33_spill] sm:$0xff] %v11687_v47  ;;  %v5058_v47 = vpop.f32.mrf.mxu0  ;;  %v4813_v28 = vadd.f32 %v4750_v31, %v4659_v35  ;;  %v4356_v19 = vadd.f32 %v11597_v29, %v4170_v11  ;;  %v4969_v31 = vadd.f32 %v8950_v40, %v4815_v23  ;;  %v4517_v15 = vadd.f32 %v11641_v33, %v11613_v0  ;;  %v12312_v0 = vld [vmem:[#allocation26_spill] sm:$0xff] }
 0x522   :  { %v11691_v4 = vpop.f32.mrf.mxu1 }
 0x523   :  { %12306 = vst [vmem:[#allocation49_spill] sm:$0xff] %v11691_v4  ;;  %v4660_v4 = vadd.f32 %v4599_v27, %v4506_v56  ;;  %v8969_v21 = vpop.f32.mrf.mxu0  ;;  %v4967_v58 = vadd.f32 %v4904_v60, %v4813_v28  ;;  %v5123_v46 = vadd.f32 %v8968_v17, %v4969_v31  ;;  %v4510_v29 = vadd.f32 %v11599_v9, %v4356_v19  ;;  %v12314_v28 = vld [vmem:[#allocation21_spill] sm:$0xff] }
 0x524   :  { %v11697_v38 = vpop.f32.mrf.mxu1  ;;  %v4364_v17 = vadd.f32 %v11617_v39, %v4202_v63  ;;  %v4514_v9 = vadd.f32 %v11611_v12, %v4360_v51  ;;  %v11744_v39 = vadd.f32 %v11643_v52, %v11615_v14  ;;  %v4819_v12 = vadd.f32 %v11653_v34, %v11623_v25  ;;  %v12315_v14 = vld [vmem:[#allocation43_spill] sm:$0xff] }
 0x525   :  { %12308 = vst [vmem:[#allocation35_spill] sm:$0xff] %v11697_v38  ;;  %v4814_v38 = vadd.f32 %v4753_v48, %v4660_v4  ;;  %v5121_v27 = vadd.f32 %v5058_v47, %v4967_v58  ;;  %v4664_v37 = vadd.f32 %v11629_v2, %v4510_v29  ;;  %v12310_v2 = vld [vmem:[#allocation20_spill] sm:$0xff]  ;;  %v4823_v52 = vadd.f32 %v12315_v14, %v12314_v28  ;;  %v12321_v29 = vld [vmem:[#allocation42_spill] sm:$0xff] }
 0x526   :  { %v11700_v50 = vpop.f32.mrf.mxu1  ;;  %v12313_v47 = vld [vmem:[#allocation40_spill] sm:$0xff] }
 0x527   :  { %12309 = vst [vmem:[#allocation34_spill] sm:$0xff] %v11700_v50  ;;  %v5061_v50 = vpop.f32.mrf.mxu0  ;;  %v4968_v16 = vadd.f32 %v4907_v22, %v4814_v38  ;;  %v4816_v38 = vadd.f32 %v8933_v57, %v4662_v55  ;;  %v4817_v57 = vadd.f32 %v11655_v59, %v4663_v18  ;;  %v4818_v33 = vadd.f32 %v12312_v0, %v4664_v37 }
 0x528   :  { %v11705_v20 = vpop.f32.mrf.mxu1 }
 0x529   :  { %v5122_v54 = vadd.f32 %v5061_v50, %v4968_v16  ;;  %v4970_v50 = vadd.f32 %v8951_v44, %v4816_v38  ;;  %v4971_v53 = vadd.f32 %v11663_v36, %v4817_v57  ;;  %v12311_v44 = vld [vmem:[#allocation38_spill] sm:$0xff]  ;;  %v4670_v38 = vadd.f32 %v12319_v42, %v4516_v45  ;;  %v12322_v57 = vld [vmem:[#allocation28_spill] sm:$0xff]  ;;  %v12328_v42 = vld [vmem:[#allocation47_spill] sm:$0xff] }
 0x52a   :  { %v11750_v59 = vadd.f32 %v12311_v44, %v4364_v17  ;;  %v9827_v16 = vld [vmem:[#allocation7] sm:$0xff]  }
 0x52b   :  { %v8972_v61 = vpop.f32.mrf.mxu0  ;;  %v5124_v55 = vadd.f32 %v8969_v21, %v4970_v50  ;;  %9016 = vmatprep.mubr.bf16.mxu0 %v9827_v16  ;;  %v4824_v37 = vadd.f32 %v12322_v57, %v4670_v38 }
 0x52d   :  { %v5074_v60 = vpop.f32.mrf.mxu0  ;;  %v4978_v38 = vadd.f32 %v12328_v42, %v4824_v37 }
 0x52e   :  { %v5125_v22 = vadd.f32 %v5074_v60, %v4971_v53 }
 0x52f   :  { %v8973_v13 = vpop.f32.mrf.mxu0 }
 0x531   :  { %v5077_v25 = vpop.f32.mrf.mxu0 }
 0x55b   :  { %v8986_v26 = vpop.f32.mrf.mxu1 }
 0x55c   :  { %v5277_v40 = vadd.f32 %v8986_v26, %v5123_v46  ;;  %v4666_v26 = vadd.f32 %v11627_v43, %v4512_v10  ;;  %v4667_v43 = vadd.f32 %v12310_v2, %v4513_v49 }
 0x55d   :  { %v5212_v6 = vpop.f32.mrf.mxu1 }
 0x55e   :  { %v5275_v4 = vadd.f32 %v5212_v6, %v5121_v27  ;;  %v5298_v3 = vadd.f32 %v11719_v8, %v5277_v40  ;;  %v4820_v56 = vadd.f32 %v12313_v47, %v4666_v26  ;;  %v4973_v6 = vadd.f32 %v12316_v7, %v4819_v12 }
 0x55f   :  { %v8987_v41 = vpop.f32.mrf.mxu1 }
 0x560   :  { %v5296_v24 = vadd.f32 %v11719_v8, %v5275_v4  ;;  %v5278_v30 = vadd.f32 %v8987_v41, %v5124_v55  ;;  %v12317_v41 = vld [vmem:[#allocation29_spill] sm:$0xff]  ;;  %v5330_v23 = vmul.f32 0.2, %v5298_v3  ;;  %v5127_v19 = vadd.f32 %v8972_v61, %v4973_v6 }
 0x561   :  { %v5215_v35 = vpop.f32.mrf.mxu1  ;;  %v4972_v11 = vadd.f32 %v12317_v41, %v4818_v33  ;;  %vm5314_vm7 = vcmp.gt.f32.partialorder %v5298_v3, 0.0  ;;  %v4974_v40 = vadd.f32 %v12321_v29, %v4820_v56  ;;  %v12324_v33 = vld [vmem:[#allocation44_spill] sm:$0xff]  ;;  %v12326_v56 = vld [vmem:[#allocation31_spill] sm:$0xff] }
 0x562   :  { %v5276_v48 = vadd.f32 %v5215_v35, %v5122_v54  ;;  %v5328_v1 = vmul.f32 0.2, %v5296_v24  ;;  %vm5312_vm6 = vcmp.gt.f32.partialorder %v5296_v24, 0.0  ;;  %v5299_v34 = vadd.f32 %v11719_v8, %v5278_v30  ;;  %v12318_v35 = vld [vmem:[#allocation61_spill] sm:$0xff] }
 0x563   :  { %v4821_v32 = vadd.f32 %v12318_v35, %v4667_v43  ;;  %v5126_v46 = vadd.f32 %v5077_v25, %v4972_v11  ;;  %v11774_v10 = vsel %vm5314_vm7, %v5298_v3, %v5330_v23  ;;  %v5128_v26 = vadd.f32 %v8973_v13, %v4974_v40  ;;  %v12325_v13 = vld [vmem:[#allocation25_spill] sm:$0xff] }
 0x564   :  { %v5297_v5 = vadd.f32 %v11719_v8, %v5276_v48  ;;  %v11761_v27 = vsel %vm5312_vm6, %v5296_v24, %v5328_v1  ;;  %v12320_v48 = vld [vmem:[#allocation22_spill] sm:$0xff]  ;;  %v5331_v60 = vmul.f32 0.2, %v5299_v34  ;;  %v8976_v24 = vpop.f32.mrf.mxu0  ;;  %vm5315_vm8 = vcmp.gt.f32.partialorder %v5299_v34, 0.0 }
 0x565   :  { %v4668_v18 = vadd.f32 %v12320_v48, %v4514_v9  ;;  %v5398_v50 = vmul.f32 %v11761_v27, %v11761_v27  ;;  %v5361_v45 = vsel %vm5360_vm0, %v11761_v27, 0.0  ;;  %v5400_v53 = vmul.f32 %v11774_v10, %v11774_v10 }
 0x566   :  { %v5329_v62 = vmul.f32 0.2, %v5297_v5  ;;  %vm5313_vm5 = vcmp.gt.f32.partialorder %v5297_v5, 0.0  ;;  %v11784_v1 = vsel %vm5315_vm8, %v5299_v34, %v5331_v60  ;;  %v5090_v2 = vpop.f32.mrf.mxu0  ;;  %v4671_v47 = vadd.f32 %v12325_v13, %v4517_v15 }
 0x567   :  { %v5414_v3 = vsel %vm5360_vm0, %v5398_v50, 0.0  ;;  %v4975_v28 = vadd.f32 %v12326_v56, %v4821_v32  ;;  %v5364_v14 = vsel %vm5360_vm0, %v11774_v10, 0.0  ;;  %v5417_v25 = vsel %vm5360_vm0, %v5400_v53, 0.0  ;;  %v12331_v53 = vld [vmem:[#allocation30_spill] sm:$0xff] }
 0x568   :  { %v11753_v36 = vsel %vm5313_vm5, %v5297_v5, %v5329_v62  ;;  %v12323_v62 = vld [vmem:[#allocation45_spill] sm:$0xff]  ;;  %v5401_v34 = vmul.f32 %v11784_v1, %v11784_v1  ;;  %v8977_v41 = vpop.f32.mrf.mxu0  ;;  %v5366_v32 = vsel %vm5360_vm0, %v11784_v1, 0.0  ;;  %v12332_v56 = vld [vmem:[#allocation46_spill] sm:$0xff]  ;;  %vm10132_vm6 = vmmov 0  }
 0x569   :  { %v5399_v31 = vmul.f32 %v11753_v36, %v11753_v36  ;;  %v5362_v61 = vsel %vm5360_vm0, %v11753_v36, 0.0  ;;  %v4977_v9 = vadd.f32 %v12323_v62, %v4823_v52  ;;  %v5129_v48 = vadd.f32 %v5090_v2, %v4975_v28 }
 0x56a   :  { %v5363_v30 = vadd.f32 %v5362_v61, %v5361_v45  ;;  %v4825_v28 = vadd.f32 %v12332_v56, %v4671_v47 }
 0x56b   :  { %v8990_v21 = vpop.f32.mrf.mxu1  ;;  %v5415_v55 = vsel %vm5360_vm0, %v5399_v31, 0.0  ;;  %v5131_v52 = vadd.f32 %v8976_v24, %v4977_v9 }
 0x56c   :  { %v5281_v5 = vadd.f32 %v8990_v21, %v5127_v19  ;;  %v5416_v43 = vadd.f32 %v5415_v55, %v5414_v3  ;;  %v5365_v7 = vadd.f32 %v5364_v14, %v5363_v30  ;;  %v5132_v55 = vadd.f32 %v8977_v41, %v4978_v38  ;;  %v12330_v30 = vld [vmem:[#allocation39_spill] sm:$0xff] }
 0x56d   :  { %v5228_v58 = vpop.f32.mrf.mxu1  ;;  %v4827_v3 = vadd.f32 %v12331_v53, %v12330_v30 }
 0x56e   :  { %v5279_v54 = vadd.f32 %v5228_v58, %v5125_v22  ;;  %v5302_v12 = vadd.f32 %v11719_v8, %v5281_v5  ;;  %v4822_v22 = vadd.f32 %v12324_v33, %v4668_v18  ;;  %v5418_v15 = vadd.f32 %v5417_v25, %v5416_v43  ;;  %v5093_v5 = vpop.f32.mrf.mxu0 }
 0x56f   :  { %v8991_v4 = vpop.f32.mrf.mxu1  ;;  %v5367_v18 = vadd.f32 %v5366_v32, %v5365_v7 }
 0x570   :  { %v5300_v51 = vadd.f32 %v11719_v8, %v5279_v54  ;;  %v5282_v44 = vadd.f32 %v8991_v4, %v5128_v26  ;;  %v5334_v58 = vmul.f32 0.2, %v5302_v12  ;;  %vm5318_vm11 = vcmp.gt.f32.partialorder %v5302_v12, 0.0  ;;  %v12327_v54 = vld [vmem:[#allocation24_spill] sm:$0xff] }
 0x571   :  { %v5231_v63 = vpop.f32.mrf.mxu1  ;;  %v4674_v35 = vadd.f32 %v12327_v54, %v11744_v39 }
 0x572   :  { %v5332_v49 = vmul.f32 0.2, %v5300_v51  ;;  %vm5316_vm9 = vcmp.gt.f32.partialorder %v5300_v51, 0.0  ;;  %v5280_v17 = vadd.f32 %v5231_v63, %v5126_v46  ;;  %v5303_v11 = vadd.f32 %v11719_v8, %v5282_v44 }
 0x573   :  { %v11813_v50 = vsel %vm5318_vm11, %v5302_v12, %v5334_v58  ;;  %vm6545_vm11 = vcmask 523264  }
 0x574   :  { %v11787_v21 = vsel %vm5316_vm9, %v5300_v51, %v5332_v49  ;;  %v5301_v0 = vadd.f32 %v11719_v8, %v5280_v17  ;;  %v5419_v51 = vsel %vm5360_vm0, %v5401_v34, 0.0  ;;  %v5335_v40 = vmul.f32 0.2, %v5303_v11  ;;  %v12329_v49 = vld [vmem:[#allocation33_spill] sm:$0xff] }
 0x575   :  { %v5402_v16 = vmul.f32 %v11787_v21, %v11787_v21  ;;  %v5368_v19 = vsel %vm5360_vm0, %v11787_v21, 0.0  ;;  %v5420_v29 = vadd.f32 %v5419_v51, %v5418_v15  ;;  %v4976_v45 = vadd.f32 %v12329_v49, %v4822_v22 }
 0x576   :  { %vm5317_vm10 = vcmp.gt.f32.partialorder %v5301_v0, 0.0  ;;  %v5333_v6 = vmul.f32 0.2, %v5301_v0  ;;  %v5369_v63 = vadd.f32 %v5368_v19, %v5367_v18  ;;  %vm5319_vm12 = vcmp.gt.f32.partialorder %v5303_v11, 0.0 }
 0x577   :  { %v5421_v39 = vsel %vm5360_vm0, %v5402_v16, 0.0  ;;  %v5130_v12 = vadd.f32 %v5093_v5, %v4976_v45  ;;  %v5404_v2 = vmul.f32 %v11813_v50, %v11813_v50  ;;  %v11826_v33 = vsel %vm5319_vm12, %v5303_v11, %v5335_v40  ;;  %v12334_v11 = vld [vmem:[#allocation41_spill] sm:$0xff]  ;;  %v12337_v45 = vld [vmem:[#allocation48_spill] sm:$0xff] }
 0x578   :  { %v11801_v23 = vsel %vm5317_vm10, %v5301_v0, %v5333_v6  ;;  %v5422_v37 = vadd.f32 %v5421_v39, %v5420_v29  ;;  %v8980_v0 = vpop.f32.mrf.mxu0  ;;  %v5372_v14 = vsel %vm5360_vm0, %v11813_v50, 0.0  ;;  %v12333_v6 = vld [vmem:[#allocation32_spill] sm:$0xff]  ;;  %v5405_v15 = vmul.f32 %v11826_v33, %v11826_v33 }
 0x579   :  { %v5403_v31 = vmul.f32 %v11801_v23, %v11801_v23  ;;  %v5370_v60 = vsel %vm5360_vm0, %v11801_v23, 0.0  ;;  %v4828_v25 = vadd.f32 %v12333_v6, %v4674_v35  ;;  %v5425_v41 = vsel %vm5360_vm0, %v5404_v2, 0.0 }
 0x57a   :  { %v5371_v62 = vadd.f32 %v5370_v60, %v5369_v63  ;;  %v4672_v54 = vadd.f32 %v12334_v11, %v11750_v59  ;;  %v5106_v32 = vpop.f32.mrf.mxu0  ;;  %v5374_v38 = vsel %vm5360_vm0, %v11826_v33, 0.0  ;;  %v12336_v59 = vld [vmem:[#allocation35_spill] sm:$0xff] }
 0x57b   :  { %v8994_v4 = vpop.f32.mrf.mxu1  ;;  %v5423_v17 = vsel %vm5360_vm0, %v5403_v31, 0.0  ;;  %v4979_v39 = vadd.f32 %v12336_v59, %v4825_v28 }
 0x57c   :  { %v5285_v46 = vadd.f32 %v8994_v4, %v5131_v52  ;;  %v5424_v22 = vadd.f32 %v5423_v17, %v5422_v37  ;;  %v5373_v34 = vadd.f32 %v5372_v14, %v5371_v62  ;;  %v12335_v4 = vld [vmem:[#allocation49_spill] sm:$0xff]  ;;  %v8981_v63 = vpop.f32.mrf.mxu0 }
 0x57d   :  { %v5244_v61 = vpop.f32.mrf.mxu1  ;;  %v4981_v42 = vadd.f32 %v12335_v4, %v4827_v3  ;;  %v12338_v3 = vld [vmem:[#allocation34_spill] sm:$0xff] }
 0x57e   :  { %v5283_v24 = vadd.f32 %v5244_v61, %v5129_v48  ;;  %v5306_v9 = vadd.f32 %v11719_v8, %v5285_v46  ;;  %v5426_v19 = vadd.f32 %v5425_v41, %v5424_v22  ;;  %v5375_v46 = vadd.f32 %v5374_v38, %v5373_v34  ;;  %v5109_v22 = vpop.f32.mrf.mxu0 }
 0x57f   :  { %v8995_v57 = vpop.f32.mrf.mxu1  ;;  %v5135_v60 = vadd.f32 %v8980_v0, %v4981_v42  ;;  %v5427_v61 = vsel %vm5360_vm0, %v5405_v15, 0.0 }
 0x580   :  { %v5304_v26 = vadd.f32 %v11719_v8, %v5283_v24  ;;  %v5286_v43 = vadd.f32 %v8995_v57, %v5132_v55  ;;  %v5338_v58 = vmul.f32 0.2, %v5306_v9  ;;  %vm5322_vm14 = vcmp.gt.f32.partialorder %v5306_v9, 0.0 }
 0x581   :  { %v5247_v44 = vpop.f32.mrf.mxu1  ;;  %v5428_v40 = vadd.f32 %v5427_v61, %v5426_v19  ;;  %v4826_v55 = vadd.f32 %v12337_v45, %v4672_v54 }
 0x582   :  { %vm5320_vm13 = vcmp.gt.f32.partialorder %v5304_v26, 0.0  ;;  %v5336_v13 = vmul.f32 0.2, %v5304_v26  ;;  %v5307_v52 = vadd.f32 %v11719_v8, %v5286_v43  ;;  %v5284_v7 = vadd.f32 %v5247_v44, %v5130_v12 }
 0x583   :  { %v11848_v18 = vsel %vm5322_vm14, %v5306_v9, %v5338_v58  ;;  %v5133_v9 = vadd.f32 %v5106_v32, %v4979_v39  ;;  %v4982_v12 = vadd.f32 %v12338_v3, %v4828_v25  ;;  %v4980_v14 = vadd.f32 %v11705_v20, %v4826_v55 }
 0x584   :  { %v11833_v16 = vsel %vm5320_vm13, %v5304_v26, %v5336_v13  ;;  %v5339_v31 = vmul.f32 0.2, %v5307_v52  ;;  %v5305_v35 = vadd.f32 %v11719_v8, %v5284_v7  ;;  %vm5323_vm15 = vcmp.gt.f32.partialorder %v5307_v52, 0.0 }
 0x585   :  { %v5406_v47 = vmul.f32 %v11833_v16, %v11833_v16  ;;  %v5376_v48 = vsel %vm5360_vm0, %v11833_v16, 0.0  ;;  %v5408_v17 = vmul.f32 %v11848_v18, %v11848_v18  ;;  %v5380_v2 = vsel %vm5360_vm0, %v11848_v18, 0.0 }
 0x586   :  { %vm5321_vm1 = vcmp.gt.f32.partialorder %v5305_v35, 0.0  ;;  %v5337_v51 = vmul.f32 0.2, %v5305_v35  ;;  %v5377_v29 = vadd.f32 %v5376_v48, %v5375_v46  ;;  %v11853_v24 = vsel %vm5323_vm15, %v5307_v52, %v5339_v31 }
 0x587   :  { %v5429_v5 = vsel %vm5360_vm0, %v5406_v47, 0.0  ;;  %v5409_v43 = vmul.f32 %v11853_v24, %v11853_v24  ;;  %v5136_v52 = vadd.f32 %v8981_v63, %v4982_v12  ;;  %v5433_v7 = vsel %vm5360_vm0, %v5408_v17, 0.0 }
 0x588   :  { %v11855_v49 = vsel %vm5321_vm1, %v5305_v35, %v5337_v51  ;;  %v5430_v26 = vadd.f32 %v5429_v5, %v5428_v40  ;;  %v5382_v25 = vsel %vm5360_vm0, %v11853_v24, 0.0  ;;  %v5134_v15 = vadd.f32 %v5109_v22, %v4980_v14 }
 0x589   :  { %v5378_v57 = vsel %vm5360_vm0, %v11855_v49, 0.0  ;;  %v5407_v37 = vmul.f32 %v11855_v49, %v11855_v49  ;;  %v5435_v47 = vsel %vm5360_vm0, %v5409_v43, 0.0  ;;  %vm7905_vm13 = vcmask 1041408  }
 0x58a   :  { %v5379_v30 = vadd.f32 %v5378_v57, %v5377_v29 }
 0x58b   :  { %v8998_v62 = vpop.f32.mrf.mxu1  ;;  %v5431_v44 = vsel %vm5360_vm0, %v5407_v37, 0.0 }
 0x58c   :  { %v5289_v53 = vadd.f32 %v8998_v62, %v5135_v60  ;;  %v5381_v13 = vadd.f32 %v5380_v2, %v5379_v30  ;;  %v5432_v56 = vadd.f32 %v5431_v44, %v5430_v26 }
 0x58d   :  { %v5260_v0 = vpop.f32.mrf.mxu1 }
 0x58e   :  { %v5287_v28 = vadd.f32 %v5260_v0, %v5133_v9  ;;  %v5434_v34 = vadd.f32 %v5433_v7, %v5432_v56  ;;  %v5310_v58 = vadd.f32 %v11719_v8, %v5289_v53  ;;  %v5383_v11 = vadd.f32 %v5382_v25, %v5381_v13 }
 0x58f   :  { %v8999_v6 = vpop.f32.mrf.mxu1 }
 0x590   :  { %v5308_v41 = vadd.f32 %v11719_v8, %v5287_v28  ;;  %v5290_v54 = vadd.f32 %v8999_v6, %v5136_v52  ;;  %v5436_v19 = vadd.f32 %v5435_v47, %v5434_v34  ;;  %v5342_v4 = vmul.f32 0.2, %v5310_v58 }
 0x591   :  { %v5263_v32 = vpop.f32.mrf.mxu1  ;;  %vm5326_vm3 = vcmp.gt.f32.partialorder %v5310_v58, 0.0 }
 0x592   :  { %vm5324_vm2 = vcmp.gt.f32.partialorder %v5308_v41, 0.0  ;;  %v5340_v20 = vmul.f32 0.2, %v5308_v41  ;;  %v5311_v31 = vadd.f32 %v11719_v8, %v5290_v54  ;;  %v5288_v35 = vadd.f32 %v5263_v32, %v5134_v15  ;;  %v5455_v32 = vld [vmem:[#allocation13 + $0x2] sm:$0x1] }
 0x593   :  { %v5358_v60 = vsel %vm5326_vm3, %v5310_v58, %v5342_v4 }
 0x594   :  { %v5356_v42 = vsel %vm5324_vm2, %v5308_v41, %v5340_v20  ;;  %v5343_v51 = vmul.f32 0.2, %v5311_v31  ;;  %v5309_v59 = vadd.f32 %v11719_v8, %v5288_v35  ;;  %vm5327_vm4 = vcmp.gt.f32.partialorder %v5311_v31, 0.0  ;;  %v5459_v35 = vld [vmem:[#allocation13 + $0x3] sm:$0x1] }
 0x595   :  { %v5384_v38 = vsel %vm5360_vm0, %v5356_v42, 0.0  ;;  %v5410_v48 = vmul.f32 %v5356_v42, %v5356_v42  ;;  %v5412_v40 = vmul.f32 %v5358_v60, %v5358_v60  ;;  %v5388_v57 = vsel %vm5360_vm0, %v5358_v60, 0.0 }
 0x596   :  { %v5385_v46 = vadd.f32 %v5384_v38, %v5383_v11  ;;  %vm5325_vm5 = vcmp.gt.f32.partialorder %v5309_v59, 0.0  ;;  %v5341_v5 = vmul.f32 0.2, %v5309_v59  ;;  %v5359_v63 = vsel %vm5327_vm4, %v5311_v31, %v5343_v51 }
 0x597   :  { %v5437_v39 = vsel %vm5360_vm0, %v5410_v48, 0.0  ;;  %v5413_v37 = vmul.f32 %v5359_v63, %v5359_v63  ;;  %v5441_v26 = vsel %vm5360_vm0, %v5412_v40, 0.0  ;;  %v5390_v30 = vsel %vm5360_vm0, %v5359_v63, 0.0 }
 0x598   :  { %v5438_v61 = vadd.f32 %v5437_v39, %v5436_v19  ;;  %v5357_v29 = vsel %vm5325_vm5, %v5309_v59, %v5341_v5  ;;  %v5462_v11 = vlaneseq }
 0x599   :  { %v5386_v45 = vsel %vm5360_vm0, %v5357_v29, 0.0  ;;  %v5411_v55 = vmul.f32 %v5357_v29, %v5357_v29  ;;  %v5443_v12 = vsel %vm5360_vm0, %v5413_v37, 0.0 }
 0x59a   :  { %v5387_v17 = vadd.f32 %v5386_v45, %v5385_v46  ;;  %v5463_v54 = vshrl.u32 %v5462_v11, 7 }
 0x59b   :  { %v5439_v62 = vsel %vm5360_vm0, %v5411_v55, 0.0 }
 0x59c   :  { %v5389_v8 = vadd.f32 %v5388_v57, %v5387_v17  ;;  %v5440_v9 = vadd.f32 %v5439_v62, %v5438_v61  ;;  %v11888_v20 = vsub.s32 0, %v5463_v54  ;;  %v9841_v54 = vld [vmem:[#allocation7 + $0x70] sm:$0xff]  }
 0x59e   :  { %v5391_v53 = vadd.f32 %v5390_v30, %v5389_v8  ;;  %v5442_v3 = vadd.f32 %v5441_v26, %v5440_v9 }
 0x5a0   :  { %v5392_v2 = vrot.slane %v5391_v53, 4  ;;  %v5444_v43 = vadd.f32 %v5443_v12, %v5442_v3 }
 0x5a2   :  { %v5393_v44 = vadd.f32 %v5392_v2, %v5391_v53  ;;  %v5445_v0 = vrot.slane %v5444_v43, 4 }
 0x5a4   :  { %v5394_v22 = vrot.slane %v5393_v44, 2  ;;  %v5446_v13 = vadd.f32 %v5445_v0, %v5444_v43 }
 0x5a6   :  { %v5395_v56 = vadd.f32 %v5394_v22, %v5393_v44  ;;  %v5447_v28 = vrot.slane %v5446_v13, 2 }
 0x5a8   :  { %v5396_v14 = vrot.slane %v5395_v56, 1  ;;  %v5448_v52 = vadd.f32 %v5447_v28, %v5446_v13  ;;  %v9830_v28 = vld [vmem:[#allocation7 + $0x18] sm:$0xff]  }
 0x5aa   :  { %v5397_v7 = vadd.f32 %v5396_v14, %v5395_v56  ;;  %v5449_v6 = vrot.slane %v5448_v52, 1  ;;  %v9831_v14 = vld [vmem:[#allocation7 + $0x20] sm:$0xff]  }
 0x5ac   :  { %v5450_v25 = vadd.f32 %v5449_v6, %v5448_v52  ;;  %v5451_v34 = vmul.f32 0.0078125, %v5397_v7  ;;  %v9832_v52 = vld [vmem:[#allocation7 + $0x28] sm:$0xff]   ;;  %v9833_v7 = vld [vmem:[#allocation7 + $0x30] sm:$0xff]   ;;  %v9834_v6 = vld [vmem:[#allocation7 + $0x38] sm:$0xff]  }
 0x5ae   :  { %v5452_v58 = vmul.f32 0.0078125, %v5450_v25  ;;  %v5453_v41 = vmul.f32 %v5451_v34, %v5451_v34  ;;  %v9835_v25 = vld [vmem:[#allocation7 + $0x40] sm:$0xff]  }
 0x5b0   :  { %v5454_v15 = vsub.f32 %v5452_v58, %v5453_v41  ;;  %v9837_v58 = vld [vmem:[#allocation7 + $0x50] sm:$0xff]   ;;  %v9838_v41 = vld [vmem:[#allocation7 + $0x58] sm:$0xff]  }
 0x5b2   :  { %v5456_v47 = vadd.f32 0.8, %v5454_v15  ;;  %v9839_v15 = vld [vmem:[#allocation7 + $0x60] sm:$0xff]  }
 0x5b4   :  { %9936 = vrsqrt.f32 %v5456_v47  ;;  %v9840_v47 = vld [vmem:[#allocation7 + $0x68] sm:$0xff]  }
 0x5c1   :  { %v9937_v19 = vpop.eup %9936 }
 0x5c2   :  { %v5458_v31 = vmul.f32 %v9937_v19, %v5455_v32  ;;  %v9842_v32 = vld [vmem:[#allocation7 + $0x78] sm:$0xff]   ;;  %v9843_v19 = vld [vmem:[#allocation7 + $0x80] sm:$0xff]  }
 0x5c4   :  { %v5460_v4 = vmul.f32 %v5458_v31, %v5451_v34  ;;  %v5465_v38 = vrot.slane %v5458_v31, %v11888_v20  ;;  %v9836_v34 = vld [vmem:[#allocation7 + $0x48] sm:$0xff]  }
 0x5c5   :  { %v9844_v31 = vld [vmem:[#allocation7 + $0x88] sm:$0xff]  }
 0x5c6   :  { %v5461_v48 = vsub.f32 %v5459_v35, %v5460_v4  ;;  %v5480_v46 = vmul.f32 %v5465_v38, %v5358_v60  ;;  %v5481_v51 = vmul.f32 %v5465_v38, %v5359_v63  ;;  %v5478_v59 = vmul.f32 %v5465_v38, %v5356_v42  ;;  %v9845_v35 = vld [vmem:[#allocation9 + $0x8] sm:$0xff]   ;;  %v9846_v4 = vld [vmem:[#allocation9] sm:$0xff]  }
 0x5c7   :  { %v5479_v39 = vmul.f32 %v5465_v38, %v5357_v29  ;;  %v5476_v61 = vmul.f32 %v5465_v38, %v11848_v18  ;;  %v5477_v5 = vmul.f32 %v5465_v38, %v11853_v24  ;;  %v5474_v40 = vmul.f32 %v5465_v38, %v11833_v16  ;;  %9060 = vmatprep.subr.bf16.mxu1 %v9845_v35 }
 0x5c8   :  { %v5485_v45 = vrot.slane %v5461_v48, %v11888_v20  ;;  %v5475_v55 = vmul.f32 %v5465_v38, %v11855_v49  ;;  %v5472_v17 = vmul.f32 %v5465_v38, %v11813_v50  ;;  %v5473_v57 = vmul.f32 %v5465_v38, %v11826_v33  ;;  %9061 = vmatpush3.bf16.msra.mxu1 %v9845_v35  ;;  %v9854_v48 = vld [vmem:[#allocation9 + $0x10] sm:$0xff]  }
 0x5c9   :  { %v5470_v37 = vmul.f32 %v5465_v38, %v11787_v21  ;;  %v5471_v60 = vmul.f32 %v5465_v38, %v11801_v23  ;;  %v5468_v42 = vmul.f32 %v5465_v38, %v11774_v10  ;;  %v5469_v18 = vmul.f32 %v5465_v38, %v11784_v1  ;;  %9062 = vmatprep.subr.bf16.mxu1 %v9846_v4 }
 0x5ca   :  { %v5500_v63 = vadd.f32 %v5485_v45, %v5480_v46  ;;  %v5501_v24 = vadd.f32 %v5485_v45, %v5481_v51  ;;  %v5498_v29 = vadd.f32 %v5485_v45, %v5478_v59  ;;  %v5499_v16 = vadd.f32 %v5485_v45, %v5479_v39  ;;  %v9847_v46 = vld [vmem:[#allocation9 + $0x28] sm:$0xff]  }
 0x5cb   :  { %v5496_v62 = vadd.f32 %v5485_v45, %v5476_v61  ;;  %v5497_v8 = vadd.f32 %v5485_v45, %v5477_v5  ;;  %v5494_v9 = vadd.f32 %v5485_v45, %v5474_v40  ;;  %v5495_v49 = vadd.f32 %v5485_v45, %v5475_v55  ;;  %v9856_v51 = vld [vmem:[#allocation9 + $0x68] sm:$0xff]  }
 0x5cc   :  { %v5509_v26 = vpack.c.bf16 %v5501_v24, %v5500_v63  ;;  %v5508_v50 = vpack.c.bf16 %v5499_v16, %v5498_v29  ;;  %v5492_v30 = vadd.f32 %v5485_v45, %v5472_v17  ;;  %v5493_v33 = vadd.f32 %v5485_v45, %v5473_v57  ;;  %9063 = vmatpush3.bf16.msra.mxu1 %v9846_v4  ;;  %v9848_v17 = vld [vmem:[#allocation9 + $0x20] sm:$0xff]  }
 0x5cd   :  { %v5507_v53 = vpack.c.bf16 %v5497_v8, %v5496_v62  ;;  %v5506_v21 = vpack.c.bf16 %v5495_v49, %v5494_v9  ;;  %v5490_v3 = vadd.f32 %v5485_v45, %v5470_v37  ;;  %v5491_v23 = vadd.f32 %v5485_v45, %v5471_v60  ;;  %9068 = vmatprep.subr.bf16.mxu1 %v9847_v46  ;;  %v9849_v60 = vld [vmem:[#allocation9 + $0x38] sm:$0xff]   ;;  %v9858_v29 = vld [vmem:[#allocation9 + $0x60] sm:$0xff]   ;;  %v11908_v8 = vld [vmem:[#allocation9 + $0x88] sm:$0xff]  }
 0x5ce   :  { %9000 = vmatprep.subr.bf16.mxu0 %v5509_v26  ;;  %v5505_v10 = vpack.c.bf16 %v5493_v33, %v5492_v30  ;;  %v5488_v12 = vadd.f32 %v5485_v45, %v5468_v42  ;;  %v5489_v1 = vadd.f32 %v5485_v45, %v5469_v18  ;;  %v5466_v2 = vmul.f32 %v5465_v38, %v11761_v27  ;;  %v9828_v27 = vld [vmem:[#allocation7 + $0x8] sm:$0xff]   ;;  %v9850_v30 = vld [vmem:[#allocation9 + $0x30] sm:$0xff]  }
 0x5cf   :  { %9001 = vmatpush3.bf16.msra.mxu0 %v5509_v26  ;;  %v5504_v43 = vpack.c.bf16 %v5491_v23, %v5490_v3  ;;  %v5467_v44 = vmul.f32 %v5465_v38, %v11753_v36  ;;  %v9829_v36 = vld [vmem:[#allocation7 + $0x10] sm:$0xff]   ;;  %v9852_v38 = vld [vmem:[#allocation9 + $0x18] sm:$0xff]  }
 0x5d0   :  { %9002 = vmatprep.subr.bf16.mxu0 %v5508_v50  ;;  %v5503_v0 = vpack.c.bf16 %v5489_v1, %v5488_v12  ;;  %v5486_v22 = vadd.f32 %v5485_v45, %v5466_v2  ;;  %v9853_v1 = vld [vmem:[#allocation9 + $0x40] sm:$0xff]  }
 0x5d1   :  { %v5487_v13 = vadd.f32 %v5485_v45, %v5467_v44  ;;  %v9855_v44 = vld [vmem:[#allocation9 + $0x58] sm:$0xff]  }
 0x5d3   :  { %9003 = vmatpush3.bf16.msra.mxu0 %v5508_v50  ;;  %v5502_v56 = vpack.c.bf16 %v5487_v13, %v5486_v22 }
 0x5d4   :  { %9004 = vmatprep.subr.bf16.mxu0 %v5507_v53 }
 0x5d7   :  { %9005 = vmatpush3.bf16.msra.mxu0 %v5507_v53 }
 0x5d8   :  { %9006 = vmatprep.subr.bf16.mxu0 %v5506_v21 }
 0x5db   :  { %9007 = vmatpush3.bf16.msra.mxu0 %v5506_v21  ;;  %v9851_v21 = vld [vmem:[#allocation9 + $0x48] sm:$0xff]  }
 0x5dc   :  { %9008 = vmatprep.subr.bf16.mxu0 %v5505_v10 }
 0x5df   :  { %9009 = vmatpush3.bf16.msra.mxu0 %v5505_v10 }
 0x5e0   :  { %9010 = vmatprep.subr.bf16.mxu0 %v5504_v43 }
 0x5e3   :  { %9011 = vmatpush3.bf16.msra.mxu0 %v5504_v43 }
 0x5e4   :  { %9012 = vmatprep.subr.bf16.mxu0 %v5503_v0 }
 0x5e7   :  { %9013 = vmatpush3.bf16.msra.mxu0 %v5503_v0 }
 0x5e8   :  { %9014 = vmatprep.subr.bf16.mxu0 %v5502_v56 }
 0x5eb   :  { %9015 = vmatpush3.bf16.msra.mxu0 %v5502_v56 }
 0x5ec   :  { %9052 = vmatprep.subr.bf16.mxu0 %v9852_v38 }
 0x5ee   :  { %9017 = vmatmul.mubr.bf16.vlgmr.msra.gmra.mxu0 %v9828_v27  ;;  %v9857_v27 = vld [vmem:[#allocation9 + $0x50] sm:$0xff]  }
 0x5ef   :  { %9020 = vmatprep.mubr.bf16.mxu0 %v9829_v36  ;;  %9053 = vmatpush3.bf16.msra.mxu0 %v9852_v38 }
 0x5f0   :  { %9054 = vmatprep.subr.bf16.mxu0 %v9854_v48 }
 0x5f3   :  { %9055 = vmatpush3.bf16.msra.mxu0 %v9854_v48 }
 0x5f4   :  { %9100 = vmatprep.subr.bf16.mxu0 %v9856_v51 }
 0x5f6   :  { %9021 = vmatmul.mubr.bf16.gmra.mxu0 %v9830_v28 }
 0x5f7   :  { %9024 = vmatprep.mubr.bf16.mxu0 %v9831_v14  ;;  %v9859_v14 = vld [vmem:[#allocation9 + $0x78] sm:$0xff]  }
 0x5fe   :  { %9025 = vmatmul.mubr.bf16.gmra.mxu0 %v9832_v52 }
 0x5ff   :  { %9028 = vmatprep.mubr.bf16.mxu0 %v9833_v7 }
 0x606   :  { %9029 = vmatmul.mubr.bf16.gmra.mxu0 %v9834_v6 }
 0x607   :  { %9032 = vmatprep.mubr.bf16.mxu0 %v9835_v25 }
 0x60e   :  { %9033 = vmatmul.mubr.bf16.gmra.mxu0 %v9836_v34  ;;  %v9861_v34 = vld [vmem:[#allocation9 + $0x70] sm:$0xff]  }
 0x60f   :  { %9036 = vmatprep.mubr.bf16.mxu0 %v9837_v58 }
 0x616   :  { %9037 = vmatmul.mubr.bf16.gmra.mxu0 %v9838_v41 }
 0x617   :  { %9040 = vmatprep.mubr.bf16.mxu0 %v9839_v15 }
 0x61e   :  { %9041 = vmatmul.mubr.bf16.gmra.mxu0 %v9840_v47 }
 0x61f   :  { %9044 = vmatprep.mubr.bf16.mxu0 %v9841_v54 }
 0x626   :  { %9045 = vmatmul.mubr.bf16.gmra.mxu0 %v9842_v32 }
 0x627   :  { %9048 = vmatprep.mubr.bf16.mxu0 %v9843_v19  ;;  %v9862_v19 = vld [vmem:[#allocation9 + $0x80] sm:$0xff]  }
 0x62e   :  { %9049 = vmatmul.mubr.bf16.gmra.mxu0 %v9844_v31 }
 0x6ae   :  { %v9018_v59 = vpop.f32.mrf.mxu0 }
 0x6b0   :  { %v5688_v39 = vpop.f32.mrf.mxu0 }
 0x6b2   :  { %v9019_v61 = vpop.f32.mrf.mxu0 }
 0x6b3   :  { %v5832_v45 = vpack.c.bf16 %v9019_v61, %v9018_v59 }
 0x6b4   :  { %v5691_v5 = vpop.f32.mrf.mxu0 }
 0x6b5   :  { %v5831_v40 = vpack.c.bf16 %v5691_v5, %v5688_v39 }
 0x6b6   :  { %v9022_v55 = vpop.f32.mrf.mxu0 }
 0x6b7   :  { %9064 = vmatprep.mubr.msk.bf16.mxu1 %vm5360_vm0, %v5831_v40  ;;  %v10131_v40 = vmov 0.0  }
 0x6b8   :  { %v5704_v57 = vpop.f32.mrf.mxu0  ;;  %9065 = vmatmul.mubr.msk.bf16.vlgmr.msra.gmra.mxu1 %vm5360_vm0, %v5832_v45 }
 0x6b9   :  { %9069 = vmatpush3.bf16.msra.mxu1 %v9847_v46 }
 0x6ba   :  { %v9023_v37 = vpop.f32.mrf.mxu0  ;;  %9070 = vmatprep.subr.bf16.mxu1 %v9848_v17 }
 0x6bb   :  { %v5838_v63 = vpack.c.bf16 %v9023_v37, %v9022_v55 }
 0x6bc   :  { %v5707_v42 = vpop.f32.mrf.mxu0 }
 0x6bd   :  { %v5837_v18 = vpack.c.bf16 %v5707_v42, %v5704_v57  ;;  %9071 = vmatpush3.bf16.msra.mxu1 %v9848_v17 }
 0x6be   :  { %v9026_v24 = vpop.f32.mrf.mxu0  ;;  %9076 = vmatprep.subr.bf16.mxu1 %v9849_v60 }
 0x6bf   :  { %9056 = vmatprep.mubr.msk.bf16.mxu0 %vm5360_vm0, %v5837_v18 }
 0x6c0   :  { %v5720_v16 = vpop.f32.mrf.mxu0  ;;  %9057 = vmatmul.mubr.msk.bf16.vlgmr.msra.gmra.mxu0 %vm5360_vm0, %v5838_v63 }
 0x6c1   :  { %9101 = vmatpush3.bf16.msra.mxu0 %v9856_v51 }
 0x6c2   :  { %v9027_v62 = vpop.f32.mrf.mxu0  ;;  %9102 = vmatprep.subr.bf16.mxu0 %v9858_v29 }
 0x6c3   :  { %v5979_v26 = vpack.c.bf16 %v9027_v62, %v9026_v24 }
 0x6c4   :  { %v5723_v9 = vpop.f32.mrf.mxu0 }
 0x6c5   :  { %v5978_v49 = vpack.c.bf16 %v5723_v9, %v5720_v16  ;;  %9103 = vmatpush3.bf16.msra.mxu0 %v9858_v29 }
 0x6c6   :  { %v9030_v50 = vpop.f32.mrf.mxu0  ;;  %9116 = vmatprep.subr.bf16.mxu0 %v11908_v8 }
 0x6c7   :  { %9072 = vmatprep.mubr.msk.bf16.mxu1 %vm5360_vm0, %v5978_v49 }
 0x6c8   :  { %v5736_v33 = vpop.f32.mrf.mxu0  ;;  %9073 = vmatmul.mubr.msk.bf16.vlgmr.msra.gmra.mxu1 %vm5360_vm0, %v5979_v26 }
 0x6c9   :  { %9077 = vmatpush3.bf16.msra.mxu1 %v9849_v60 }
 0x6ca   :  { %v9031_v53 = vpop.f32.mrf.mxu0  ;;  %9078 = vmatprep.subr.bf16.mxu1 %v9850_v30 }
 0x6cb   :  { %v6057_v10 = vpack.c.bf16 %v9031_v53, %v9030_v50  ;;  %v9868_v53 = vld [vmem:[#allocation10 + $0x38] sm:$0xff]  }
 0x6cc   :  { %v5739_v3 = vpop.f32.mrf.mxu0 }
 0x6cd   :  { %v6056_v23 = vpack.c.bf16 %v5739_v3, %v5736_v33  ;;  %9079 = vmatpush3.bf16.msra.mxu1 %v9850_v30  ;;  %v9869_v3 = vld [vmem:[#allocation10 + $0x30] sm:$0xff]  }
 0x6ce   :  { %v9034_v12 = vpop.f32.mrf.mxu0  ;;  %9084 = vmatprep.subr.bf16.mxu1 %v9851_v21 }
 0x6cf   :  { %9080 = vmatprep.mubr.msk.bf16.mxu1 %vm5360_vm0, %v6056_v23 }
 0x6d0   :  { %v5752_v2 = vpop.f32.mrf.mxu0  ;;  %9081 = vmatmul.mubr.msk.bf16.vlgmr.msra.gmra.mxu1 %vm5360_vm0, %v6057_v10 }
 0x6d1   :  { %9085 = vmatpush3.bf16.msra.mxu1 %v9851_v21 }
 0x6d2   :  { %v9035_v43 = vpop.f32.mrf.mxu0  ;;  %9086 = vmatprep.subr.bf16.mxu1 %v9853_v1 }
 0x6d3   :  { %v6135_v13 = vpack.c.bf16 %v9035_v43, %v9034_v12 }
 0x6d4   :  { %v5755_v0 = vpop.f32.mrf.mxu0 }
 0x6d5   :  { %v6134_v22 = vpack.c.bf16 %v5755_v0, %v5752_v2  ;;  %9087 = vmatpush3.bf16.msra.mxu1 %v9853_v1  ;;  %v9870_v1 = vld [vmem:[#allocation10 + $0x28] sm:$0xff]  }
 0x6d6   :  { %v9038_v56 = vpop.f32.mrf.mxu0  ;;  %9092 = vmatprep.subr.bf16.mxu1 %v9855_v44 }
 0x6d7   :  { %9088 = vmatprep.mubr.msk.bf16.mxu1 %vm5360_vm0, %v6134_v22 }
 0x6d8   :  { %v5768_v36 = vpop.f32.mrf.mxu0  ;;  %9089 = vmatmul.mubr.msk.bf16.vlgmr.msra.gmra.mxu1 %vm5360_vm0, %v6135_v13 }
 0x6d9   :  { %9093 = vmatpush3.bf16.msra.mxu1 %v9855_v44 }
 0x6da   :  { %v9039_v28 = vpop.f32.mrf.mxu0  ;;  %9094 = vmatprep.subr.bf16.mxu1 %v9857_v27 }
 0x6db   :  { %v6213_v6 = vpack.c.bf16 %v9039_v28, %v9038_v56 }
 0x6dc   :  { %v5771_v52 = vpop.f32.mrf.mxu0 }
 0x6dd   :  { %v6212_v7 = vpack.c.bf16 %v5771_v52, %v5768_v36  ;;  %9095 = vmatpush3.bf16.msra.mxu1 %v9857_v27 }
 0x6de   :  { %v9042_v25 = vpop.f32.mrf.mxu0  ;;  %9108 = vmatprep.subr.bf16.mxu1 %v9859_v14 }
 0x6df   :  { %9096 = vmatprep.mubr.msk.bf16.mxu1 %vm5360_vm0, %v6212_v7 }
 0x6e0   :  { %v5784_v58 = vpop.f32.mrf.mxu0  ;;  %9097 = vmatmul.mubr.msk.bf16.vlgmr.msra.gmra.mxu1 %vm5360_vm0, %v6213_v6 }
 0x6e1   :  { %9109 = vmatpush3.bf16.msra.mxu1 %v9859_v14 }
 0x6e2   :  { %v9043_v41 = vpop.f32.mrf.mxu0  ;;  %9110 = vmatprep.subr.bf16.mxu1 %v9861_v34 }
 0x6e3   :  { %v6291_v54 = vpack.c.bf16 %v9043_v41, %v9042_v25 }
 0x6e4   :  { %v5787_v15 = vpop.f32.mrf.mxu0 }
 0x6e5   :  { %v6290_v47 = vpack.c.bf16 %v5787_v15, %v5784_v58  ;;  %9111 = vmatpush3.bf16.msra.mxu1 %v9861_v34 }
 0x6e6   :  { %v9046_v32 = vpop.f32.mrf.mxu0  ;;  %9124 = vmatprep.subr.bf16.mxu1 %v10131_v40 }
 0x6e7   :  { %9104 = vmatprep.mubr.msk.bf16.mxu0 %vm5360_vm0, %v6290_v47 }
 0x6e8   :  { %v5800_v31 = vpop.f32.mrf.mxu0  ;;  %9105 = vmatmul.mubr.msk.bf16.vlgmr.msra.gmra.mxu0 %vm5360_vm0, %v6291_v54 }
 0x6e9   :  { %9117 = vmatpush3.bf16.msra.mxu0 %v11908_v8 }
 0x6ea   :  { %v9047_v35 = vpop.f32.mrf.mxu0  ;;  %9118 = vmatprep.subr.bf16.mxu0 %v9862_v19 }
 0x6eb   :  { %v6369_v48 = vpack.c.bf16 %v9047_v35, %v9046_v32 }
 0x6ec   :  { %v5803_v4 = vpop.f32.mrf.mxu0 }
 0x6ed   :  { %v6368_v38 = vpack.c.bf16 %v5803_v4, %v5800_v31  ;;  %9119 = vmatpush3.bf16.msra.mxu0 %v9862_v19 }
 0x6ee   :  { %v9050_v46 = vpop.f32.mrf.mxu0  ;;  %9148 = vmatprep.subr.bf16.mxu0 %v10131_v40 }
 0x6ef   :  { %9112 = vmatprep.mubr.msk.bf16.mxu1 %vm5360_vm0, %v6368_v38 }
 0x6f0   :  { %v5816_v51 = vpop.f32.mrf.mxu0  ;;  %9113 = vmatmul.mubr.msk.bf16.vlgmr.msra.gmra.mxu1 %vm5360_vm0, %v6369_v48 }
 0x6f1   :  { %9128 = vmatprep.mubr.msk.bf16.mxu1 %vm10132_vm6, %v10131_v40 }
 0x6f2   :  { %v9051_v59 = vpop.f32.mrf.mxu0 }
 0x6f3   :  { %v6447_v5 = vpack.c.bf16 %v9051_v59, %v9050_v46 }
 0x6f4   :  { %v5819_v39 = vpop.f32.mrf.mxu0 }
 0x6f5   :  { %v6446_v61 = vpack.c.bf16 %v5819_v39, %v5816_v51 }
 0x6f7   :  { %9120 = vmatprep.mubr.msk.bf16.mxu0 %vm5360_vm0, %v6446_v61 }
 0x6f8   :  { %9121 = vmatmul.mubr.msk.bf16.vlgmr.msra.gmra.mxu0 %vm5360_vm0, %v6447_v5 }
 0x6f9   :  { %9156 = vmatprep.mubr.msk.bf16.mxu0 %vm10132_vm6, %v10131_v40  ;;  %9149 = vmatpush3.bf16.msra.mxu0 %v9868_v53 }
 0x6fa   :  { %9150 = vmatprep.subr.bf16.mxu0 %v10131_v40 }
 0x6fd   :  { %9151 = vmatpush3.bf16.msra.mxu0 %v9869_v3 }
 0x6fe   :  { %9152 = vmatprep.subr.bf16.mxu0 %v10131_v40 }
 0x701   :  { %9153 = vmatpush3.bf16.msra.mxu0 %v9870_v1 }
 0x702   :  { %9154 = vmatprep.subr.bf16.mxu0 %v10131_v40 }
 0x778   :  { %v9066_v45 = vpop.f32.mrf.mxu1 }
 0x77a   :  { %v5963_v55 = vpop.f32.mrf.mxu1 }
 0x77c   :  { %v9067_v17 = vpop.f32.mrf.mxu1 }
 0x77e   :  { %v5966_v57 = vpop.f32.mrf.mxu1 }
 0x780   :  { %v9058_v9 = vpop.f32.mrf.mxu0 }
 0x781   :  { %v5972_v2 = vadd.f32 %v9066_v45, %v9058_v9  ;;  %v8418_v45 = vld [vmem:[#allocation13 + $0x4] ss:$0 sm:$0xff] }
 0x782   :  { %v5896_v50 = vpop.f32.mrf.mxu0 }
 0x783   :  { %v5964_v44 = vadd.f32 %v5963_v55, %v5896_v50 }
 0x784   :  { %v9059_v33 = vpop.f32.mrf.mxu0 }
 0x785   :  { %v5975_v56 = vadd.f32 %v9067_v17, %v9059_v33 }
 0x786   :  { %v5899_v23 = vpop.f32.mrf.mxu0 }
 0x787   :  { %v5967_v7 = vadd.f32 %v5966_v57, %v5899_v23 }
 0x788   :  { %v9074_v37 = vpop.f32.mrf.mxu1 }
 0x789   :  { %v6054_v43 = vadd.f32 %v9074_v37, %v5972_v2 }
 0x78a   :  { %v6037_v60 = vpop.f32.mrf.mxu1 }
 0x78b   :  { %v6052_v13 = vadd.f32 %v6037_v60, %v5964_v44 }
 0x78c   :  { %v9075_v42 = vpop.f32.mrf.mxu1 }
 0x78d   :  { %v6055_v28 = vadd.f32 %v9075_v42, %v5975_v56 }
 0x78e   :  { %v6040_v18 = vpop.f32.mrf.mxu1 }
 0x78f   :  { %v6053_v15 = vadd.f32 %v6040_v18, %v5967_v7 }
 0x790   :  { %v9082_v63 = vpop.f32.mrf.mxu1 }
 0x791   :  { %v6132_v27 = vadd.f32 %v9082_v63, %v6054_v43 }
 0x792   :  { %v6115_v24 = vpop.f32.mrf.mxu1 }
 0x793   :  { %v6130_v52 = vadd.f32 %v6115_v24, %v6052_v13 }
 0x794   :  { %v9083_v29 = vpop.f32.mrf.mxu1 }
 0x795   :  { %v6133_v58 = vadd.f32 %v9083_v29, %v6055_v28 }
 0x796   :  { %v6118_v16 = vpop.f32.mrf.mxu1 }
 0x797   :  { %v6131_v19 = vadd.f32 %v6118_v16, %v6053_v15 }
 0x798   :  { %v9090_v62 = vpop.f32.mrf.mxu1 }
 0x799   :  { %v6210_v14 = vadd.f32 %v9090_v62, %v6132_v27 }
 0x79a   :  { %v6193_v8 = vpop.f32.mrf.mxu1 }
 0x79b   :  { %v6208_v34 = vadd.f32 %v6193_v8, %v6130_v52 }
 0x79c   :  { %v9091_v49 = vpop.f32.mrf.mxu1 }
 0x79d   :  { %v6211_v32 = vadd.f32 %v9091_v49, %v6133_v58 }
 0x79e   :  { %v6196_v26 = vpop.f32.mrf.mxu1 }
 0x79f   :  { %v6209_v46 = vadd.f32 %v6196_v26, %v6131_v19 }
 0x7a0   :  { %v9098_v30 = vpop.f32.mrf.mxu1 }
 0x7a1   :  { %v6288_v25 = vadd.f32 %v9098_v30, %v6210_v14 }
 0x7a2   :  { %v6271_v21 = vpop.f32.mrf.mxu1 }
 0x7a3   :  { %v6286_v47 = vadd.f32 %v6271_v21, %v6208_v34 }
 0x7a4   :  { %v9099_v12 = vpop.f32.mrf.mxu1 }
 0x7a5   :  { %v6289_v35 = vadd.f32 %v9099_v12, %v6211_v32 }
 0x7a6   :  { %v6274_v22 = vpop.f32.mrf.mxu1 }
 0x7a7   :  { %v6287_v5 = vadd.f32 %v6274_v22, %v6209_v46 }
 0x7a8   :  { %v9106_v10 = vpop.f32.mrf.mxu0 }
 0x7a9   :  { %v6366_v54 = vadd.f32 %v9106_v10, %v6288_v25 }
 0x7aa   :  { %v6349_v0 = vpop.f32.mrf.mxu0 }
 0x7ab   :  { %v6364_v4 = vadd.f32 %v6349_v0, %v6286_v47 }
 0x7ac   :  { %v9107_v6 = vpop.f32.mrf.mxu0 }
 0x7ad   :  { %v6367_v59 = vadd.f32 %v9107_v6, %v6289_v35 }
 0x7ae   :  { %v6352_v31 = vpop.f32.mrf.mxu0 }
 0x7af   :  { %v6365_v60 = vadd.f32 %v6352_v31, %v6287_v5 }
 0x7b0   :  { %v9114_v36 = vpop.f32.mrf.mxu1 }
 0x7b1   :  { %v6444_v38 = vadd.f32 %v9114_v36, %v6366_v54 }
 0x7b2   :  { %v6427_v41 = vpop.f32.mrf.mxu1 }
 0x7b3   :  { %v6442_v39 = vadd.f32 %v6427_v41, %v6364_v4 }
 0x7b4   :  { %v9115_v48 = vpop.f32.mrf.mxu1 }
 0x7b5   :  { %v6445_v17 = vadd.f32 %v9115_v48, %v6367_v59 }
 0x7b6   :  { %v6430_v37 = vpop.f32.mrf.mxu1 }
 0x7b7   :  { %v6443_v29 = vadd.f32 %v6430_v37, %v6365_v60 }
 0x7b8   :  { %v9122_v51 = vpop.f32.mrf.mxu0 }
 0x7b9   :  { %v6522_v61 = vadd.f32 %v9122_v51, %v6444_v38 }
 0x7ba   :  { %v6505_v55 = vpop.f32.mrf.mxu0 }
 0x7bb   :  { %v6520_v57 = vadd.f32 %v6505_v55, %v6442_v39  ;;  %v6531_v18 = vadd.f32 %v8418_v45, %v6522_v61  ;;  %v6580_v39 = vld [vmem:[#allocation13 + $0x5] sm:$0x1] }
 0x7bc   :  { %v9123_v42 = vpop.f32.mrf.mxu0 }
 0x7bd   :  { %v6529_v63 = vadd.f32 %v8418_v45, %v6520_v57  ;;  %v6523_v24 = vadd.f32 %v9123_v42, %v6445_v17  ;;  %v6539_v49 = vmul.f32 0.2, %v6531_v18  ;;  %vm6535_vm8 = vcmp.gt.f32.partialorder %v6531_v18, 0.0 }
 0x7be   :  { %v6508_v16 = vpop.f32.mrf.mxu0 }
 0x7bf   :  { %v6537_v62 = vmul.f32 0.2, %v6529_v63  ;;  %v6532_v8 = vadd.f32 %v8418_v45, %v6523_v24  ;;  %vm6533_vm7 = vcmp.gt.f32.partialorder %v6529_v63, 0.0  ;;  %v6521_v9 = vadd.f32 %v6508_v16, %v6443_v29 }
 0x7c0   :  { %v6543_v33 = vsel %vm6535_vm8, %v6531_v18, %v6539_v49  ;;  %v9863_v49 = vld [vmem:[%s12093_s6] sm:$0xff]  }
 0x7c1   :  { %v6530_v26 = vadd.f32 %v8418_v45, %v6521_v9  ;;  %v6541_v50 = vsel %vm6533_vm7, %v6529_v63, %v6537_v62  ;;  %v6540_v30 = vmul.f32 0.2, %v6532_v8  ;;  %vm6536_vm9 = vcmp.gt.f32.partialorder %v6532_v8, 0.0  ;;  %v6584_v45 = vld [vmem:[#allocation13 + $0x6] sm:$0x1] }
 0x7c2   :  { %v6559_v21 = vmul.f32 %v6541_v50, %v6541_v50  ;;  %v6561_v10 = vmul.f32 %v6543_v33, %v6543_v33  ;;  %v6546_v12 = vsel %vm6545_vm11, %v6541_v50, 0.0  ;;  %v6549_v44 = vsel %vm6545_vm11, %v6543_v33, 0.0 }
 0x7c3   :  { %vm6534_vm10 = vcmp.gt.f32.partialorder %v6530_v26, 0.0  ;;  %v6538_v53 = vmul.f32 0.2, %v6530_v26  ;;  %v6544_v3 = vsel %vm6536_vm9, %v6532_v8, %v6540_v30  ;;  %v9866_v30 = vld [vmem:[%s12093_s6 + $0x18] sm:$0xff]  }
 0x7c4   :  { %v6563_v0 = vsel %vm6545_vm11, %v6559_v21, 0.0  ;;  %v6562_v22 = vmul.f32 %v6544_v3, %v6544_v3  ;;  %v6566_v36 = vsel %vm6545_vm11, %v6561_v10, 0.0  ;;  %v6551_v28 = vsel %vm6545_vm11, %v6544_v3, 0.0  ;;  %v9873_v21 = vld [vmem:[#allocation10 + $0x58] sm:$0xff]   ;;  %v9879_v10 = vld [vmem:[#allocation10 + $0x40] sm:$0xff]  }
 0x7c5   :  { %v6542_v23 = vsel %vm6534_vm10, %v6530_v26, %v6538_v53  ;;  %v9864_v26 = vld [vmem:[%s12093_s6 + $0x8] sm:$0xff]   ;;  %v9871_v53 = vld [vmem:[#allocation10 + $0x20] sm:$0xff]  }
 0x7c6   :  { %v6547_v1 = vsel %vm6545_vm11, %v6542_v23, 0.0  ;;  %v6560_v2 = vmul.f32 %v6542_v23, %v6542_v23  ;;  %v6568_v7 = vsel %vm6545_vm11, %v6562_v22, 0.0  ;;  %9155 = vmatpush3.bf16.msra.mxu0 %v9871_v53  ;;  %v9874_v22 = vld [vmem:[#allocation10 + $0x10] sm:$0xff]  }
 0x7c7   :  { %v6548_v43 = vadd.f32 %v6547_v1, %v6546_v12  ;;  %9160 = vmatprep.subr.bf16.mxu0 %v10131_v40 }
 0x7c8   :  { %v6564_v13 = vsel %vm6545_vm11, %v6560_v2, 0.0 }
 0x7c9   :  { %v6550_v56 = vadd.f32 %v6549_v44, %v6548_v43  ;;  %v6565_v27 = vadd.f32 %v6564_v13, %v6563_v0  ;;  %v9872_v43 = vld [vmem:[#allocation10 + $0x18] sm:$0xff]  }
 0x7cb   :  { %v6552_v14 = vadd.f32 %v6551_v28, %v6550_v56  ;;  %v6567_v52 = vadd.f32 %v6566_v36, %v6565_v27  ;;  %v9881_v56 = vld [vmem:[#allocation10 + $0x98] sm:$0xff]   ;;  %v9876_v28 = vld [vmem:[#allocation10 + $0x8] sm:$0xff]  }
 0x7cd   :  { %v6553_v6 = vrot.slane %v6552_v14, 4  ;;  %v6569_v25 = vadd.f32 %v6568_v7, %v6567_v52 }
 0x7cf   :  { %v6554_v34 = vadd.f32 %v6553_v6, %v6552_v14  ;;  %v6570_v58 = vrot.slane %v6569_v25, 4  ;;  %v9883_v14 = vld [vmem:[#allocation10 + $0x90] sm:$0xff]   ;;  %v9878_v6 = vld [vmem:[#allocation10] sm:$0xff]  }
 0x7d1   :  { %v6555_v41 = vrot.slane %v6554_v34, 2  ;;  %v6571_v15 = vadd.f32 %v6570_v58, %v6569_v25  ;;  %v9885_v25 = vld [vmem:[#allocation10 + $0x88] sm:$0xff]  }
 0x7d3   :  { %v6556_v47 = vadd.f32 %v6555_v41, %v6554_v34  ;;  %v6572_v54 = vrot.slane %v6571_v15, 2  ;;  %v9880_v41 = vld [vmem:[#allocation10 + $0x78] sm:$0xff]  }
 0x7d5   :  { %v6557_v32 = vrot.slane %v6556_v47, 1  ;;  %v6573_v19 = vadd.f32 %v6572_v54, %v6571_v15  ;;  %v9887_v15 = vld [vmem:[#allocation10 + $0x80] sm:$0xff]  }
 0x7d7   :  { %v6558_v31 = vadd.f32 %v6557_v32, %v6556_v47  ;;  %v6574_v35 = vrot.slane %v6573_v19, 1 }
 0x7d9   :  { %v6575_v4 = vadd.f32 %v6574_v35, %v6573_v19  ;;  %v6576_v38 = vmul.f32 0.03125, %v6558_v31  ;;  %v9882_v31 = vld [vmem:[#allocation10 + $0x70] sm:$0xff]   ;;  %v9889_v35 = vld [vmem:[#allocation10 + $0xd8] sm:$0xff]  }
 0x7db   :  { %v6577_v48 = vmul.f32 0.03125, %v6575_v4  ;;  %v6578_v46 = vmul.f32 %v6576_v38, %v6576_v38 }
 0x7dd   :  { %v6579_v51 = vsub.f32 %v6577_v48, %v6578_v46  ;;  %v9884_v48 = vld [vmem:[#allocation10 + $0x68] sm:$0xff]   ;;  %v9891_v46 = vld [vmem:[#allocation10 + $0xd0] sm:$0xff]  }
 0x7df   :  { %v6581_v59 = vadd.f32 0.8, %v6579_v51 }
 0x7e1   :  { %9938 = vrsqrt.f32 %v6581_v59 }
 0x7ee   :  { %v9939_v61 = vpop.eup %9938 }
 0x7ef   :  { %v6583_v5 = vmul.f32 %v9939_v61, %v6580_v39  ;;  %v9886_v39 = vld [vmem:[#allocation10 + $0x60] sm:$0xff]   ;;  %v9893_v61 = vld [vmem:[#allocation10 + $0xc8] sm:$0xff]  }
 0x7f1   :  { %v6585_v55 = vmul.f32 %v6583_v5, %v6576_v38  ;;  %v6590_v17 = vrot.slane %v6583_v5, %v11888_v20 }
 0x7f3   :  { %v6586_v57 = vsub.f32 %v6584_v45, %v6585_v55  ;;  %v6593_v37 = vmul.f32 %v6590_v17, %v6543_v33  ;;  %v6594_v60 = vmul.f32 %v6590_v17, %v6544_v3  ;;  %v6592_v18 = vmul.f32 %v6590_v17, %v6542_v23  ;;  %v9867_v33 = vld [vmem:[%s12093_s6 + $0x20] ss:$0 sps:$4 sm:$0xff]   ;;  %v9877_v23 = vld [vmem:[#allocation10 + $0x48] sm:$0xff]   ;;  %v9888_v55 = vld [vmem:[#allocation10 + $0xb8] sm:$0xff]  }
 0x7f4   :  { %v6591_v29 = vmul.f32 %v6590_v17, %v6541_v50  ;;  %v9865_v50 = vld [vmem:[%s12093_s6 + $0x10] sm:$0xff]   ;;  %v9875_v3 = vld [vmem:[#allocation10 + $0x50] sm:$0xff]  }
 0x7f5   :  { %v6598_v42 = vrot.slane %v6586_v57, %v11888_v20  ;;  %v9895_v17 = vld [vmem:[#allocation10 + $0xc0] sm:$0xff]  }
 0x7f7   :  { %v6601_v63 = vadd.f32 %v6598_v42, %v6593_v37  ;;  %v6602_v24 = vadd.f32 %v6598_v42, %v6594_v60  ;;  %v6599_v62 = vadd.f32 %v6598_v42, %v6591_v29  ;;  %v6600_v8 = vadd.f32 %v6598_v42, %v6592_v18  ;;  %v9890_v18 = vld [vmem:[#allocation10 + $0xb0] sm:$0xff]  }
 0x7f8   :  { %v9899_v29 = vld [vmem:[#allocation10 + $0x110] sm:$0xff]  }
 0x7f9   :  { %v6604_v16 = vpack.c.bf16 %v6602_v24, %v6601_v63  ;;  %v6603_v9 = vpack.c.bf16 %v6600_v8, %v6599_v62  ;;  %v9897_v63 = vld [vmem:[#allocation10 + $0x118] sm:$0xff]   ;;  %v9892_v24 = vld [vmem:[#allocation10 + $0xa8] sm:$0xff]  }
 0x7fa   :  { %v9901_v62 = vld [vmem:[#allocation10 + $0x108] sm:$0xff]   ;;  %v9896_v8 = vld [vmem:[#allocation10 + $0xf8] sm:$0xff]  }
 0x7fb   :  { %9125 = vmatpush3.bf16.msra.mxu1 %v6604_v16  ;;  %v9894_v16 = vld [vmem:[#allocation10 + $0xa0] sm:$0xff]  }
 0x7fc   :  { %9126 = vmatprep.subr.bf16.mxu1 %v10131_v40 }
 0x7ff   :  { %9127 = vmatpush3.bf16.msra.mxu1 %v6603_v9 }
 0x800   :  { %9172 = vmatprep.subr.bf16.mxu1 %v10131_v40 }
 0x802   :  { %9129 = vmatmul.mubr.msk.bf16.vlgmr.msra.gmra.mxu1 %vm5360_vm0, %v9863_v49  ;;  %v9903_v49 = vld [vmem:[#allocation10 + $0x100] sm:$0xff]  }
 0x803   :  { %9132 = vmatprep.mubr.msk.bf16.mxu1 %vm10132_vm6, %v10131_v40  ;;  %9173 = vmatpush3.bf16.msra.mxu1 %v9873_v21  ;;  %v9904_v21 = vld [vmem:[#allocation12 + $0x38] sm:$0xff]  }
 0x804   :  { %9174 = vmatprep.subr.bf16.mxu1 %v10131_v40 }
 0x807   :  { %9175 = vmatpush3.bf16.msra.mxu1 %v9875_v3  ;;  %v9905_v3 = vld [vmem:[#allocation12 + $0x78] sm:$0xff]  }
 0x808   :  { %9176 = vmatprep.subr.bf16.mxu1 %v10131_v40 }
 0x80a   :  { %9133 = vmatmul.mubr.msk.bf16.gmra.mxu1 %vm5360_vm0, %v9864_v26  ;;  %v9898_v26 = vld [vmem:[#allocation10 + $0xf0] sm:$0xff]  }
 0x80b   :  { %9136 = vmatprep.mubr.msk.bf16.mxu1 %vm10132_vm6, %v10131_v40  ;;  %9177 = vmatpush3.bf16.msra.mxu1 %v9877_v23  ;;  %v9906_v23 = vld [vmem:[#allocation12 + $0x30] sm:$0xff]  }
 0x80c   :  { %9178 = vmatprep.subr.bf16.mxu1 %v10131_v40 }
 0x80f   :  { %9179 = vmatpush3.bf16.msra.mxu1 %v9879_v10  ;;  %v9907_v10 = vld [vmem:[#allocation12 + $0x70] sm:$0xff]  }
 0x810   :  { %9196 = vmatprep.subr.bf16.mxu1 %v10131_v40 }
 0x812   :  { %9137 = vmatmul.mubr.msk.bf16.gmra.mxu1 %vm5360_vm0, %v9865_v50 }
 0x813   :  { %9140 = vmatprep.mubr.msk.bf16.mxu1 %vm10132_vm6, %v10131_v40 }
 0x81a   :  { %9141 = vmatmul.mubr.msk.bf16.gmra.mxu1 %vm5360_vm0, %v9866_v30  ;;  %v9900_v30 = vld [vmem:[#allocation10 + $0xe8] sm:$0xff]  }
 0x81b   :  { %9144 = vmatprep.mubr.msk.bf16.mxu1 %vm10132_vm6, %v10131_v40 }
 0x822   :  { %9145 = vmatmul.mubr.msk.bf16.gmra.mxu1 %vm5360_vm0, %v9867_v33  ;;  %v9902_v33 = vld [vmem:[#allocation10 + $0xe0] sm:$0xff]  }
 0x823   :  { %9180 = vmatprep.mubr.msk.bf16.mxu1 %vm10132_vm6, %v10131_v40 }
 0x8c2   :  { %v6686_v12 = vpop.f32.mrf.mxu1 }
 0x8c3   :  { %v6724_v54 = vpack.c.bf16 %v6686_v12, %v6686_v12  ;;  %v9908_v12 = vld [vmem:[#allocation12 + $0x28] sm:$0xff]  }
 0x8c4   :  { %v9130_v1 = vpop.f32.mrf.mxu1 }
 0x8c5   :  { %v9909_v1 = vld [vmem:[#allocation12 + $0x68] sm:$0xff]  }
 0x8c6   :  { %v6689_v2 = vpop.f32.mrf.mxu1 }
 0x8c7   :  { %v6733_v44 = vpack.c.bf16 %v6689_v2, %v6689_v2  ;;  %v9910_v2 = vld [vmem:[#allocation12 + $0x20] sm:$0xff]  }
 0x8c8   :  { %v9131_v0 = vpop.f32.mrf.mxu1 }
 0x8c9   :  { %9157 = vmatmul.mubr.msk.bf16.vlgmr.msra.gmra.mxu0 %vm6545_vm11, %v6733_v44  ;;  %v9912_v44 = vld [vmem:[#allocation12 + $0x18] sm:$0xff]  }
 0x8ca   :  { %9161 = vmatpush3.bf16.msra.mxu0 %v9872_v43  ;;  %v6694_v13 = vpop.f32.mrf.mxu1  ;;  %9168 = vmatprep.mubr.msk.bf16.mxu0 %vm10132_vm6, %v10131_v40  ;;  %v9911_v43 = vld [vmem:[#allocation12 + $0x60] sm:$0xff]   ;;  %v9913_v0 = vld [vmem:[#allocation12 + $0x58] sm:$0xff]  }
 0x8cb   :  { %9162 = vmatprep.subr.bf16.mxu0 %v10131_v40  ;;  %v6877_v27 = vpack.c.bf16 %v6694_v13, %v6694_v13  ;;  %v9915_v13 = vld [vmem:[#allocation12 + $0x50] sm:$0xff]  }
 0x8cc   :  { %v9134_v36 = vpop.f32.mrf.mxu1 }
 0x8cd   :  { %9181 = vmatmul.mubr.msk.bf16.vlgmr.msra.gmra.mxu1 %vm6545_vm11, %v6877_v27  ;;  %v9917_v27 = vld [vmem:[#allocation12 + $0x48] sm:$0xff]   ;;  %v9918_v36 = vld [vmem:[#allocation12] sm:$0xff]  }
 0x8ce   :  { %9163 = vmatpush3.bf16.msra.mxu0 %v9874_v22  ;;  %9197 = vmatpush3.bf16.msra.mxu1 %v9881_v56  ;;  %v6697_v52 = vpop.f32.mrf.mxu1  ;;  %v9914_v22 = vld [vmem:[#allocation12 + $0x10] sm:$0xff]   ;;  %v9916_v56 = vld [vmem:[#allocation12 + $0x8] sm:$0xff]  }
 0x8cf   :  { %9164 = vmatprep.subr.bf16.mxu0 %v10131_v40  ;;  %9198 = vmatprep.subr.bf16.mxu1 %v10131_v40  ;;  %v6955_v37 = vpack.c.bf16 %v6697_v52, %v6697_v52 }
 0x8d0   :  { %v9135_v7 = vpop.f32.mrf.mxu1  ;;  %9204 = vmatprep.mubr.msk.bf16.mxu1 %vm10132_vm6, %v10131_v40 }
 0x8d2   :  { %9165 = vmatpush3.bf16.msra.mxu0 %v9876_v28  ;;  %9199 = vmatpush3.bf16.msra.mxu1 %v9883_v14  ;;  %v6702_v34 = vpop.f32.mrf.mxu1  ;;  %v9919_v28 = vld [vmem:[#allocation12 + $0x40] sm:$0xff]  }
 0x8d3   :  { %9166 = vmatprep.subr.bf16.mxu0 %v10131_v40  ;;  %9200 = vmatprep.subr.bf16.mxu1 %v10131_v40  ;;  %v7033_v19 = vpack.c.bf16 %v6702_v34, %v6702_v34 }
 0x8d4   :  { %v9138_v58 = vpop.f32.mrf.mxu1 }
 0x8d6   :  { %9167 = vmatpush3.bf16.msra.mxu0 %v9878_v6  ;;  %9201 = vmatpush3.bf16.msra.mxu1 %v9885_v25  ;;  %v11993_v47 = vpop.f32.mrf.mxu1 }
 0x8d7   :  { %9184 = vmatprep.subr.bf16.mxu0 %v10131_v40  ;;  %9202 = vmatprep.subr.bf16.mxu1 %v10131_v40  ;;  %v7111_v9 = vpack.c.bf16 %v11993_v47, %v11993_v47 }
 0x8d8   :  { %v9139_v32 = vpop.f32.mrf.mxu1 }
 0x8d9   :  { %9169 = vmatmul.mubr.msk.bf16.vlgmr.msra.gmra.mxu0 %vm6545_vm11, %v6724_v54 }
 0x8da   :  { %9185 = vmatpush3.bf16.msra.mxu0 %v9880_v41  ;;  %9203 = vmatpush3.bf16.msra.mxu1 %v9887_v15  ;;  %v6710_v4 = vpop.f32.mrf.mxu1 }
 0x8db   :  { %9186 = vmatprep.subr.bf16.mxu0 %v10131_v40  ;;  %9192 = vmatprep.mubr.msk.bf16.mxu0 %vm10132_vm6, %v10131_v40  ;;  %v7189_v42 = vpack.c.bf16 %v6710_v4, %v6710_v4 }
 0x8dc   :  { %9220 = vmatprep.subr.bf16.mxu1 %v10131_v40  ;;  %v9142_v38 = vpop.f32.mrf.mxu1 }
 0x8dd   :  { %9205 = vmatmul.mubr.msk.bf16.vlgmr.msra.gmra.mxu1 %vm6545_vm11, %v7033_v19 }
 0x8de   :  { %9187 = vmatpush3.bf16.msra.mxu0 %v9882_v31  ;;  %9221 = vmatpush3.bf16.msra.mxu1 %v9889_v35  ;;  %v12003_v51 = vpop.f32.mrf.mxu1 }
 0x8df   :  { %9188 = vmatprep.subr.bf16.mxu0 %v10131_v40  ;;  %9222 = vmatprep.subr.bf16.mxu1 %v10131_v40  ;;  %v7267_v53 = vpack.c.bf16 %v12003_v51, %v12003_v51 }
 0x8e0   :  { %9228 = vmatprep.mubr.msk.bf16.mxu1 %vm10132_vm6, %v10131_v40  ;;  %v9143_v59 = vpop.f32.mrf.mxu1 }
 0x8e2   :  { %9189 = vmatpush3.bf16.msra.mxu0 %v9884_v48  ;;  %9223 = vmatpush3.bf16.msra.mxu1 %v9891_v46  ;;  %v6718_v5 = vpop.f32.mrf.mxu1 }
 0x8e3   :  { %9190 = vmatprep.subr.bf16.mxu0 %v10131_v40  ;;  %9224 = vmatprep.subr.bf16.mxu1 %v10131_v40  ;;  %v7345_v50 = vpack.c.bf16 %v6718_v5, %v6718_v5 }
 0x8e4   :  { %v9146_v45 = vpop.f32.mrf.mxu1 }
 0x8e6   :  { %9191 = vmatpush3.bf16.msra.mxu0 %v9886_v39  ;;  %9225 = vmatpush3.bf16.msra.mxu1 %v9893_v61  ;;  %v6721_v57 = vpop.f32.mrf.mxu1 }
 0x8e7   :  { %9208 = vmatprep.subr.bf16.mxu0 %v10131_v40  ;;  %9226 = vmatprep.subr.bf16.mxu1 %v10131_v40 }
 0x8e8   :  { %v9147_v60 = vpop.f32.mrf.mxu1 }
 0x8e9   :  { %9193 = vmatmul.mubr.msk.bf16.vlgmr.msra.gmra.mxu0 %vm6545_vm11, %v6955_v37 }
 0x8ea   :  { %9209 = vmatpush3.bf16.msra.mxu0 %v9888_v55  ;;  %9227 = vmatpush3.bf16.msra.mxu1 %v9895_v17 }
 0x8eb   :  { %9210 = vmatprep.subr.bf16.mxu0 %v10131_v40  ;;  %9216 = vmatprep.mubr.msk.bf16.mxu0 %vm10132_vm6, %v10131_v40 }
 0x8ec   :  { %9244 = vmatprep.subr.bf16.mxu1 %v10131_v40 }
 0x8ed   :  { %9229 = vmatmul.mubr.msk.bf16.vlgmr.msra.gmra.mxu1 %vm6545_vm11, %v7189_v42 }
 0x8ee   :  { %9211 = vmatpush3.bf16.msra.mxu0 %v9890_v18  ;;  %9245 = vmatpush3.bf16.msra.mxu1 %v9897_v63 }
 0x8ef   :  { %9212 = vmatprep.subr.bf16.mxu0 %v10131_v40  ;;  %9246 = vmatprep.subr.bf16.mxu1 %v10131_v40 }
 0x8f0   :  { %9252 = vmatprep.mubr.msk.bf16.mxu1 %vm10132_vm6, %v10131_v40 }
 0x8f2   :  { %9213 = vmatpush3.bf16.msra.mxu0 %v9892_v24  ;;  %9247 = vmatpush3.bf16.msra.mxu1 %v9899_v29 }
 0x8f3   :  { %9214 = vmatprep.subr.bf16.mxu0 %v10131_v40  ;;  %9248 = vmatprep.subr.bf16.mxu1 %v10131_v40 }
 0x8f6   :  { %9215 = vmatpush3.bf16.msra.mxu0 %v9894_v16  ;;  %9249 = vmatpush3.bf16.msra.mxu1 %v9901_v62 }
 0x8f7   :  { %9232 = vmatprep.subr.bf16.mxu0 %v10131_v40  ;;  %9250 = vmatprep.subr.bf16.mxu1 %v10131_v40 }
 0x8f9   :  { %9217 = vmatmul.mubr.msk.bf16.vlgmr.msra.gmra.mxu0 %vm6545_vm11, %v7111_v9 }
 0x8fa   :  { %9233 = vmatpush3.bf16.msra.mxu0 %v9896_v8  ;;  %9240 = vmatprep.mubr.msk.bf16.mxu0 %vm10132_vm6, %v10131_v40 }
 0x8fb   :  { %9234 = vmatprep.subr.bf16.mxu0 %v10131_v40  ;;  %9251 = vmatpush3.bf16.msra.mxu1 %v9903_v49 }
 0x8fc   :  { %9276 = vmatprep.subr.bf16.mxu1 %v10131_v40 }
 0x8fe   :  { %9235 = vmatpush3.bf16.msra.mxu0 %v9898_v26  ;;  %9253 = vmatmul.mubr.msk.bf16.vlgmr.msra.gmra.mxu1 %vm6545_vm11, %v7345_v50  ;;  %v8474_v26 = vld [vmem:[#allocation13 + $0x7] ss:$0 sm:$0xff] }
 0x8ff   :  { %9236 = vmatprep.subr.bf16.mxu0 %v10131_v40  ;;  %9292 = vmatprep.mubr.msk.bf16.mxu1 %vm10132_vm6, %v10131_v40 }
 0x900   :  { %9277 = vmatpush3.bf16.msra.mxu1 %v9904_v21 }
 0x901   :  { %9278 = vmatprep.subr.bf16.mxu1 %v10131_v40 }
 0x902   :  { %9237 = vmatpush3.bf16.msra.mxu0 %v9900_v30 }
 0x903   :  { %9238 = vmatprep.subr.bf16.mxu0 %v10131_v40 }
 0x904   :  { %9279 = vmatpush3.bf16.msra.mxu1 %v9906_v23 }
 0x905   :  { %9280 = vmatprep.subr.bf16.mxu1 %v10131_v40 }
 0x906   :  { %9239 = vmatpush3.bf16.msra.mxu0 %v9902_v33 }
 0x907   :  { %9256 = vmatprep.subr.bf16.mxu0 %v10131_v40 }
 0x908   :  { %9281 = vmatpush3.bf16.msra.mxu1 %v9908_v12 }
 0x909   :  { %9241 = vmatmul.mubr.msk.bf16.vlgmr.msra.gmra.mxu0 %vm6545_vm11, %v7267_v53  ;;  %9282 = vmatprep.subr.bf16.mxu1 %v10131_v40 }
 0x90a   :  { %9272 = vmatprep.mubr.msk.bf16.mxu0 %vm10132_vm6, %v10131_v40  ;;  %9257 = vmatpush3.bf16.msra.mxu0 %v9905_v3 }
 0x90b   :  { %9258 = vmatprep.subr.bf16.mxu0 %v10131_v40 }
 0x90c   :  { %9283 = vmatpush3.bf16.msra.mxu1 %v9910_v2 }
 0x90d   :  { %9284 = vmatprep.subr.bf16.mxu1 %v10131_v40 }
 0x90e   :  { %9259 = vmatpush3.bf16.msra.mxu0 %v9907_v10 }
 0x90f   :  { %9260 = vmatprep.subr.bf16.mxu0 %v10131_v40 }
 0x910   :  { %9285 = vmatpush3.bf16.msra.mxu1 %v9912_v44 }
 0x911   :  { %9286 = vmatprep.subr.bf16.mxu1 %v10131_v40 }
 0x912   :  { %9261 = vmatpush3.bf16.msra.mxu0 %v9909_v1 }
 0x913   :  { %9262 = vmatprep.subr.bf16.mxu0 %v10131_v40 }
 0x914   :  { %9287 = vmatpush3.bf16.msra.mxu1 %v9914_v22 }
 0x915   :  { %9288 = vmatprep.subr.bf16.mxu1 %v10131_v40 }
 0x916   :  { %9263 = vmatpush3.bf16.msra.mxu0 %v9911_v43 }
 0x917   :  { %9264 = vmatprep.subr.bf16.mxu0 %v10131_v40 }
 0x918   :  { %9289 = vmatpush3.bf16.msra.mxu1 %v9916_v56 }
 0x919   :  { %9290 = vmatprep.subr.bf16.mxu1 %v10131_v40 }
 0x91a   :  { %9265 = vmatpush3.bf16.msra.mxu0 %v9913_v0 }
 0x91b   :  { %9266 = vmatprep.subr.bf16.mxu0 %v10131_v40 }
 0x91c   :  { %9291 = vmatpush3.bf16.msra.mxu1 %v9918_v36 }
 0x91d   :  { %9316 = vmatprep.subr.bf16.mxu1 %v10131_v40 }
 0x91e   :  { %9267 = vmatpush3.bf16.msra.mxu0 %v9915_v13 }
 0x91f   :  { %9268 = vmatprep.subr.bf16.mxu0 %v10131_v40 }
 0x922   :  { %9269 = vmatpush3.bf16.msra.mxu0 %v9917_v27 }
 0x923   :  { %9270 = vmatprep.subr.bf16.mxu0 %v10131_v40 }
 0x926   :  { %9271 = vmatpush3.bf16.msra.mxu0 %v9919_v28 }
 0x927   :  { %9296 = vmatprep.subr.bf16.mxu0 %v10131_v40 }
 0x989   :  { %v6804_v14 = vpop.f32.mrf.mxu0 }
 0x98b   :  { %v9158_v52 = vpop.f32.mrf.mxu0 }
 0x98d   :  { %v6807_v7 = vpop.f32.mrf.mxu0  ;;  %v6948_v6 = vpop.f32.mrf.mxu1 }
 0x98f   :  { %v9159_v25 = vpop.f32.mrf.mxu0  ;;  %v9182_v34 = vpop.f32.mrf.mxu1 }
 0x990   :  { %v7449_v34 = vld [vmem:[#allocation13 + $0x8] sm:$0x1] }
 0x991   :  { %v6951_v58 = vpop.f32.mrf.mxu1 }
 0x993   :  { %v9183_v41 = vpop.f32.mrf.mxu1 }
 0x999   :  { %v6871_v15 = vpop.f32.mrf.mxu0 }
 0x99a   :  { %v6872_v45 = vadd.f32 %v6871_v15, %v6804_v14  ;;  %v7453_v15 = vld [vmem:[#allocation13 + $0x9] sm:$0x1] }
 0x99b   :  { %v9170_v47 = vpop.f32.mrf.mxu0 }
 0x99c   :  { %v6954_v57 = vadd.f32 %v6948_v6, %v6872_v45  ;;  %v9928_v45 = vld [vmem:[#allocation12 + $0xd8] sm:$0xff]  }
 0x99d   :  { %v6874_v54 = vpop.f32.mrf.mxu0  ;;  %v7104_v32 = vpop.f32.mrf.mxu1 }
 0x99f   :  { %v9171_v19 = vpop.f32.mrf.mxu0  ;;  %v9206_v31 = vpop.f32.mrf.mxu1 }
 0x9a1   :  { %v7107_v35 = vpop.f32.mrf.mxu1 }
 0x9a3   :  { %v9207_v4 = vpop.f32.mrf.mxu1 }
 0x9a4   :  { %v9920_v4 = vld [vmem:[#allocation12 + $0xf8] sm:$0xff]  }
 0x9a9   :  { %v7026_v38 = vpop.f32.mrf.mxu0 }
 0x9aa   :  { %v7032_v60 = vadd.f32 %v7026_v38, %v6954_v57  ;;  %v9931_v57 = vld [vmem:[#allocation12 + $0x90] sm:$0xff]  }
 0x9ab   :  { %v9194_v48 = vpop.f32.mrf.mxu0 }
 0x9ac   :  { %v7110_v24 = vadd.f32 %v7104_v32, %v7032_v60  ;;  %v9921_v48 = vld [vmem:[#allocation12 + $0xb8] sm:$0xff]   ;;  %v9933_v60 = vld [vmem:[#allocation12 + $0x88] sm:$0xff]  }
 0x9ad   :  { %v7029_v46 = vpop.f32.mrf.mxu0  ;;  %v7260_v51 = vpop.f32.mrf.mxu1 }
 0x9af   :  { %v9195_v59 = vpop.f32.mrf.mxu0  ;;  %v9230_v39 = vpop.f32.mrf.mxu1 }
 0x9b0   :  { %v9923_v59 = vld [vmem:[#allocation12 + $0xb0] sm:$0xff]   ;;  %v9925_v39 = vld [vmem:[#allocation12 + $0xa8] sm:$0xff]  }
 0x9b1   :  { %v7263_v61 = vpop.f32.mrf.mxu1 }
 0x9b2   :  { %v9926_v61 = vld [vmem:[#allocation12 + $0xe0] sm:$0xff]  }
 0x9b3   :  { %v9231_v5 = vpop.f32.mrf.mxu1 }
 0x9b4   :  { %v9927_v5 = vld [vmem:[#allocation12 + $0xa0] sm:$0xff]  }
 0x9b9   :  { %v7182_v55 = vpop.f32.mrf.mxu0 }
 0x9ba   :  { %v7188_v16 = vadd.f32 %v7182_v55, %v7110_v24  ;;  %v9929_v55 = vld [vmem:[#allocation12 + $0x98] sm:$0xff]  }
 0x9bb   :  { %v9218_v17 = vpop.f32.mrf.mxu0 }
 0x9bc   :  { %v7266_v8 = vadd.f32 %v7260_v51, %v7188_v16  ;;  %v9922_v51 = vld [vmem:[#allocation12 + $0xf0] sm:$0xff]  }
 0x9bd   :  { %v7185_v37 = vpop.f32.mrf.mxu0  ;;  %v9930_v17 = vld [vmem:[#allocation12 + $0xd0] sm:$0xff]  }
 0x9be   :  { %v7416_v42 = vpop.f32.mrf.mxu1  ;;  %v9932_v37 = vld [vmem:[#allocation12 + $0xc8] sm:$0xff]  }
 0x9bf   :  { %v9219_v18 = vpop.f32.mrf.mxu0 }
 0x9c0   :  { %v9254_v63 = vpop.f32.mrf.mxu1  ;;  %v9935_v18 = vld [vmem:[#allocation12 + $0x80] sm:$0xff]  }
 0x9c2   :  { %v7419_v29 = vpop.f32.mrf.mxu1 }
 0x9c4   :  { %v9255_v62 = vpop.f32.mrf.mxu1 }
 0x9c9   :  { %v7338_v9 = vpop.f32.mrf.mxu0 }
 0x9ca   :  { %v7344_v49 = vadd.f32 %v7338_v9, %v7266_v8 }
 0x9cb   :  { %v9242_v50 = vpop.f32.mrf.mxu0 }
 0x9cc   :  { %v7422_v30 = vadd.f32 %v7416_v42, %v7344_v49  ;;  %v9934_v42 = vld [vmem:[#allocation12 + $0xc0] sm:$0xff]  }
 0x9cd   :  { %v7341_v33 = vpop.f32.mrf.mxu0 }
 0x9ce   :  { %v7428_v53 = vadd.f32 %v8474_v26, %v7422_v30 }
 0x9cf   :  { %v9243_v21 = vpop.f32.mrf.mxu0 }
 0x9d0   :  { %vm7429_vm0 = vcmp.gt.f32.partialorder %v7428_v53, 0.0  ;;  %v7430_v3 = vmul.f32 0.2, %v7428_v53 }
 0x9d2   :  { %v7431_v23 = vsel %vm7429_vm0, %v7428_v53, %v7430_v3 }
 0x9d3   :  { %v7432_v10 = vrot.slane %v7431_v23, 4  ;;  %v7438_v12 = vmul.f32 %v7431_v23, %v7431_v23 }
 0x9d5   :  { %v7433_v1 = vadd.f32 %v7432_v10, %v7431_v23  ;;  %v7439_v2 = vrot.slane %v7438_v12, 4 }
 0x9d7   :  { %v7434_v43 = vrot.slane %v7433_v1, 2  ;;  %v7440_v44 = vadd.f32 %v7439_v2, %v7438_v12  ;;  %v8507_v12 = vld [vmem:[#allocation13 + $0xa] ss:$0 sm:$0xff] }
 0x9d9   :  { %v7435_v0 = vadd.f32 %v7434_v43, %v7433_v1  ;;  %v7441_v22 = vrot.slane %v7440_v44, 2 }
 0x9db   :  { %v7436_v13 = vrot.slane %v7435_v0, 1  ;;  %v7442_v56 = vadd.f32 %v7441_v22, %v7440_v44 }
 0x9dd   :  { %v7437_v27 = vadd.f32 %v7436_v13, %v7435_v0  ;;  %v7443_v36 = vrot.slane %v7442_v56, 1 }
 0x9df   :  { %v7444_v28 = vadd.f32 %v7443_v36, %v7442_v56  ;;  %v7445_v14 = vmul.f32 0.125, %v7437_v27 }
 0x9e1   :  { %v7446_v52 = vmul.f32 0.125, %v7444_v28  ;;  %v7447_v7 = vmul.f32 %v7445_v14, %v7445_v14 }
 0x9e3   :  { %v7448_v6 = vsub.f32 %v7446_v52, %v7447_v7 }
 0x9e5   :  { %v7450_v25 = vadd.f32 0.8, %v7448_v6 }
 0x9e7   :  { %9940 = vrsqrt.f32 %v7450_v25 }
 0x9f4   :  { %v9941_v58 = vpop.eup %9940 }
 0x9f5   :  { %v7452_v41 = vmul.f32 %v9941_v58, %v7449_v34 }
 0x9f7   :  { %v7454_v47 = vmul.f32 %v7452_v41, %v7445_v14  ;;  %v7459_v54 = vrot.slane %v7452_v41, %v11888_v20 }
 0x9f9   :  { %v7455_v32 = vsub.f32 %v7453_v15, %v7454_v47  ;;  %v7460_v19 = vmul.f32 %v7459_v54, %v7431_v23 }
 0x9fb   :  { %v7464_v31 = vrot.slane %v7455_v32, %v11888_v20  ;;  %v9924_v20 = vld [vmem:[#allocation12 + $0xe8] sm:$0xff]  }
 0x9fd   :  { %v7465_v35 = vadd.f32 %v7464_v31, %v7460_v19 }
 0x9ff   :  { %v7466_v38 = vpack.c.bf16 %v7465_v35, %v7465_v35 }
 0xa01   :  { %9293 = vmatmul.mubr.bf16.vlgmr.msra.gmra.mxu1 %v7466_v38  ;;  %v7501_v46 = vrot.slane %v7466_v38, 1  ;;  %v7804_v63 = vrot.slane %v7466_v38, 3  ;;  %v7696_v24 = vrot.slane %v7466_v38, 2 }
 0xa02   :  { %9317 = vmatpush3.bf16.msra.mxu1 %v9920_v4  ;;  %9332 = vmatprep.mubr.msk.bf16.mxu1 %vm10132_vm6, %v10131_v40 }
 0xa03   :  { %9273 = vmatmul.mubr.bf16.vlgmr.msra.gmra.mxu0 %v7501_v46  ;;  %9318 = vmatprep.subr.bf16.mxu1 %v10131_v40 }
 0xa04   :  { %9297 = vmatpush3.bf16.msra.mxu0 %v9921_v48  ;;  %9312 = vmatprep.mubr.msk.bf16.mxu0 %vm10132_vm6, %v10131_v40 }
 0xa05   :  { %9298 = vmatprep.subr.bf16.mxu0 %v10131_v40 }
 0xa06   :  { %9319 = vmatpush3.bf16.msra.mxu1 %v9922_v51 }
 0xa07   :  { %9320 = vmatprep.subr.bf16.mxu1 %v10131_v40 }
 0xa08   :  { %9299 = vmatpush3.bf16.msra.mxu0 %v9923_v59 }
 0xa09   :  { %9300 = vmatprep.subr.bf16.mxu0 %v10131_v40 }
 0xa0a   :  { %9321 = vmatpush3.bf16.msra.mxu1 %v9924_v20 }
 0xa0b   :  { %9322 = vmatprep.subr.bf16.mxu1 %v10131_v40 }
 0xa0c   :  { %9301 = vmatpush3.bf16.msra.mxu0 %v9925_v39 }
 0xa0d   :  { %9302 = vmatprep.subr.bf16.mxu0 %v10131_v40 }
 0xa0e   :  { %9323 = vmatpush3.bf16.msra.mxu1 %v9926_v61 }
 0xa0f   :  { %9324 = vmatprep.subr.bf16.mxu1 %v10131_v40 }
 0xa10   :  { %9303 = vmatpush3.bf16.msra.mxu0 %v9927_v5 }
 0xa11   :  { %9304 = vmatprep.subr.bf16.mxu0 %v10131_v40 }
 0xa12   :  { %9325 = vmatpush3.bf16.msra.mxu1 %v9928_v45 }
 0xa13   :  { %9326 = vmatprep.subr.bf16.mxu1 %v10131_v40 }
 0xa14   :  { %9305 = vmatpush3.bf16.msra.mxu0 %v9929_v55 }
 0xa15   :  { %9306 = vmatprep.subr.bf16.mxu0 %v10131_v40 }
 0xa16   :  { %9327 = vmatpush3.bf16.msra.mxu1 %v9930_v17 }
 0xa17   :  { %9328 = vmatprep.subr.bf16.mxu1 %v10131_v40 }
 0xa18   :  { %9307 = vmatpush3.bf16.msra.mxu0 %v9931_v57 }
 0xa19   :  { %9308 = vmatprep.subr.bf16.mxu0 %v10131_v40 }
 0xa1a   :  { %9329 = vmatpush3.bf16.msra.mxu1 %v9932_v37 }
 0xa1b   :  { %9330 = vmatprep.subr.bf16.mxu1 %v10131_v40 }
 0xa1c   :  { %9309 = vmatpush3.bf16.msra.mxu0 %v9933_v60 }
 0xa1d   :  { %9310 = vmatprep.subr.bf16.mxu0 %v10131_v40  ;;  %v7902_v40 = vand.u32 127, %v5462_v11 }
 0xa1e   :  { %9331 = vmatpush3.bf16.msra.mxu1 %v9934_v42 }
 0xa1f   :  { %vm7903_vm12 = vcmp.lt.s32.totalorder %v7902_v40, 10 }
 0xa20   :  { %9311 = vmatpush3.bf16.msra.mxu0 %v9935_v18 }
 0xa21   :  { %9333 = vmatmul.mubr.bf16.vlgmr.msra.gmra.mxu1 %v7804_v63 }
 0xa23   :  { %9313 = vmatmul.mubr.bf16.vlgmr.msra.gmra.mxu0 %v7696_v24 }
 0xac1   :  { %v7673_v29 = vpop.f32.mrf.mxu1 }
 0xac3   :  { %v7585_v16 = vpop.f32.mrf.mxu0  ;;  %v9294_v62 = vpop.f32.mrf.mxu1 }
 0xac4   :  { %v7674_v33 = vadd.f32 %v7673_v29, %v7585_v16 }
 0xac5   :  { %v9274_v8 = vpop.f32.mrf.mxu0  ;;  %v7676_v9 = vpop.f32.mrf.mxu1 }
 0xac7   :  { %v7588_v49 = vpop.f32.mrf.mxu0  ;;  %v9295_v26 = vpop.f32.mrf.mxu1 }
 0xac9   :  { %v9275_v50 = vpop.f32.mrf.mxu0 }
 0xae1   :  { %v7888_v30 = vpop.f32.mrf.mxu1 }
 0xae3   :  { %v7780_v53 = vpop.f32.mrf.mxu0  ;;  %v9334_v21 = vpop.f32.mrf.mxu1 }
 0xae4   :  { %v7786_v3 = vadd.f32 %v7780_v53, %v7674_v33 }
 0xae5   :  { %v9314_v23 = vpop.f32.mrf.mxu0  ;;  %v7891_v10 = vpop.f32.mrf.mxu1 }
 0xae6   :  { %v7894_v1 = vadd.f32 %v7888_v30, %v7786_v3 }
 0xae7   :  { %v7783_v2 = vpop.f32.mrf.mxu0  ;;  %v9335_v43 = vpop.f32.mrf.mxu1 }
 0xae8   :  { %v7900_v44 = vadd.f32 %v8507_v12, %v7894_v1 }
 0xae9   :  { %v9315_v0 = vpop.f32.mrf.mxu0 }
 0xaea   :  { %v7904_v22 = vsel %vm7903_vm12, %v7900_v44, -1e+30 }
 0xaeb   :  { %v7906_v13 = vsel %vm7905_vm13, %v7904_v22, -inf }
 0xaec   :  { %7907 = vmax.xlane.f32.xlu0 %v7906_v13 }
 0xb75   :  { %v7908_v56 = vpop.xlane.xlu0 %7907 }
 0xb76   :  { %v7909_v27 = vsub.f32 %v7904_v22, %v7908_v56 }
 0xb78   :  { %v7910_v36 = vmul.f32 1.442695, %v7909_v27 }
 0xb7a   :  { %9942 = vpow2.f32 %v7910_v36 }
 0xb87   :  { %v9943_v11 = vpop.eup %9942 }
 0xb88   :  { %v7912_v28 = vsel %vm7905_vm13, %v9943_v11, 0.0 }
 0xb89   :  { %7913 = vadd.xlane.f32.xlu0 %v7912_v28 }
 0xc12   :  { %v7914_v14 = vpop.xlane.xlu0 %7913 }
 0xc13   :  { %9944 = vrcp.f32 %v7914_v14 }
 0xc20   :  { %v9945_v52 = vpop.eup %9944 }
 0xc21   :  { %v7916_v7 = vmul.f32 %v9945_v52, %v9943_v11 }
 0xc23   :  { %v7917_v6 = vsel %vm7903_vm12, %v7916_v7, %v7900_v44 }
 0xc24   :  { %7918 = vst [vmem:[%s12097_s10] sm:$0x3] %v7917_v6 }
 0xc25   :  { %7923 = vsyncpa [#allocation3], 1 }
 0xc26   :  { %7924 = vsyncpa [#allocation5], 1 }
 0xc27   :  { %7925 = vsyncpa [#allocation8], 1 }
 0xc28   :  { %7926 = vsyncpa [#allocation11], 1 }
 0xc29   :  { %7927 = vsyncpa [#allocation14], 1 }

</bundles_post_ra>
